<compile_context>
chip_gen: v5e
topology: v5e:2x2
jax: 0.10.0
libtpu: 0.0.40
codegen_flags: <defaults>
</compile_context>

<pallas_src>
import math
import functools

import jax
import jax.numpy as jnp
from jax.experimental import pallas as pl
from jax.experimental.pallas import tpu as pltpu

NEG_INF = -1e9


# ----------------------------------------------------------------------------
# In-kernel helper math (traced inline inside the Pallas kernels)
# ----------------------------------------------------------------------------

def _layer_norm(x, g, b, eps):
    # x: (rows, D) f32, g/b: (1, D) f32
    mu = jnp.mean(x, axis=-1, keepdims=True)
    xc = x - mu
    var = jnp.mean(xc * xc, axis=-1, keepdims=True)
    return xc * jax.lax.rsqrt(var + eps) * g + b


def _mha(q, k, v, bias, ctx_ref, num_heads):
    # q: (Bb, Lq, D) f32, k/v: (Bb, Lk, D) f32, bias broadcastable to (Bb, Lq, Lk) f32.
    # Head outputs are written into the VMEM scratch ctx_ref (Bb, Lq, D) — no concat.
    Bb, Lq, D = q.shape
    Dh = D // num_heads
    scale = 1.0 / math.sqrt(Dh)
    qs = (q * scale).astype(jnp.bfloat16)          # fold 1/sqrt(Dh) into Q once
    kb = k.astype(jnp.bfloat16)
    vb = v.astype(jnp.bfloat16)
    for h in range(num_heads):                     # static unroll; one head live at a time
        lo = h * Dh
        qh = qs[:, :, lo:lo + Dh]
        kh = kb[:, :, lo:lo + Dh]
        vh = vb[:, :, lo:lo + Dh]
        s = jnp.einsum("bqd,bkd->bqk", qh, kh,
                       preferred_element_type=jnp.float32) + bias
        m = jnp.max(s, axis=-1, keepdims=True)
        p = jnp.exp(s - m)
        p = p / jnp.sum(p, axis=-1, keepdims=True)         # exact divide (parity)
        ctx_ref[:, :, lo:lo + Dh] = jnp.einsum(
            "bqk,bkd->bqd", p.astype(jnp.bfloat16), vh,
            preferred_element_type=jnp.float32)
    return ctx_ref[...]                            # (Bb, Lq, D) f32


# ----------------------------------------------------------------------------
# Fused encoder-layer kernel (one grid step per Bb batch elements)
# ----------------------------------------------------------------------------

def _encoder_layer_kernel(x_ref, skr_ref, wqkv_ref, wo_ref, w1_ref, w2_ref, vec_ref,
                          o_ref, ctx_ref, *, num_heads, eps):
    Bb = skr_ref.shape[0]
    L = skr_ref.shape[2]
    D = x_ref.shape[1]
    Hf = w1_ref.shape[1]

    xf = x_ref[...]                                # (Bb*L, D) bf16

    # packed per-layer vectors (f32): biases + LayerNorm params
    vec = vec_ref[...]
    bqkv = vec[0:1, :3 * D]
    bo = vec[1:2, :D]
    ln1g = vec[2:3, :D]
    ln1b = vec[3:4, :D]
    b1 = vec[4:5, :Hf]
    b2 = vec[5:6, :D]
    ln2g = vec[6:7, :D]
    ln2b = vec[7:8, :D]

    # fused QKV projection over all Bb*L rows
    qkv = jnp.dot(xf, wqkv_ref[...], preferred_element_type=jnp.float32) + bqkv
    q = qkv[:, :D].reshape(Bb, L, D)
    k = qkv[:, D:2 * D].reshape(Bb, L, D)
    v = qkv[:, 2 * D:].reshape(Bb, L, D)

    # key-only padding mask built in-kernel (matches pad_mask semantics)
    sk = skr_ref[...]                              # (Bb, 1, L) f32 keep vector
    bias = jnp.where(sk > 0.5, 0.0, NEG_INF)       # broadcasts over queries

    ctx = _mha(q, k, v, bias, ctx_ref, num_heads)
    ctx2 = ctx.reshape(Bb * L, D).astype(jnp.bfloat16)
    attn = jnp.dot(ctx2, wo_ref[...], preferred_element_type=jnp.float32) + bo

    # residual + LayerNorm fused (f32)
    y = _layer_norm(xf.astype(jnp.float32) + attn, ln1g, ln1b, eps)

    # FFN
    h = jnp.dot(y.astype(jnp.bfloat16), w1_ref[...],
                preferred_element_type=jnp.float32) + b1
    h = jnp.maximum(h, 0.0)
    ff = jnp.dot(h.astype(jnp.bfloat16), w2_ref[...],
                 preferred_element_type=jnp.float32) + b2

    o_ref[...] = _layer_norm(y + ff, ln2g, ln2b, eps).astype(o_ref.dtype)


def _pick_block_batch(B, L, target_rows=256):
    bb = max(1, min(B, target_rows // max(1, L)))
    while B % bb != 0:
        bb -= 1
    return bb


def encoder_layer(x, src_keep_row, p, num_heads, eps=1e-5):
    B, L, D = x.shape
    Hf = p["w1"].shape[1]
    Bb = _pick_block_batch(B, L)
    nb = B // Bb
    R, W = p["vec"].shape
    x2 = x.reshape(B * L, D)
    const2 = lambda b: (0, 0)
    kern = functools.partial(_encoder_layer_kernel, num_heads=num_heads, eps=eps)
    out = pl.pallas_call(
        kern,
        out_shape=jax.ShapeDtypeStruct((B * L, D), jnp.bfloat16),
        grid=(nb,),
        in_specs=[
            pl.BlockSpec((Bb * L, D), lambda b: (b, 0)),     # x rows
            pl.BlockSpec((Bb, 1, L), lambda b: (b, 0, 0)),   # src key-keep
            pl.BlockSpec((D, 3 * D), const2),                # wqkv (fused, bf16)
            pl.BlockSpec((D, D), const2),                    # wo
            pl.BlockSpec((D, Hf), const2),                   # w1
            pl.BlockSpec((Hf, D), const2),                   # w2
            pl.BlockSpec((R, W), const2),                    # packed biases / LN params
        ],
        out_specs=pl.BlockSpec((Bb * L, D), lambda b: (b, 0)),
        scratch_shapes=[pltpu.VMEM((Bb, L, D), jnp.float32)],
        compiler_params=pltpu.CompilerParams(dimension_semantics=("parallel",)),
    )(x2, src_keep_row, p["wqkv"], p["wo"], p["w1"], p["w2"], p["vec"])
    return out.reshape(B, L, D)


# ----------------------------------------------------------------------------
# Fused decoder-layer kernel (one grid step per Bb batch elements)
# ----------------------------------------------------------------------------

def _decoder_layer_kernel(y_ref, enc_ref, tkr_ref, tkc_ref, skr_ref,
                          sa_wqkv_ref, sa_wo_ref,
                          ca_wq_ref, ca_wkv_ref, ca_wo_ref,
                          w1_ref, w2_ref, vec_ref,
                          o_ref, ctx_ref, *, num_heads, eps):
    Bb = tkr_ref.shape[0]
    Lt = tkr_ref.shape[2]
    Ls = skr_ref.shape[2]
    D = y_ref.shape[1]
    Hf = w1_ref.shape[1]

    yf = y_ref[...]                                # (Bb*Lt, D) bf16
    encf = enc_ref[...]                            # (Bb*Ls, D) bf16

    vec = vec_ref[...]
    sa_bqkv = vec[0:1, :3 * D]
    sa_bo = vec[1:2, :D]
    ln1g = vec[2:3, :D]
    ln1b = vec[3:4, :D]
    ca_bq = vec[4:5, :D]
    ca_bkv = vec[5:6, :2 * D]
    ca_bo = vec[6:7, :D]
    ln2g = vec[7:8, :D]
    ln2b = vec[8:9, :D]
    b1 = vec[9:10, :Hf]
    b2 = vec[10:11, :D]
    ln3g = vec[11:12, :D]
    ln3b = vec[12:13, :D]

    tk_row = tkr_ref[...]                          # (Bb, 1, Lt)
    tk_col = tkc_ref[...]                          # (Bb, Lt, 1)
    sk_row = skr_ref[...]                          # (Bb, 1, Ls)

    # ---- masked causal self-attention ----
    qkv = jnp.dot(yf, sa_wqkv_ref[...], preferred_element_type=jnp.float32) + sa_bqkv
    q = qkv[:, :D].reshape(Bb, Lt, D)
    k = qkv[:, D:2 * D].reshape(Bb, Lt, D)
    v = qkv[:, 2 * D:].reshape(Bb, Lt, D)

    # mask = causal & tgt_keep[q] & tgt_keep[k] (built in-kernel)
    bias_self = (jnp.where(tk_col > 0.5, 0.0, NEG_INF)
                 + jnp.where(tk_row > 0.5, 0.0, NEG_INF))     # (Bb, Lt, Lt)
    rowi = jax.lax.broadcasted_iota(jnp.int32, (Lt, Lt), 0)
    coli = jax.lax.broadcasted_iota(jnp.int32, (Lt, Lt), 1)
    bias_self = jnp.where(coli <= rowi, bias_self, NEG_INF)

    ctx = _mha(q, k, v, bias_self, ctx_ref, num_heads)
    ctx2 = ctx.reshape(Bb * Lt, D).astype(jnp.bfloat16)
    sa = jnp.dot(ctx2, sa_wo_ref[...], preferred_element_type=jnp.float32) + sa_bo
    y1 = _layer_norm(yf.astype(jnp.float32) + sa, ln1g, ln1b, eps)

    # ---- cross attention (Q from decoder, fused KV from encoder output) ----
    qc = jnp.dot(y1.astype(jnp.bfloat16), ca_wq_ref[...],
                 preferred_element_type=jnp.float32) + ca_bq
    kvc = jnp.dot(encf, ca_wkv_ref[...], preferred_element_type=jnp.float32) + ca_bkv
    qc = qc.reshape(Bb, Lt, D)
    kc = kvc[:, :D].reshape(Bb, Ls, D)
    vc = kvc[:, D:].reshape(Bb, Ls, D)

    # mask = tgt_keep[q] & src_keep[k]
    bias_cross = (jnp.where(tk_col > 0.5, 0.0, NEG_INF)
                  + jnp.where(sk_row > 0.5, 0.0, NEG_INF))    # (Bb, Lt, Ls)

    ctx_c = _mha(qc, kc, vc, bias_cross, ctx_ref, num_heads)
    ctx_c2 = ctx_c.reshape(Bb * Lt, D).astype(jnp.bfloat16)
    ca = jnp.dot(ctx_c2, ca_wo_ref[...], preferred_element_type=jnp.float32) + ca_bo
    y2 = _layer_norm(y1 + ca, ln2g, ln2b, eps)

    # ---- feed-forward ----
    h = jnp.dot(y2.astype(jnp.bfloat16), w1_ref[...],
                preferred_element_type=jnp.float32) + b1
    h = jnp.maximum(h, 0.0)
    ff = jnp.dot(h.astype(jnp.bfloat16), w2_ref[...],
                 preferred_element_type=jnp.float32) + b2

    o_ref[...] = _layer_norm(y2 + ff, ln3g, ln3b, eps).astype(o_ref.dtype)


def decoder_layer(y, enc_out, tgt_keep_row, tgt_keep_col, src_keep_row, p,
                  num_heads, eps=1e-5):
    B, Lt, D = y.shape
    Ls = enc_out.shape[1]
    Hf = p["w1"].shape[1]
    Bb = _pick_block_batch(B, Lt)
    nb = B // Bb
    R, W = p["vec"].shape
    y2 = y.reshape(B * Lt, D)
    enc2 = enc_out.reshape(B * Ls, D)
    const2 = lambda b: (0, 0)
    kern = functools.partial(_decoder_layer_kernel, num_heads=num_heads, eps=eps)
    out = pl.pallas_call(
        kern,
        out_shape=jax.ShapeDtypeStruct((B * Lt, D), jnp.bfloat16),
        grid=(nb,),
        in_specs=[
            pl.BlockSpec((Bb * Lt, D), lambda b: (b, 0)),     # y rows
            pl.BlockSpec((Bb * Ls, D), lambda b: (b, 0)),     # encoder output rows
            pl.BlockSpec((Bb, 1, Lt), lambda b: (b, 0, 0)),   # tgt keep (row)
            pl.BlockSpec((Bb, Lt, 1), lambda b: (b, 0, 0)),   # tgt keep (col)
            pl.BlockSpec((Bb, 1, Ls), lambda b: (b, 0, 0)),   # src keep (row)
            pl.BlockSpec((D, 3 * D), const2),                 # self-attn wqkv
            pl.BlockSpec((D, D), const2),                     # self-attn wo
            pl.BlockSpec((D, D), const2),                     # cross wq
            pl.BlockSpec((D, 2 * D), const2),                 # cross wkv (fused)
            pl.BlockSpec((D, D), const2),                     # cross wo
            pl.BlockSpec((D, Hf), const2),                    # w1
            pl.BlockSpec((Hf, D), const2),                    # w2
            pl.BlockSpec((R, W), const2),                     # packed biases / LN params
        ],
        out_specs=pl.BlockSpec((Bb * Lt, D), lambda b: (b, 0)),
        scratch_shapes=[pltpu.VMEM((Bb, Lt, D), jnp.float32)],
        compiler_params=pltpu.CompilerParams(dimension_semantics=("parallel",)),
    )(y2, enc2, tgt_keep_row, tgt_keep_col, src_keep_row,
      p["sa_wqkv"], p["sa_wo"],
      p["ca_wq"], p["ca_wkv"], p["ca_wo"],
      p["w1"], p["w2"], p["vec"])
    return out.reshape(B, Lt, D)


# ----------------------------------------------------------------------------
# Final vocab projection: M/N-tiled matmul kernel
# ----------------------------------------------------------------------------

def _linear_kernel(x_ref, w_ref, b_ref, o_ref):
    o_ref[...] = (jnp.dot(x_ref[...], w_ref[...], preferred_element_type=jnp.float32)
                  + b_ref[...])


def pallas_linear(x, w, b, tile_m=256, tile_n=512):
    # TODO(synk): add K tiling with an f32 VMEM accumulator for large d_model.
    M, K = x.shape
    N = w.shape[1]
    tm = min(tile_m, M)
    tn = min(tile_n, N)
    return pl.pallas_call(
        _linear_kernel,
        out_shape=jax.ShapeDtypeStruct((M, N), jnp.float32),
        grid=(pl.cdiv(M, tm), pl.cdiv(N, tn)),
        in_specs=[
            pl.BlockSpec((tm, K), lambda i, j: (i, 0)),
            pl.BlockSpec((K, tn), lambda i, j: (0, j)),
            pl.BlockSpec((1, tn), lambda i, j: (0, j)),
        ],
        out_specs=pl.BlockSpec((tm, tn), lambda i, j: (i, j)),
        compiler_params=pltpu.CompilerParams(
            dimension_semantics=("parallel", "parallel")),
    )(x, w, b)


# ----------------------------------------------------------------------------
# Model glue (plain JAX): embeddings, positional encoding, keep vectors
# ----------------------------------------------------------------------------

def sinusoidal_pe(seq_len, d_model):
    pos = jnp.arange(seq_len, dtype=jnp.float32)[:, None]
    i = jnp.arange(0, d_model, 2, dtype=jnp.float32)
    div = jnp.exp(-math.log(10000.0) * i / d_model)
    ang = pos * div
    pe = jnp.zeros((seq_len, d_model), dtype=jnp.float32)
    pe = pe.at[:, 0::2].set(jnp.sin(ang))
    pe = pe.at[:, 1::2].set(jnp.cos(ang))
    return pe


def _keep_row(ids, pad_token):
    # (B, L) -> (B, 1, L) float 1.0 = attend (not pad)
    return (ids != pad_token).astype(jnp.float32)[:, None, :]


def _keep_col(ids, pad_token):
    # (B, L) -> (B, L, 1)
    return (ids != pad_token).astype(jnp.float32)[:, :, None]


def encode(params, src_ids, num_heads):
    d_model = params["enc_emb"].shape[1]
    B, Ls = src_ids.shape
    src_keep_row = _keep_row(src_ids, params["pad_token"])
    x = jnp.take(params["enc_emb"], src_ids, axis=0) * math.sqrt(d_model)
    x = (x + params["pe"][None, :Ls, :]).astype(jnp.bfloat16)
    for lp in params["encoder_layers"]:
        x = encoder_layer(x, src_keep_row, lp, num_heads)
    return x


def decode(params, tgt_ids, encoder_output, src_ids, num_heads):
    d_model = params["dec_emb"].shape[1]
    B, Lt = tgt_ids.shape
    tgt_keep_row = _keep_row(tgt_ids, params["pad_token"])
    tgt_keep_col = _keep_col(tgt_ids, params["pad_token"])
    src_keep_row = _keep_row(src_ids, params["pad_token"])

    y = jnp.take(params["dec_emb"], tgt_ids, axis=0) * math.sqrt(d_model)
    y = (y + params["pe"][None, :Lt, :]).astype(jnp.bfloat16)
    for lp in params["decoder_layers"]:
        y = decoder_layer(y, encoder_output, tgt_keep_row, tgt_keep_col,
                          src_keep_row, lp, num_heads)

    D = y.shape[-1]
    logits = pallas_linear(y.reshape(B * Lt, D), params["out_w"], params["out_b"])
    return logits.reshape(B, Lt, -1)


def forward(params, src_ids, tgt_ids, num_heads):
    enc_out = encode(params, src_ids, num_heads)
    return decode(params, tgt_ids, enc_out, src_ids, num_heads)


# ----------------------------------------------------------------------------
# Deterministic parameter init (same per-Linear init as the PyTorch module;
# Q/K/V (and cross K/V) concatenated for fused matmuls; weights stored bf16,
# biases / LayerNorm params packed into one f32 (rows, W) array per layer)
# ----------------------------------------------------------------------------

def _init_linear(key, fan_in, fan_out):
    k1, k2 = jax.random.split(key)
    bound = 1.0 / math.sqrt(fan_in)
    w = jax.random.uniform(k1, (fan_in, fan_out), jnp.float32, -bound, bound)
    b = jax.random.uniform(k2, (fan_out,), jnp.float32, -bound, bound)
    return w, b


def _pack_rows(rows, width):
    packed = []
    for r in rows:
        r = jnp.asarray(r, jnp.float32).reshape(-1)
        packed.append(jnp.pad(r, (0, width - r.shape[0])))
    return jnp.stack(packed, axis=0)


def _init_encoder_layer(key, d_model, hidden):
    ks = jax.random.split(key, 6)
    wq, bq = _init_linear(ks[0], d_model, d_model)
    wk, bk = _init_linear(ks[1], d_model, d_model)
    wv, bv = _init_linear(ks[2], d_model, d_model)
    wo, bo = _init_linear(ks[3], d_model, d_model)
    w1, b1 = _init_linear(ks[4], d_model, hidden)
    w2, b2 = _init_linear(ks[5], hidden, d_model)
    ones = jnp.ones((d_model,), jnp.float32)
    zeros = jnp.zeros((d_model,), jnp.float32)
    W = max(3 * d_model, hidden, d_model)
    vec = _pack_rows([jnp.concatenate([bq, bk, bv]), bo,
                      ones, zeros, b1, b2, ones, zeros], W)
    return dict(
        wqkv=jnp.concatenate([wq, wk, wv], axis=1).astype(jnp.bfloat16),
        wo=wo.astype(jnp.bfloat16),
        w1=w1.astype(jnp.bfloat16),
        w2=w2.astype(jnp.bfloat16),
        vec=vec,
    )


def _init_decoder_layer(key, d_model, hidden):
    ks = jax.random.split(key, 10)
    wq, bq = _init_linear(ks[0], d_model, d_model)
    wk, bk = _init_linear(ks[1], d_model, d_model)
    wv, bv = _init_linear(ks[2], d_model, d_model)
    wo, bo = _init_linear(ks[3], d_model, d_model)
    cwq, cbq = _init_linear(ks[4], d_model, d_model)
    cwk, cbk = _init_linear(ks[5], d_model, d_model)
    cwv, cbv = _init_linear(ks[6], d_model, d_model)
    cwo, cbo = _init_linear(ks[7], d_model, d_model)
    w1, b1 = _init_linear(ks[8], d_model, hidden)
    w2, b2 = _init_linear(ks[9], hidden, d_model)
    ones = jnp.ones((d_model,), jnp.float32)
    zeros = jnp.zeros((d_model,), jnp.float32)
    W = max(3 * d_model, hidden, d_model)
    vec = _pack_rows([
        jnp.concatenate([bq, bk, bv]),   # 0  self bqkv
        bo,                              # 1  self bo
        ones, zeros,                     # 2,3 ln1
        cbq,                             # 4  cross bq
        jnp.concatenate([cbk, cbv]),     # 5  cross bkv
        cbo,                             # 6  cross bo
        ones, zeros,                     # 7,8 ln2
        b1,                              # 9
        b2,                              # 10
        ones, zeros,                     # 11,12 ln3
    ], W)
    return dict(
        sa_wqkv=jnp.concatenate([wq, wk, wv], axis=1).astype(jnp.bfloat16),
        sa_wo=wo.astype(jnp.bfloat16),
        ca_wq=cwq.astype(jnp.bfloat16),
        ca_wkv=jnp.concatenate([cwk, cwv], axis=1).astype(jnp.bfloat16),
        ca_wo=cwo.astype(jnp.bfloat16),
        w1=w1.astype(jnp.bfloat16),
        w2=w2.astype(jnp.bfloat16),
        vec=vec,
    )


def init_params(key, vocab_size, sequence_length, d_model, hidden,
                num_encoder_layers, num_decoder_layers, pad_token=0):
    keys = jax.random.split(key, 3 + num_encoder_layers + num_decoder_layers)
    enc_emb = jax.random.normal(keys[0], (vocab_size, d_model), jnp.float32)
    dec_emb = jax.random.normal(keys[1], (vocab_size, d_model), jnp.float32)
    out_w, out_b = _init_linear(keys[2], d_model, vocab_size)
    enc_layers = [_init_encoder_layer(keys[3 + i], d_model, hidden)
                  for i in range(num_encoder_layers)]
    dec_layers = [_init_decoder_layer(keys[3 + num_encoder_layers + i], d_model, hidden)
                  for i in range(num_decoder_layers)]
    return dict(
        pad_token=pad_token,
        enc_emb=enc_emb,
        dec_emb=dec_emb,
        pe=sinusoidal_pe(sequence_length, d_model),
        encoder_layers=enc_layers,
        decoder_layers=dec_layers,
        out_w=out_w.astype(jnp.bfloat16),
        out_b=out_b.reshape(1, -1),
    )


# ----------------------------------------------------------------------------
# Main
# ----------------------------------------------------------------------------

if __name__ == "__main__":
    vocab_size = 32
    sequence_length = 8
    d_model = 32
    num_heads = 4
    hidden = 64
    num_encoder_layers = 2
    num_decoder_layers = 2
    drop_prob = 0.0  # dropout is identity in eval/inference mode
    pad_token = 0
    B = 2

    assert d_model % num_heads == 0

    root = jax.random.PRNGKey(0)
    k_params, k_src, k_tgt = jax.random.split(root, 3)

    params = init_params(k_params, vocab_size, sequence_length, d_model, hidden,
                         num_encoder_layers, num_decoder_layers, pad_token)

    src_ids = jax.random.randint(k_src, (B, sequence_length), 1, vocab_size, dtype=jnp.int32)
    tgt_ids = jax.random.randint(k_tgt, (B, sequence_length), 1, vocab_size, dtype=jnp.int32)
    # add some padding tokens to exercise the in-kernel masks
    src_ids = src_ids.at[:, -2:].set(pad_token)
    tgt_ids = tgt_ids.at[:, -1:].set(pad_token)

    fwd = jax.jit(functools.partial(forward, num_heads=num_heads))
    logits = fwd(params, src_ids, tgt_ids)
    jax.block_until_ready(logits)

    assert logits.shape == (B, sequence_length, vocab_size), logits.shape
    assert bool(jnp.all(jnp.isfinite(logits)))
    print("KERNEL_OK")
</pallas_src>

<mosaic_0001>
module attributes {stable_mosaic.version = 11 : i64} {
  func.func @_linear_kernel(%arg0: i32, %arg1: i32, %arg2: memref<16x32xbf16, #tpu.memory_space<vmem>>, %arg3: memref<32x32xbf16, #tpu.memory_space<vmem>>, %arg4: memref<1x32xf32, #tpu.memory_space<vmem>>, %arg5: memref<16x32xf32, #tpu.memory_space<vmem>>) attributes {dimension_semantics = [#tpu.dimension_semantics<parallel>, #tpu.dimension_semantics<parallel>], iteration_bounds = array<i64: 1, 1>, scalar_prefetch = 0 : i64, scratch_operands = 0 : i64, tpu.core_type = #tpu.core_type<tc>, window_params = [{transform_indices = @transform_0, window_bounds = array<i64: 16, 32>}, {transform_indices = @transform_1, window_bounds = array<i64: 32, 32>}, {transform_indices = @transform_2, window_bounds = array<i64: 1, 32>}, {transform_indices = @transform_3, window_bounds = array<i64: 16, 32>}]} {
    %c0 = arith.constant 0 : index
    %c0_0 = arith.constant 0 : index
    %0 = vector.load %arg2[%c0, %c0_0] : memref<16x32xbf16, #tpu.memory_space<vmem>>, vector<16x32xbf16>
    %c0_1 = arith.constant 0 : index
    %c0_2 = arith.constant 0 : index
    %1 = vector.load %arg3[%c0_1, %c0_2] : memref<32x32xbf16, #tpu.memory_space<vmem>>, vector<32x32xbf16>
    %cst = arith.constant dense<0.000000e+00> : vector<16x32xf32>
    %2 = tpu.matmul %0, %1, %cst {dimension_numbers = #tpu.dot_dimension_numbers<[1], [0], [0], [1], [0, 0, 1, 1], [], []>} : vector<16x32xbf16>, vector<32x32xbf16>, vector<16x32xf32> -> vector<16x32xf32>
    %c0_3 = arith.constant 0 : index
    %c0_4 = arith.constant 0 : index
    %3 = vector.load %arg4[%c0_3, %c0_4] : memref<1x32xf32, #tpu.memory_space<vmem>>, vector<1x32xf32>
    %4 = vector.broadcast %3 : vector<1x32xf32> to vector<16x32xf32>
    %5 = arith.addf %2, %4 : vector<16x32xf32>
    %c0_5 = arith.constant 0 : index
    %c0_6 = arith.constant 0 : index
    %6 = vector.load %arg5[%c0_5, %c0_6] : memref<16x32xf32, #tpu.memory_space<vmem>>, vector<16x32xf32>
    tpu.vector_store %arg5[%c0_5, %c0_6], %5 {strides = array<i32>} : memref<16x32xf32, #tpu.memory_space<vmem>>, vector<16x32xf32>,
    return
  }
  func.func @transform_0(%arg0: i32, %arg1: i32) -> (i32, i32) {
    %c0_i32 = arith.constant 0 : i32
    %c0_i32_0 = arith.constant 0 : i32
    return %arg0, %c0_i32 : i32, i32
  }
  func.func @transform_1(%arg0: i32, %arg1: i32) -> (i32, i32) {
    %c0_i32 = arith.constant 0 : i32
    %c0_i32_0 = arith.constant 0 : i32
    return %c0_i32, %arg1 : i32, i32
  }
  func.func @transform_2(%arg0: i32, %arg1: i32) -> (i32, i32) {
    %c0_i32 = arith.constant 0 : i32
    %c0_i32_0 = arith.constant 0 : i32
    return %c0_i32, %arg1 : i32, i32
  }
  func.func @transform_3(%arg0: i32, %arg1: i32) -> (i32, i32) {
    %c0_i32 = arith.constant 0 : i32
    return %arg0, %arg1 : i32, i32
  }
}

module attributes {stable_mosaic.version = 11 : i64} {
  func.func @_encoder_layer_kernel(%arg0: i32, %arg1: memref<16x32xbf16, #tpu.memory_space<vmem>>, %arg2: memref<2x1x8xf32, #tpu.memory_space<vmem>>, %arg3: memref<32x96xbf16, #tpu.memory_space<vmem>>, %arg4: memref<32x32xbf16, #tpu.memory_space<vmem>>, %arg5: memref<32x64xbf16, #tpu.memory_space<vmem>>, %arg6: memref<64x32xbf16, #tpu.memory_space<vmem>>, %arg7: memref<8x96xf32, #tpu.memory_space<vmem>>, %arg8: memref<16x32xbf16, #tpu.memory_space<vmem>>, %arg9: memref<2x8x32xf32, #tpu.memory_space<vmem>>) attributes {dimension_semantics = [#tpu.dimension_semantics<parallel>], iteration_bounds = array<i64: 1>, scalar_prefetch = 0 : i64, scratch_operands = 1 : i64, tpu.core_type = #tpu.core_type<tc>, window_params = [{transform_indices = @transform_0, window_bounds = array<i64: 16, 32>}, {transform_indices = @transform_1, window_bounds = array<i64: 2, 1, 8>}, {pipeline_mode = #tpu.pipeline_mode<synchronous>, transform_indices = @transform_2, window_bounds = array<i64: 32, 96>}, {pipeline_mode = #tpu.pipeline_mode<synchronous>, transform_indices = @transform_3, window_bounds = array<i64: 32, 32>}, {pipeline_mode = #tpu.pipeline_mode<synchronous>, transform_indices = @transform_4, window_bounds = array<i64: 32, 64>}, {pipeline_mode = #tpu.pipeline_mode<synchronous>, transform_indices = @transform_5, window_bounds = array<i64: 64, 32>}, {pipeline_mode = #tpu.pipeline_mode<synchronous>, transform_indices = @transform_6, window_bounds = array<i64: 8, 96>}, {transform_indices = @transform_7, window_bounds = array<i64: 16, 32>}]} {
    %c0 = arith.constant 0 : index
    %c0_0 = arith.constant 0 : index
    %0 = vector.load %arg1[%c0, %c0_0] : memref<16x32xbf16, #tpu.memory_space<vmem>>, vector<16x32xbf16>
    %c0_1 = arith.constant 0 : index
    %c0_2 = arith.constant 0 : index
    %1 = vector.load %arg7[%c0_1, %c0_2] : memref<8x96xf32, #tpu.memory_space<vmem>>, vector<8x96xf32>
    %2 = vector.extract_strided_slice %1 {offsets = [0, 0], sizes = [1, 96], strides = [1, 1]} : vector<8x96xf32> to vector<1x96xf32>
    %3 = vector.extract_strided_slice %1 {offsets = [1, 0], sizes = [1, 32], strides = [1, 1]} : vector<8x96xf32> to vector<1x32xf32>
    %4 = vector.extract_strided_slice %1 {offsets = [2, 0], sizes = [1, 32], strides = [1, 1]} : vector<8x96xf32> to vector<1x32xf32>
    %5 = vector.extract_strided_slice %1 {offsets = [3, 0], sizes = [1, 32], strides = [1, 1]} : vector<8x96xf32> to vector<1x32xf32>
    %6 = vector.extract_strided_slice %1 {offsets = [4, 0], sizes = [1, 64], strides = [1, 1]} : vector<8x96xf32> to vector<1x64xf32>
    %7 = vector.extract_strided_slice %1 {offsets = [5, 0], sizes = [1, 32], strides = [1, 1]} : vector<8x96xf32> to vector<1x32xf32>
    %8 = vector.extract_strided_slice %1 {offsets = [6, 0], sizes = [1, 32], strides = [1, 1]} : vector<8x96xf32> to vector<1x32xf32>
    %9 = vector.extract_strided_slice %1 {offsets = [7, 0], sizes = [1, 32], strides = [1, 1]} : vector<8x96xf32> to vector<1x32xf32>
    %c0_3 = arith.constant 0 : index
    %c0_4 = arith.constant 0 : index
    %10 = vector.load %arg3[%c0_3, %c0_4] : memref<32x96xbf16, #tpu.memory_space<vmem>>, vector<32x96xbf16>
    %cst = arith.constant dense<0.000000e+00> : vector<16x96xf32>
    %11 = tpu.matmul %0, %10, %cst {dimension_numbers = #tpu.dot_dimension_numbers<[1], [0], [0], [1], [0, 0, 1, 1], [], []>} : vector<16x32xbf16>, vector<32x96xbf16>, vector<16x96xf32> -> vector<16x96xf32>
    %12 = vector.broadcast %2 : vector<1x96xf32> to vector<16x96xf32>
    %13 = arith.addf %11, %12 : vector<16x96xf32>
    %14 = vector.extract_strided_slice %13 {offsets = [0, 0], sizes = [16, 32], strides = [1, 1]} : vector<16x96xf32> to vector<16x32xf32>
    %15 = vector.shape_cast %14 : vector<16x32xf32> to vector<2x8x32xf32>
    %16 = vector.extract_strided_slice %13 {offsets = [0, 32], sizes = [16, 32], strides = [1, 1]} : vector<16x96xf32> to vector<16x32xf32>
    %17 = vector.shape_cast %16 : vector<16x32xf32> to vector<2x8x32xf32>
    %18 = vector.extract_strided_slice %13 {offsets = [0, 64], sizes = [16, 32], strides = [1, 1]} : vector<16x96xf32> to vector<16x32xf32>
    %19 = vector.shape_cast %18 : vector<16x32xf32> to vector<2x8x32xf32>
    %c0_5 = arith.constant 0 : index
    %c0_6 = arith.constant 0 : index
    %c0_7 = arith.constant 0 : index
    %20 = vector.load %arg2[%c0_5, %c0_6, %c0_7] : memref<2x1x8xf32, #tpu.memory_space<vmem>>, vector<2x1x8xf32>
    %cst_8 = arith.constant 5.000000e-01 : f32
    %21 = vector.broadcast %cst_8 : f32 to vector<2x1x8xf32>
    %22 = arith.cmpf ogt, %20, %21 : vector<2x1x8xf32>
    %cst_9 = arith.constant 0.000000e+00 : f32
    %cst_10 = arith.constant -1.000000e+09 : f32
    %23 = vector.broadcast %cst_9 : f32 to vector<2x1x8xf32>
    %24 = vector.broadcast %cst_10 : f32 to vector<2x1x8xf32>
    %25 = arith.select %22, %23, %24 : vector<2x1x8xi1>, vector<2x1x8xf32>
    %cst_11 = arith.constant 0.353553385 : f32
    %26 = vector.broadcast %cst_11 : f32 to vector<2x8x32xf32>
    %27 = arith.mulf %15, %26 : vector<2x8x32xf32>
    %28 = arith.truncf %27 : vector<2x8x32xf32> to vector<2x8x32xbf16>
    %29 = arith.truncf %17 : vector<2x8x32xf32> to vector<2x8x32xbf16>
    %30 = arith.truncf %19 : vector<2x8x32xf32> to vector<2x8x32xbf16>
    %31 = vector.extract_strided_slice %28 {offsets = [0, 0, 0], sizes = [2, 8, 8], strides = [1, 1, 1]} : vector<2x8x32xbf16> to vector<2x8x8xbf16>
    %32 = vector.extract_strided_slice %29 {offsets = [0, 0, 0], sizes = [2, 8, 8], strides = [1, 1, 1]} : vector<2x8x32xbf16> to vector<2x8x8xbf16>
    %33 = vector.extract_strided_slice %30 {offsets = [0, 0, 0], sizes = [2, 8, 8], strides = [1, 1, 1]} : vector<2x8x32xbf16> to vector<2x8x8xbf16>
    "tpu.trace_start"() <{level = 10 : i32, message = "bqd,bkd->bqk"}> : () -> ()
    %cst_12 = arith.constant dense<0.000000e+00> : vector<2x8x8xf32>
    %34 = tpu.matmul %31, %32, %cst_12 {dimension_numbers = #tpu.dot_dimension_numbers<[2], [2], [1], [1], [0, 0, 0, 1, 1, 1], [0], [0]>} : vector<2x8x8xbf16>, vector<2x8x8xbf16>, vector<2x8x8xf32> -> vector<2x8x8xf32>
    "tpu.trace_stop"() : () -> ()
    %35 = vector.broadcast %25 : vector<2x1x8xf32> to vector<2x8x8xf32>
    %36 = arith.addf %34, %35 : vector<2x8x8xf32>
    %cst_13 = arith.constant dense<0xFF800000> : vector<2x8xf32>
    %37 = vector.multi_reduction <maximumf>, %36, %cst_13 [2] : vector<2x8x8xf32> to vector<2x8xf32>
    %38 = vector.shape_cast %37 : vector<2x8xf32> to vector<2x8x1xf32>
    %39 = vector.broadcast %38 : vector<2x8x1xf32> to vector<2x8x8xf32>
    %40 = arith.subf %36, %39 : vector<2x8x8xf32>
    %41 = math.exp %40 : vector<2x8x8xf32>
    %cst_14 = arith.constant dense<0.000000e+00> : vector<2x8xf32>
    %42 = vector.multi_reduction <add>, %41, %cst_14 [2] : vector<2x8x8xf32> to vector<2x8xf32>
    %43 = vector.shape_cast %42 : vector<2x8xf32> to vector<2x8x1xf32>
    %44 = vector.broadcast %43 : vector<2x8x1xf32> to vector<2x8x8xf32>
    %45 = arith.divf %41, %44 : vector<2x8x8xf32>
    %46 = arith.truncf %45 : vector<2x8x8xf32> to vector<2x8x8xbf16>
    "tpu.trace_start"() <{level = 10 : i32, message = "bqk,bkd->bqd"}> : () -> ()
    %cst_15 = arith.constant dense<0.000000e+00> : vector<2x8x8xf32>
    %47 = tpu.matmul %46, %33, %cst_15 {dimension_numbers = #tpu.dot_dimension_numbers<[2], [1], [1], [2], [0, 0, 0, 1, 1, 2], [0], [0]>} : vector<2x8x8xbf16>, vector<2x8x8xbf16>, vector<2x8x8xf32> -> vector<2x8x8xf32>
    "tpu.trace_stop"() : () -> ()
    %c0_16 = arith.constant 0 : index
    %c0_17 = arith.constant 0 : index
    %c0_18 = arith.constant 0 : index
    %48 = vector.load %arg9[%c0_16, %c0_17, %c0_18] : memref<2x8x32xf32, #tpu.memory_space<vmem>>, vector<2x8x8xf32>
    tpu.vector_store %arg9[%c0_16, %c0_17, %c0_18], %47 {strides = array<i32>} : memref<2x8x32xf32, #tpu.memory_space<vmem>>, vector<2x8x8xf32>,
    %49 = vector.extract_strided_slice %28 {offsets = [0, 0, 8], sizes = [2, 8, 8], strides = [1, 1, 1]} : vector<2x8x32xbf16> to vector<2x8x8xbf16>
    %50 = vector.extract_strided_slice %29 {offsets = [0, 0, 8], sizes = [2, 8, 8], strides = [1, 1, 1]} : vector<2x8x32xbf16> to vector<2x8x8xbf16>
    %51 = vector.extract_strided_slice %30 {offsets = [0, 0, 8], sizes = [2, 8, 8], strides = [1, 1, 1]} : vector<2x8x32xbf16> to vector<2x8x8xbf16>
    "tpu.trace_start"() <{level = 10 : i32, message = "bqd,bkd->bqk"}> : () -> ()
    %cst_19 = arith.constant dense<0.000000e+00> : vector<2x8x8xf32>
    %52 = tpu.matmul %49, %50, %cst_19 {dimension_numbers = #tpu.dot_dimension_numbers<[2], [2], [1], [1], [0, 0, 0, 1, 1, 1], [0], [0]>} : vector<2x8x8xbf16>, vector<2x8x8xbf16>, vector<2x8x8xf32> -> vector<2x8x8xf32>
    "tpu.trace_stop"() : () -> ()
    %53 = vector.broadcast %25 : vector<2x1x8xf32> to vector<2x8x8xf32>
    %54 = arith.addf %52, %53 : vector<2x8x8xf32>
    %cst_20 = arith.constant dense<0xFF800000> : vector<2x8xf32>
    %55 = vector.multi_reduction <maximumf>, %54, %cst_20 [2] : vector<2x8x8xf32> to vector<2x8xf32>
    %56 = vector.shape_cast %55 : vector<2x8xf32> to vector<2x8x1xf32>
    %57 = vector.broadcast %56 : vector<2x8x1xf32> to vector<2x8x8xf32>
    %58 = arith.subf %54, %57 : vector<2x8x8xf32>
    %59 = math.exp %58 : vector<2x8x8xf32>
    %cst_21 = arith.constant dense<0.000000e+00> : vector<2x8xf32>
    %60 = vector.multi_reduction <add>, %59, %cst_21 [2] : vector<2x8x8xf32> to vector<2x8xf32>
    %61 = vector.shape_cast %60 : vector<2x8xf32> to vector<2x8x1xf32>
    %62 = vector.broadcast %61 : vector<2x8x1xf32> to vector<2x8x8xf32>
    %63 = arith.divf %59, %62 : vector<2x8x8xf32>
    %64 = arith.truncf %63 : vector<2x8x8xf32> to vector<2x8x8xbf16>
    "tpu.trace_start"() <{level = 10 : i32, message = "bqk,bkd->bqd"}> : () -> ()
    %cst_22 = arith.constant dense<0.000000e+00> : vector<2x8x8xf32>
    %65 = tpu.matmul %64, %51, %cst_22 {dimension_numbers = #tpu.dot_dimension_numbers<[2], [1], [1], [2], [0, 0, 0, 1, 1, 2], [0], [0]>} : vector<2x8x8xbf16>, vector<2x8x8xbf16>, vector<2x8x8xf32> -> vector<2x8x8xf32>
    "tpu.trace_stop"() : () -> ()
    %c0_23 = arith.constant 0 : index
    %c0_24 = arith.constant 0 : index
    %c8 = arith.constant 8 : index
    %66 = vector.load %arg9[%c0_23, %c0_24, %c8] : memref<2x8x32xf32, #tpu.memory_space<vmem>>, vector<2x8x8xf32>
    tpu.vector_store %arg9[%c0_23, %c0_24, %c8], %65 {strides = array<i32>} : memref<2x8x32xf32, #tpu.memory_space<vmem>>, vector<2x8x8xf32>,
    %67 = vector.extract_strided_slice %28 {offsets = [0, 0, 16], sizes = [2, 8, 8], strides = [1, 1, 1]} : vector<2x8x32xbf16> to vector<2x8x8xbf16>
    %68 = vector.extract_strided_slice %29 {offsets = [0, 0, 16], sizes = [2, 8, 8], strides = [1, 1, 1]} : vector<2x8x32xbf16> to vector<2x8x8xbf16>
    %69 = vector.extract_strided_slice %30 {offsets = [0, 0, 16], sizes = [2, 8, 8], strides = [1, 1, 1]} : vector<2x8x32xbf16> to vector<2x8x8xbf16>
    "tpu.trace_start"() <{level = 10 : i32, message = "bqd,bkd->bqk"}> : () -> ()
    %cst_25 = arith.constant dense<0.000000e+00> : vector<2x8x8xf32>
    %70 = tpu.matmul %67, %68, %cst_25 {dimension_numbers = #tpu.dot_dimension_numbers<[2], [2], [1], [1], [0, 0, 0, 1, 1, 1], [0], [0]>} : vector<2x8x8xbf16>, vector<2x8x8xbf16>, vector<2x8x8xf32> -> vector<2x8x8xf32>
    "tpu.trace_stop"() : () -> ()
    %71 = vector.broadcast %25 : vector<2x1x8xf32> to vector<2x8x8xf32>
    %72 = arith.addf %70, %71 : vector<2x8x8xf32>
    %cst_26 = arith.constant dense<0xFF800000> : vector<2x8xf32>
    %73 = vector.multi_reduction <maximumf>, %72, %cst_26 [2] : vector<2x8x8xf32> to vector<2x8xf32>
    %74 = vector.shape_cast %73 : vector<2x8xf32> to vector<2x8x1xf32>
    %75 = vector.broadcast %74 : vector<2x8x1xf32> to vector<2x8x8xf32>
    %76 = arith.subf %72, %75 : vector<2x8x8xf32>
    %77 = math.exp %76 : vector<2x8x8xf32>
    %cst_27 = arith.constant dense<0.000000e+00> : vector<2x8xf32>
    %78 = vector.multi_reduction <add>, %77, %cst_27 [2] : vector<2x8x8xf32> to vector<2x8xf32>
    %79 = vector.shape_cast %78 : vector<2x8xf32> to vector<2x8x1xf32>
    %80 = vector.broadcast %79 : vector<2x8x1xf32> to vector<2x8x8xf32>
    %81 = arith.divf %77, %80 : vector<2x8x8xf32>
    %82 = arith.truncf %81 : vector<2x8x8xf32> to vector<2x8x8xbf16>
    "tpu.trace_start"() <{level = 10 : i32, message = "bqk,bkd->bqd"}> : () -> ()
    %cst_28 = arith.constant dense<0.000000e+00> : vector<2x8x8xf32>
    %83 = tpu.matmul %82, %69, %cst_28 {dimension_numbers = #tpu.dot_dimension_numbers<[2], [1], [1], [2], [0, 0, 0, 1, 1, 2], [0], [0]>} : vector<2x8x8xbf16>, vector<2x8x8xbf16>, vector<2x8x8xf32> -> vector<2x8x8xf32>
    "tpu.trace_stop"() : () -> ()
    %c0_29 = arith.constant 0 : index
    %c0_30 = arith.constant 0 : index
    %c16 = arith.constant 16 : index
    %84 = vector.load %arg9[%c0_29, %c0_30, %c16] : memref<2x8x32xf32, #tpu.memory_space<vmem>>, vector<2x8x8xf32>
    tpu.vector_store %arg9[%c0_29, %c0_30, %c16], %83 {strides = array<i32>} : memref<2x8x32xf32, #tpu.memory_space<vmem>>, vector<2x8x8xf32>,
    %85 = vector.extract_strided_slice %28 {offsets = [0, 0, 24], sizes = [2, 8, 8], strides = [1, 1, 1]} : vector<2x8x32xbf16> to vector<2x8x8xbf16>
    %86 = vector.extract_strided_slice %29 {offsets = [0, 0, 24], sizes = [2, 8, 8], strides = [1, 1, 1]} : vector<2x8x32xbf16> to vector<2x8x8xbf16>
    %87 = vector.extract_strided_slice %30 {offsets = [0, 0, 24], sizes = [2, 8, 8], strides = [1, 1, 1]} : vector<2x8x32xbf16> to vector<2x8x8xbf16>
    "tpu.trace_start"() <{level = 10 : i32, message = "bqd,bkd->bqk"}> : () -> ()
    %cst_31 = arith.constant dense<0.000000e+00> : vector<2x8x8xf32>
    %88 = tpu.matmul %85, %86, %cst_31 {dimension_numbers = #tpu.dot_dimension_numbers<[2], [2], [1], [1], [0, 0, 0, 1, 1, 1], [0], [0]>} : vector<2x8x8xbf16>, vector<2x8x8xbf16>, vector<2x8x8xf32> -> vector<2x8x8xf32>
    "tpu.trace_stop"() : () -> ()
    %89 = vector.broadcast %25 : vector<2x1x8xf32> to vector<2x8x8xf32>
    %90 = arith.addf %88, %89 : vector<2x8x8xf32>
    %cst_32 = arith.constant dense<0xFF800000> : vector<2x8xf32>
    %91 = vector.multi_reduction <maximumf>, %90, %cst_32 [2] : vector<2x8x8xf32> to vector<2x8xf32>
    %92 = vector.shape_cast %91 : vector<2x8xf32> to vector<2x8x1xf32>
    %93 = vector.broadcast %92 : vector<2x8x1xf32> to vector<2x8x8xf32>
    %94 = arith.subf %90, %93 : vector<2x8x8xf32>
    %95 = math.exp %94 : vector<2x8x8xf32>
    %cst_33 = arith.constant dense<0.000000e+00> : vector<2x8xf32>
    %96 = vector.multi_reduction <add>, %95, %cst_33 [2] : vector<2x8x8xf32> to vector<2x8xf32>
    %97 = vector.shape_cast %96 : vector<2x8xf32> to vector<2x8x1xf32>
    %98 = vector.broadcast %97 : vector<2x8x1xf32> to vector<2x8x8xf32>
    %99 = arith.divf %95, %98 : vector<2x8x8xf32>
    %100 = arith.truncf %99 : vector<2x8x8xf32> to vector<2x8x8xbf16>
    "tpu.trace_start"() <{level = 10 : i32, message = "bqk,bkd->bqd"}> : () -> ()
    %cst_34 = arith.constant dense<0.000000e+00> : vector<2x8x8xf32>
    %101 = tpu.matmul %100, %87, %cst_34 {dimension_numbers = #tpu.dot_dimension_numbers<[2], [1], [1], [2], [0, 0, 0, 1, 1, 2], [0], [0]>} : vector<2x8x8xbf16>, vector<2x8x8xbf16>, vector<2x8x8xf32> -> vector<2x8x8xf32>
    "tpu.trace_stop"() : () -> ()
    %c0_35 = arith.constant 0 : index
    %c0_36 = arith.constant 0 : index
    %c24 = arith.constant 24 : index
    %102 = vector.load %arg9[%c0_35, %c0_36, %c24] : memref<2x8x32xf32, #tpu.memory_space<vmem>>, vector<2x8x8xf32>
    tpu.vector_store %arg9[%c0_35, %c0_36, %c24], %101 {strides = array<i32>} : memref<2x8x32xf32, #tpu.memory_space<vmem>>, vector<2x8x8xf32>,
    %c0_37 = arith.constant 0 : index
    %c0_38 = arith.constant 0 : index
    %c0_39 = arith.constant 0 : index
    %103 = vector.load %arg9[%c0_37, %c0_38, %c0_39] : memref<2x8x32xf32, #tpu.memory_space<vmem>>, vector<2x8x32xf32>
    %104 = vector.shape_cast %103 : vector<2x8x32xf32> to vector<16x32xf32>
    %105 = arith.truncf %104 : vector<16x32xf32> to vector<16x32xbf16>
    %c0_40 = arith.constant 0 : index
    %c0_41 = arith.constant 0 : index
    %106 = vector.load %arg4[%c0_40, %c0_41] : memref<32x32xbf16, #tpu.memory_space<vmem>>, vector<32x32xbf16>
    %cst_42 = arith.constant dense<0.000000e+00> : vector<16x32xf32>
    %107 = tpu.matmul %105, %106, %cst_42 {dimension_numbers = #tpu.dot_dimension_numbers<[1], [0], [0], [1], [0, 0, 1, 1], [], []>} : vector<16x32xbf16>, vector<32x32xbf16>, vector<16x32xf32> -> vector<16x32xf32>
    %108 = vector.broadcast %3 : vector<1x32xf32> to vector<16x32xf32>
    %109 = arith.addf %107, %108 : vector<16x32xf32>
    %110 = arith.extf %0 : vector<16x32xbf16> to vector<16x32xf32>
    %111 = arith.addf %110, %109 : vector<16x32xf32>
    %cst_43 = arith.constant dense<0.000000e+00> : vector<16xf32>
    %112 = vector.multi_reduction <add>, %111, %cst_43 [1] : vector<16x32xf32> to vector<16xf32>
    %113 = vector.shape_cast %112 : vector<16xf32> to vector<16x1xf32>
    %cst_44 = arith.constant 3.200000e+01 : f32
    %114 = vector.broadcast %cst_44 : f32 to vector<16x1xf32>
    %115 = arith.divf %113, %114 : vector<16x1xf32>
    %116 = vector.broadcast %115 : vector<16x1xf32> to vector<16x32xf32>
    %117 = arith.subf %111, %116 : vector<16x32xf32>
    %118 = arith.mulf %117, %117 : vector<16x32xf32>
    %cst_45 = arith.constant dense<0.000000e+00> : vector<16xf32>
    %119 = vector.multi_reduction <add>, %118, %cst_45 [1] : vector<16x32xf32> to vector<16xf32>
    %120 = vector.shape_cast %119 : vector<16xf32> to vector<16x1xf32>
    %cst_46 = arith.constant 3.200000e+01 : f32
    %121 = vector.broadcast %cst_46 : f32 to vector<16x1xf32>
    %122 = arith.divf %120, %121 : vector<16x1xf32>
    %cst_47 = arith.constant 9.99999974E-6 : f32
    %123 = vector.broadcast %cst_47 : f32 to vector<16x1xf32>
    %124 = arith.addf %122, %123 : vector<16x1xf32>
    %125 = math.rsqrt %124 : vector<16x1xf32>
    %126 = vector.broadcast %125 : vector<16x1xf32> to vector<16x32xf32>
    %127 = arith.mulf %117, %126 : vector<16x32xf32>
    %128 = vector.broadcast %4 : vector<1x32xf32> to vector<16x32xf32>
    %129 = arith.mulf %127, %128 : vector<16x32xf32>
    %130 = vector.broadcast %5 : vector<1x32xf32> to vector<16x32xf32>
    %131 = arith.addf %129, %130 : vector<16x32xf32>
    %132 = arith.truncf %131 : vector<16x32xf32> to vector<16x32xbf16>
    %c0_48 = arith.constant 0 : index
    %c0_49 = arith.constant 0 : index
    %133 = vector.load %arg5[%c0_48, %c0_49] : memref<32x64xbf16, #tpu.memory_space<vmem>>, vector<32x64xbf16>
    %cst_50 = arith.constant dense<0.000000e+00> : vector<16x64xf32>
    %134 = tpu.matmul %132, %133, %cst_50 {dimension_numbers = #tpu.dot_dimension_numbers<[1], [0], [0], [1], [0, 0, 1, 1], [], []>} : vector<16x32xbf16>, vector<32x64xbf16>, vector<16x64xf32> -> vector<16x64xf32>
    %135 = vector.broadcast %6 : vector<1x64xf32> to vector<16x64xf32>
    %136 = arith.addf %134, %135 : vector<16x64xf32>
    %cst_51 = arith.constant 0.000000e+00 : f32
    %137 = vector.broadcast %cst_51 : f32 to vector<16x64xf32>
    %138 = arith.maximumf %136, %137 : vector<16x64xf32>
    %139 = arith.truncf %138 : vector<16x64xf32> to vector<16x64xbf16>
    %c0_52 = arith.constant 0 : index
    %c0_53 = arith.constant 0 : index
    %140 = vector.load %arg6[%c0_52, %c0_53] : memref<64x32xbf16, #tpu.memory_space<vmem>>, vector<64x32xbf16>
    %cst_54 = arith.constant dense<0.000000e+00> : vector<16x32xf32>
    %141 = tpu.matmul %139, %140, %cst_54 {dimension_numbers = #tpu.dot_dimension_numbers<[1], [0], [0], [1], [0, 0, 1, 1], [], []>} : vector<16x64xbf16>, vector<64x32xbf16>, vector<16x32xf32> -> vector<16x32xf32>
    %142 = vector.broadcast %7 : vector<1x32xf32> to vector<16x32xf32>
    %143 = arith.addf %141, %142 : vector<16x32xf32>
    %144 = arith.addf %131, %143 : vector<16x32xf32>
    %cst_55 = arith.constant dense<0.000000e+00> : vector<16xf32>
    %145 = vector.multi_reduction <add>, %144, %cst_55 [1] : vector<16x32xf32> to vector<16xf32>
    %146 = vector.shape_cast %145 : vector<16xf32> to vector<16x1xf32>
    %cst_56 = arith.constant 3.200000e+01 : f32
    %147 = vector.broadcast %cst_56 : f32 to vector<16x1xf32>
    %148 = arith.divf %146, %147 : vector<16x1xf32>
    %149 = vector.broadcast %148 : vector<16x1xf32> to vector<16x32xf32>
    %150 = arith.subf %144, %149 : vector<16x32xf32>
    %151 = arith.mulf %150, %150 : vector<16x32xf32>
    %cst_57 = arith.constant dense<0.000000e+00> : vector<16xf32>
    %152 = vector.multi_reduction <add>, %151, %cst_57 [1] : vector<16x32xf32> to vector<16xf32>
    %153 = vector.shape_cast %152 : vector<16xf32> to vector<16x1xf32>
    %cst_58 = arith.constant 3.200000e+01 : f32
    %154 = vector.broadcast %cst_58 : f32 to vector<16x1xf32>
    %155 = arith.divf %153, %154 : vector<16x1xf32>
    %cst_59 = arith.constant 9.99999974E-6 : f32
    %156 = vector.broadcast %cst_59 : f32 to vector<16x1xf32>
    %157 = arith.addf %155, %156 : vector<16x1xf32>
    %158 = math.rsqrt %157 : vector<16x1xf32>
    %159 = vector.broadcast %158 : vector<16x1xf32> to vector<16x32xf32>
    %160 = arith.mulf %150, %159 : vector<16x32xf32>
    %161 = vector.broadcast %8 : vector<1x32xf32> to vector<16x32xf32>
    %162 = arith.mulf %160, %161 : vector<16x32xf32>
    %163 = vector.broadcast %9 : vector<1x32xf32> to vector<16x32xf32>
    %164 = arith.addf %162, %163 : vector<16x32xf32>
    %165 = arith.truncf %164 : vector<16x32xf32> to vector<16x32xbf16>
    %c0_60 = arith.constant 0 : index
    %c0_61 = arith.constant 0 : index
    %166 = vector.load %arg8[%c0_60, %c0_61] : memref<16x32xbf16, #tpu.memory_space<vmem>>, vector<16x32xbf16>
    tpu.vector_store %arg8[%c0_60, %c0_61], %165 {strides = array<i32>} : memref<16x32xbf16, #tpu.memory_space<vmem>>, vector<16x32xbf16>,
    return
  }
  func.func @transform_0(%arg0: i32) -> (i32, i32) {
    %c0_i32 = arith.constant 0 : i32
    %c0_i32_0 = arith.constant 0 : i32
    return %arg0, %c0_i32 : i32, i32
  }
  func.func @transform_1(%arg0: i32) -> (i32, i32, i32) {
    %c0_i32 = arith.constant 0 : i32
    %c0_i32_0 = arith.constant 0 : i32
    %c0_i32_1 = arith.constant 0 : i32
    return %arg0, %c0_i32, %c0_i32_0 : i32, i32, i32
  }
  func.func @transform_2(%arg0: i32) -> (i32, i32) {
    %c0_i32 = arith.constant 0 : i32
    %c0_i32_0 = arith.constant 0 : i32
    %c0_i32_1 = arith.constant 0 : i32
    return %c0_i32, %c0_i32_0 : i32, i32
  }
  func.func @transform_3(%arg0: i32) -> (i32, i32) {
    %c0_i32 = arith.constant 0 : i32
    %c0_i32_0 = arith.constant 0 : i32
    %c0_i32_1 = arith.constant 0 : i32
    return %c0_i32, %c0_i32_0 : i32, i32
  }
  func.func @transform_4(%arg0: i32) -> (i32, i32) {
    %c0_i32 = arith.constant 0 : i32
    %c0_i32_0 = arith.constant 0 : i32
    %c0_i32_1 = arith.constant 0 : i32
    return %c0_i32, %c0_i32_0 : i32, i32
  }
  func.func @transform_5(%arg0: i32) -> (i32, i32) {
    %c0_i32 = arith.constant 0 : i32
    %c0_i32_0 = arith.constant 0 : i32
    %c0_i32_1 = arith.constant 0 : i32
    return %c0_i32, %c0_i32_0 : i32, i32
  }
  func.func @transform_6(%arg0: i32) -> (i32, i32) {
    %c0_i32 = arith.constant 0 : i32
    %c0_i32_0 = arith.constant 0 : i32
    %c0_i32_1 = arith.constant 0 : i32
    return %c0_i32, %c0_i32_0 : i32, i32
  }
  func.func @transform_7(%arg0: i32) -> (i32, i32) {
    %c0_i32 = arith.constant 0 : i32
    %c0_i32_0 = arith.constant 0 : i32
    return %arg0, %c0_i32 : i32, i32
  }
}

module attributes {stable_mosaic.version = 11 : i64} {
  func.func @_decoder_layer_kernel(%arg0: i32, %arg1: memref<16x32xbf16, #tpu.memory_space<vmem>>, %arg2: memref<16x32xbf16, #tpu.memory_space<vmem>>, %arg3: memref<2x1x8xf32, #tpu.memory_space<vmem>>, %arg4: memref<2x8x1xf32, #tpu.memory_space<vmem>>, %arg5: memref<2x1x8xf32, #tpu.memory_space<vmem>>, %arg6: memref<32x96xbf16, #tpu.memory_space<vmem>>, %arg7: memref<32x32xbf16, #tpu.memory_space<vmem>>, %arg8: memref<32x32xbf16, #tpu.memory_space<vmem>>, %arg9: memref<32x64xbf16, #tpu.memory_space<vmem>>, %arg10: memref<32x32xbf16, #tpu.memory_space<vmem>>, %arg11: memref<32x64xbf16, #tpu.memory_space<vmem>>, %arg12: memref<64x32xbf16, #tpu.memory_space<vmem>>, %arg13: memref<13x96xf32, #tpu.memory_space<vmem>>, %arg14: memref<16x32xbf16, #tpu.memory_space<vmem>>, %arg15: memref<2x8x32xf32, #tpu.memory_space<vmem>>) attributes {dimension_semantics = [#tpu.dimension_semantics<parallel>], iteration_bounds = array<i64: 1>, scalar_prefetch = 0 : i64, scratch_operands = 1 : i64, tpu.core_type = #tpu.core_type<tc>, window_params = [{transform_indices = @transform_0, window_bounds = array<i64: 16, 32>}, {transform_indices = @transform_1, window_bounds = array<i64: 16, 32>}, {transform_indices = @transform_2, window_bounds = array<i64: 2, 1, 8>}, {transform_indices = @transform_3, window_bounds = array<i64: 2, 8, 1>}, {transform_indices = @transform_4, window_bounds = array<i64: 2, 1, 8>}, {pipeline_mode = #tpu.pipeline_mode<synchronous>, transform_indices = @transform_5, window_bounds = array<i64: 32, 96>}, {pipeline_mode = #tpu.pipeline_mode<synchronous>, transform_indices = @transform_6, window_bounds = array<i64: 32, 32>}, {pipeline_mode = #tpu.pipeline_mode<synchronous>, transform_indices = @transform_7, window_bounds = array<i64: 32, 32>}, {pipeline_mode = #tpu.pipeline_mode<synchronous>, transform_indices = @transform_8, window_bounds = array<i64: 32, 64>}, {pipeline_mode = #tpu.pipeline_mode<synchronous>, transform_indices = @transform_9, window_bounds = array<i64: 32, 32>}, {pipeline_mode = #tpu.pipeline_mode<synchronous>, transform_indices = @transform_10, window_bounds = array<i64: 32, 64>}, {pipeline_mode = #tpu.pipeline_mode<synchronous>, transform_indices = @transform_11, window_bounds = array<i64: 64, 32>}, {pipeline_mode = #tpu.pipeline_mode<synchronous>, transform_indices = @transform_12, window_bounds = array<i64: 13, 96>}, {transform_indices = @transform_13, window_bounds = array<i64: 16, 32>}]} {
    %c0 = arith.constant 0 : index
    %c0_0 = arith.constant 0 : index
    %0 = vector.load %arg1[%c0, %c0_0] : memref<16x32xbf16, #tpu.memory_space<vmem>>, vector<16x32xbf16>
    %c0_1 = arith.constant 0 : index
    %c0_2 = arith.constant 0 : index
    %1 = vector.load %arg2[%c0_1, %c0_2] : memref<16x32xbf16, #tpu.memory_space<vmem>>, vector<16x32xbf16>
    %c0_3 = arith.constant 0 : index
    %c0_4 = arith.constant 0 : index
    %2 = vector.load %arg13[%c0_3, %c0_4] : memref<13x96xf32, #tpu.memory_space<vmem>>, vector<13x96xf32>
    %3 = vector.extract_strided_slice %2 {offsets = [0, 0], sizes = [1, 96], strides = [1, 1]} : vector<13x96xf32> to vector<1x96xf32>
    %4 = vector.extract_strided_slice %2 {offsets = [1, 0], sizes = [1, 32], strides = [1, 1]} : vector<13x96xf32> to vector<1x32xf32>
    %5 = vector.extract_strided_slice %2 {offsets = [2, 0], sizes = [1, 32], strides = [1, 1]} : vector<13x96xf32> to vector<1x32xf32>
    %6 = vector.extract_strided_slice %2 {offsets = [3, 0], sizes = [1, 32], strides = [1, 1]} : vector<13x96xf32> to vector<1x32xf32>
    %7 = vector.extract_strided_slice %2 {offsets = [4, 0], sizes = [1, 32], strides = [1, 1]} : vector<13x96xf32> to vector<1x32xf32>
    %8 = vector.extract_strided_slice %2 {offsets = [5, 0], sizes = [1, 64], strides = [1, 1]} : vector<13x96xf32> to vector<1x64xf32>
    %9 = vector.extract_strided_slice %2 {offsets = [6, 0], sizes = [1, 32], strides = [1, 1]} : vector<13x96xf32> to vector<1x32xf32>
    %10 = vector.extract_strided_slice %2 {offsets = [7, 0], sizes = [1, 32], strides = [1, 1]} : vector<13x96xf32> to vector<1x32xf32>
    %11 = vector.extract_strided_slice %2 {offsets = [8, 0], sizes = [1, 32], strides = [1, 1]} : vector<13x96xf32> to vector<1x32xf32>
    %12 = vector.extract_strided_slice %2 {offsets = [9, 0], sizes = [1, 64], strides = [1, 1]} : vector<13x96xf32> to vector<1x64xf32>
    %13 = vector.extract_strided_slice %2 {offsets = [10, 0], sizes = [1, 32], strides = [1, 1]} : vector<13x96xf32> to vector<1x32xf32>
    %14 = vector.extract_strided_slice %2 {offsets = [11, 0], sizes = [1, 32], strides = [1, 1]} : vector<13x96xf32> to vector<1x32xf32>
    %15 = vector.extract_strided_slice %2 {offsets = [12, 0], sizes = [1, 32], strides = [1, 1]} : vector<13x96xf32> to vector<1x32xf32>
    %c0_5 = arith.constant 0 : index
    %c0_6 = arith.constant 0 : index
    %c0_7 = arith.constant 0 : index
    %16 = vector.load %arg3[%c0_5, %c0_6, %c0_7] : memref<2x1x8xf32, #tpu.memory_space<vmem>>, vector<2x1x8xf32>
    %c0_8 = arith.constant 0 : index
    %c0_9 = arith.constant 0 : index
    %c0_10 = arith.constant 0 : index
    %17 = vector.load %arg4[%c0_8, %c0_9, %c0_10] : memref<2x8x1xf32, #tpu.memory_space<vmem>>, vector<2x8x1xf32>
    %c0_11 = arith.constant 0 : index
    %c0_12 = arith.constant 0 : index
    %c0_13 = arith.constant 0 : index
    %18 = vector.load %arg5[%c0_11, %c0_12, %c0_13] : memref<2x1x8xf32, #tpu.memory_space<vmem>>, vector<2x1x8xf32>
    %c0_14 = arith.constant 0 : index
    %c0_15 = arith.constant 0 : index
    %19 = vector.load %arg6[%c0_14, %c0_15] : memref<32x96xbf16, #tpu.memory_space<vmem>>, vector<32x96xbf16>
    %cst = arith.constant dense<0.000000e+00> : vector<16x96xf32>
    %20 = tpu.matmul %0, %19, %cst {dimension_numbers = #tpu.dot_dimension_numbers<[1], [0], [0], [1], [0, 0, 1, 1], [], []>} : vector<16x32xbf16>, vector<32x96xbf16>, vector<16x96xf32> -> vector<16x96xf32>
    %21 = vector.broadcast %3 : vector<1x96xf32> to vector<16x96xf32>
    %22 = arith.addf %20, %21 : vector<16x96xf32>
    %23 = vector.extract_strided_slice %22 {offsets = [0, 0], sizes = [16, 32], strides = [1, 1]} : vector<16x96xf32> to vector<16x32xf32>
    %24 = vector.shape_cast %23 : vector<16x32xf32> to vector<2x8x32xf32>
    %25 = vector.extract_strided_slice %22 {offsets = [0, 32], sizes = [16, 32], strides = [1, 1]} : vector<16x96xf32> to vector<16x32xf32>
    %26 = vector.shape_cast %25 : vector<16x32xf32> to vector<2x8x32xf32>
    %27 = vector.extract_strided_slice %22 {offsets = [0, 64], sizes = [16, 32], strides = [1, 1]} : vector<16x96xf32> to vector<16x32xf32>
    %28 = vector.shape_cast %27 : vector<16x32xf32> to vector<2x8x32xf32>
    %cst_16 = arith.constant 5.000000e-01 : f32
    %29 = vector.broadcast %cst_16 : f32 to vector<2x8x1xf32>
    %30 = arith.cmpf ogt, %17, %29 : vector<2x8x1xf32>
    %cst_17 = arith.constant 0.000000e+00 : f32
    %cst_18 = arith.constant -1.000000e+09 : f32
    %31 = vector.broadcast %cst_17 : f32 to vector<2x8x1xf32>
    %32 = vector.broadcast %cst_18 : f32 to vector<2x8x1xf32>
    %33 = arith.select %30, %31, %32 : vector<2x8x1xi1>, vector<2x8x1xf32>
    %cst_19 = arith.constant 5.000000e-01 : f32
    %34 = vector.broadcast %cst_19 : f32 to vector<2x1x8xf32>
    %35 = arith.cmpf ogt, %16, %34 : vector<2x1x8xf32>
    %cst_20 = arith.constant 0.000000e+00 : f32
    %cst_21 = arith.constant -1.000000e+09 : f32
    %36 = vector.broadcast %cst_20 : f32 to vector<2x1x8xf32>
    %37 = vector.broadcast %cst_21 : f32 to vector<2x1x8xf32>
    %38 = arith.select %35, %36, %37 : vector<2x1x8xi1>, vector<2x1x8xf32>
    %39 = vector.broadcast %33 : vector<2x8x1xf32> to vector<2x8x8xf32>
    %40 = vector.broadcast %38 : vector<2x1x8xf32> to vector<2x8x8xf32>
    %41 = arith.addf %39, %40 : vector<2x8x8xf32>
    %42 = tpu.iota {dimensions = array<i32: 0>} : vector<8x8xi32>
    %43 = tpu.iota {dimensions = array<i32: 1>} : vector<8x8xi32>
    %44 = arith.cmpi sle, %43, %42 : vector<8x8xi32>
    %cst_22 = arith.constant -1.000000e+09 : f32
    %45 = vector.shape_cast %44 : vector<8x8xi1> to vector<1x8x8xi1>
    %46 = vector.broadcast %45 : vector<1x8x8xi1> to vector<2x8x8xi1>
    %47 = vector.broadcast %cst_22 : f32 to vector<2x8x8xf32>
    %48 = arith.select %46, %41, %47 : vector<2x8x8xi1>, vector<2x8x8xf32>
    %cst_23 = arith.constant 0.353553385 : f32
    %49 = vector.broadcast %cst_23 : f32 to vector<2x8x32xf32>
    %50 = arith.mulf %24, %49 : vector<2x8x32xf32>
    %51 = arith.truncf %50 : vector<2x8x32xf32> to vector<2x8x32xbf16>
    %52 = arith.truncf %26 : vector<2x8x32xf32> to vector<2x8x32xbf16>
    %53 = arith.truncf %28 : vector<2x8x32xf32> to vector<2x8x32xbf16>
    %54 = vector.extract_strided_slice %51 {offsets = [0, 0, 0], sizes = [2, 8, 8], strides = [1, 1, 1]} : vector<2x8x32xbf16> to vector<2x8x8xbf16>
    %55 = vector.extract_strided_slice %52 {offsets = [0, 0, 0], sizes = [2, 8, 8], strides = [1, 1, 1]} : vector<2x8x32xbf16> to vector<2x8x8xbf16>
    %56 = vector.extract_strided_slice %53 {offsets = [0, 0, 0], sizes = [2, 8, 8], strides = [1, 1, 1]} : vector<2x8x32xbf16> to vector<2x8x8xbf16>
    "tpu.trace_start"() <{level = 10 : i32, message = "bqd,bkd->bqk"}> : () -> ()
    %cst_24 = arith.constant dense<0.000000e+00> : vector<2x8x8xf32>
    %57 = tpu.matmul %54, %55, %cst_24 {dimension_numbers = #tpu.dot_dimension_numbers<[2], [2], [1], [1], [0, 0, 0, 1, 1, 1], [0], [0]>} : vector<2x8x8xbf16>, vector<2x8x8xbf16>, vector<2x8x8xf32> -> vector<2x8x8xf32>
    "tpu.trace_stop"() : () -> ()
    %58 = arith.addf %57, %48 : vector<2x8x8xf32>
    %cst_25 = arith.constant dense<0xFF800000> : vector<2x8xf32>
    %59 = vector.multi_reduction <maximumf>, %58, %cst_25 [2] : vector<2x8x8xf32> to vector<2x8xf32>
    %60 = vector.shape_cast %59 : vector<2x8xf32> to vector<2x8x1xf32>
    %61 = vector.broadcast %60 : vector<2x8x1xf32> to vector<2x8x8xf32>
    %62 = arith.subf %58, %61 : vector<2x8x8xf32>
    %63 = math.exp %62 : vector<2x8x8xf32>
    %cst_26 = arith.constant dense<0.000000e+00> : vector<2x8xf32>
    %64 = vector.multi_reduction <add>, %63, %cst_26 [2] : vector<2x8x8xf32> to vector<2x8xf32>
    %65 = vector.shape_cast %64 : vector<2x8xf32> to vector<2x8x1xf32>
    %66 = vector.broadcast %65 : vector<2x8x1xf32> to vector<2x8x8xf32>
    %67 = arith.divf %63, %66 : vector<2x8x8xf32>
    %68 = arith.truncf %67 : vector<2x8x8xf32> to vector<2x8x8xbf16>
    "tpu.trace_start"() <{level = 10 : i32, message = "bqk,bkd->bqd"}> : () -> ()
    %cst_27 = arith.constant dense<0.000000e+00> : vector<2x8x8xf32>
    %69 = tpu.matmul %68, %56, %cst_27 {dimension_numbers = #tpu.dot_dimension_numbers<[2], [1], [1], [2], [0, 0, 0, 1, 1, 2], [0], [0]>} : vector<2x8x8xbf16>, vector<2x8x8xbf16>, vector<2x8x8xf32> -> vector<2x8x8xf32>
    "tpu.trace_stop"() : () -> ()
    %c0_28 = arith.constant 0 : index
    %c0_29 = arith.constant 0 : index
    %c0_30 = arith.constant 0 : index
    %70 = vector.load %arg15[%c0_28, %c0_29, %c0_30] : memref<2x8x32xf32, #tpu.memory_space<vmem>>, vector<2x8x8xf32>
    tpu.vector_store %arg15[%c0_28, %c0_29, %c0_30], %69 {strides = array<i32>} : memref<2x8x32xf32, #tpu.memory_space<vmem>>, vector<2x8x8xf32>,
    %71 = vector.extract_strided_slice %51 {offsets = [0, 0, 8], sizes = [2, 8, 8], strides = [1, 1, 1]} : vector<2x8x32xbf16> to vector<2x8x8xbf16>
    %72 = vector.extract_strided_slice %52 {offsets = [0, 0, 8], sizes = [2, 8, 8], strides = [1, 1, 1]} : vector<2x8x32xbf16> to vector<2x8x8xbf16>
    %73 = vector.extract_strided_slice %53 {offsets = [0, 0, 8], sizes = [2, 8, 8], strides = [1, 1, 1]} : vector<2x8x32xbf16> to vector<2x8x8xbf16>
    "tpu.trace_start"() <{level = 10 : i32, message = "bqd,bkd->bqk"}> : () -> ()
    %cst_31 = arith.constant dense<0.000000e+00> : vector<2x8x8xf32>
    %74 = tpu.matmul %71, %72, %cst_31 {dimension_numbers = #tpu.dot_dimension_numbers<[2], [2], [1], [1], [0, 0, 0, 1, 1, 1], [0], [0]>} : vector<2x8x8xbf16>, vector<2x8x8xbf16>, vector<2x8x8xf32> -> vector<2x8x8xf32>
    "tpu.trace_stop"() : () -> ()
    %75 = arith.addf %74, %48 : vector<2x8x8xf32>
    %cst_32 = arith.constant dense<0xFF800000> : vector<2x8xf32>
    %76 = vector.multi_reduction <maximumf>, %75, %cst_32 [2] : vector<2x8x8xf32> to vector<2x8xf32>
    %77 = vector.shape_cast %76 : vector<2x8xf32> to vector<2x8x1xf32>
    %78 = vector.broadcast %77 : vector<2x8x1xf32> to vector<2x8x8xf32>
    %79 = arith.subf %75, %78 : vector<2x8x8xf32>
    %80 = math.exp %79 : vector<2x8x8xf32>
    %cst_33 = arith.constant dense<0.000000e+00> : vector<2x8xf32>
    %81 = vector.multi_reduction <add>, %80, %cst_33 [2] : vector<2x8x8xf32> to vector<2x8xf32>
    %82 = vector.shape_cast %81 : vector<2x8xf32> to vector<2x8x1xf32>
    %83 = vector.broadcast %82 : vector<2x8x1xf32> to vector<2x8x8xf32>
    %84 = arith.divf %80, %83 : vector<2x8x8xf32>
    %85 = arith.truncf %84 : vector<2x8x8xf32> to vector<2x8x8xbf16>
    "tpu.trace_start"() <{level = 10 : i32, message = "bqk,bkd->bqd"}> : () -> ()
    %cst_34 = arith.constant dense<0.000000e+00> : vector<2x8x8xf32>
    %86 = tpu.matmul %85, %73, %cst_34 {dimension_numbers = #tpu.dot_dimension_numbers<[2], [1], [1], [2], [0, 0, 0, 1, 1, 2], [0], [0]>} : vector<2x8x8xbf16>, vector<2x8x8xbf16>, vector<2x8x8xf32> -> vector<2x8x8xf32>
    "tpu.trace_stop"() : () -> ()
    %c0_35 = arith.constant 0 : index
    %c0_36 = arith.constant 0 : index
    %c8 = arith.constant 8 : index
    %87 = vector.load %arg15[%c0_35, %c0_36, %c8] : memref<2x8x32xf32, #tpu.memory_space<vmem>>, vector<2x8x8xf32>
    tpu.vector_store %arg15[%c0_35, %c0_36, %c8], %86 {strides = array<i32>} : memref<2x8x32xf32, #tpu.memory_space<vmem>>, vector<2x8x8xf32>,
    %88 = vector.extract_strided_slice %51 {offsets = [0, 0, 16], sizes = [2, 8, 8], strides = [1, 1, 1]} : vector<2x8x32xbf16> to vector<2x8x8xbf16>
    %89 = vector.extract_strided_slice %52 {offsets = [0, 0, 16], sizes = [2, 8, 8], strides = [1, 1, 1]} : vector<2x8x32xbf16> to vector<2x8x8xbf16>
    %90 = vector.extract_strided_slice %53 {offsets = [0, 0, 16], sizes = [2, 8, 8], strides = [1, 1, 1]} : vector<2x8x32xbf16> to vector<2x8x8xbf16>
    "tpu.trace_start"() <{level = 10 : i32, message = "bqd,bkd->bqk"}> : () -> ()
    %cst_37 = arith.constant dense<0.000000e+00> : vector<2x8x8xf32>
    %91 = tpu.matmul %88, %89, %cst_37 {dimension_numbers = #tpu.dot_dimension_numbers<[2], [2], [1], [1], [0, 0, 0, 1, 1, 1], [0], [0]>} : vector<2x8x8xbf16>, vector<2x8x8xbf16>, vector<2x8x8xf32> -> vector<2x8x8xf32>
    "tpu.trace_stop"() : () -> ()
    %92 = arith.addf %91, %48 : vector<2x8x8xf32>
    %cst_38 = arith.constant dense<0xFF800000> : vector<2x8xf32>
    %93 = vector.multi_reduction <maximumf>, %92, %cst_38 [2] : vector<2x8x8xf32> to vector<2x8xf32>
    %94 = vector.shape_cast %93 : vector<2x8xf32> to vector<2x8x1xf32>
    %95 = vector.broadcast %94 : vector<2x8x1xf32> to vector<2x8x8xf32>
    %96 = arith.subf %92, %95 : vector<2x8x8xf32>
    %97 = math.exp %96 : vector<2x8x8xf32>
    %cst_39 = arith.constant dense<0.000000e+00> : vector<2x8xf32>
    %98 = vector.multi_reduction <add>, %97, %cst_39 [2] : vector<2x8x8xf32> to vector<2x8xf32>
    %99 = vector.shape_cast %98 : vector<2x8xf32> to vector<2x8x1xf32>
    %100 = vector.broadcast %99 : vector<2x8x1xf32> to vector<2x8x8xf32>
    %101 = arith.divf %97, %100 : vector<2x8x8xf32>
    %102 = arith.truncf %101 : vector<2x8x8xf32> to vector<2x8x8xbf16>
    "tpu.trace_start"() <{level = 10 : i32, message = "bqk,bkd->bqd"}> : () -> ()
    %cst_40 = arith.constant dense<0.000000e+00> : vector<2x8x8xf32>
    %103 = tpu.matmul %102, %90, %cst_40 {dimension_numbers = #tpu.dot_dimension_numbers<[2], [1], [1], [2], [0, 0, 0, 1, 1, 2], [0], [0]>} : vector<2x8x8xbf16>, vector<2x8x8xbf16>, vector<2x8x8xf32> -> vector<2x8x8xf32>
    "tpu.trace_stop"() : () -> ()
    %c0_41 = arith.constant 0 : index
    %c0_42 = arith.constant 0 : index
    %c16 = arith.constant 16 : index
    %104 = vector.load %arg15[%c0_41, %c0_42, %c16] : memref<2x8x32xf32, #tpu.memory_space<vmem>>, vector<2x8x8xf32>
    tpu.vector_store %arg15[%c0_41, %c0_42, %c16], %103 {strides = array<i32>} : memref<2x8x32xf32, #tpu.memory_space<vmem>>, vector<2x8x8xf32>,
    %105 = vector.extract_strided_slice %51 {offsets = [0, 0, 24], sizes = [2, 8, 8], strides = [1, 1, 1]} : vector<2x8x32xbf16> to vector<2x8x8xbf16>
    %106 = vector.extract_strided_slice %52 {offsets = [0, 0, 24], sizes = [2, 8, 8], strides = [1, 1, 1]} : vector<2x8x32xbf16> to vector<2x8x8xbf16>
    %107 = vector.extract_strided_slice %53 {offsets = [0, 0, 24], sizes = [2, 8, 8], strides = [1, 1, 1]} : vector<2x8x32xbf16> to vector<2x8x8xbf16>
    "tpu.trace_start"() <{level = 10 : i32, message = "bqd,bkd->bqk"}> : () -> ()
    %cst_43 = arith.constant dense<0.000000e+00> : vector<2x8x8xf32>
    %108 = tpu.matmul %105, %106, %cst_43 {dimension_numbers = #tpu.dot_dimension_numbers<[2], [2], [1], [1], [0, 0, 0, 1, 1, 1], [0], [0]>} : vector<2x8x8xbf16>, vector<2x8x8xbf16>, vector<2x8x8xf32> -> vector<2x8x8xf32>
    "tpu.trace_stop"() : () -> ()
    %109 = arith.addf %108, %48 : vector<2x8x8xf32>
    %cst_44 = arith.constant dense<0xFF800000> : vector<2x8xf32>
    %110 = vector.multi_reduction <maximumf>, %109, %cst_44 [2] : vector<2x8x8xf32> to vector<2x8xf32>
    %111 = vector.shape_cast %110 : vector<2x8xf32> to vector<2x8x1xf32>
    %112 = vector.broadcast %111 : vector<2x8x1xf32> to vector<2x8x8xf32>
    %113 = arith.subf %109, %112 : vector<2x8x8xf32>
    %114 = math.exp %113 : vector<2x8x8xf32>
    %cst_45 = arith.constant dense<0.000000e+00> : vector<2x8xf32>
    %115 = vector.multi_reduction <add>, %114, %cst_45 [2] : vector<2x8x8xf32> to vector<2x8xf32>
    %116 = vector.shape_cast %115 : vector<2x8xf32> to vector<2x8x1xf32>
    %117 = vector.broadcast %116 : vector<2x8x1xf32> to vector<2x8x8xf32>
    %118 = arith.divf %114, %117 : vector<2x8x8xf32>
    %119 = arith.truncf %118 : vector<2x8x8xf32> to vector<2x8x8xbf16>
    "tpu.trace_start"() <{level = 10 : i32, message = "bqk,bkd->bqd"}> : () -> ()
    %cst_46 = arith.constant dense<0.000000e+00> : vector<2x8x8xf32>
    %120 = tpu.matmul %119, %107, %cst_46 {dimension_numbers = #tpu.dot_dimension_numbers<[2], [1], [1], [2], [0, 0, 0, 1, 1, 2], [0], [0]>} : vector<2x8x8xbf16>, vector<2x8x8xbf16>, vector<2x8x8xf32> -> vector<2x8x8xf32>
    "tpu.trace_stop"() : () -> ()
    %c0_47 = arith.constant 0 : index
    %c0_48 = arith.constant 0 : index
    %c24 = arith.constant 24 : index
    %121 = vector.load %arg15[%c0_47, %c0_48, %c24] : memref<2x8x32xf32, #tpu.memory_space<vmem>>, vector<2x8x8xf32>
    tpu.vector_store %arg15[%c0_47, %c0_48, %c24], %120 {strides = array<i32>} : memref<2x8x32xf32, #tpu.memory_space<vmem>>, vector<2x8x8xf32>,
    %c0_49 = arith.constant 0 : index
    %c0_50 = arith.constant 0 : index
    %c0_51 = arith.constant 0 : index
    %122 = vector.load %arg15[%c0_49, %c0_50, %c0_51] : memref<2x8x32xf32, #tpu.memory_space<vmem>>, vector<2x8x32xf32>
    %123 = vector.shape_cast %122 : vector<2x8x32xf32> to vector<16x32xf32>
    %124 = arith.truncf %123 : vector<16x32xf32> to vector<16x32xbf16>
    %c0_52 = arith.constant 0 : index
    %c0_53 = arith.constant 0 : index
    %125 = vector.load %arg7[%c0_52, %c0_53] : memref<32x32xbf16, #tpu.memory_space<vmem>>, vector<32x32xbf16>
    %cst_54 = arith.constant dense<0.000000e+00> : vector<16x32xf32>
    %126 = tpu.matmul %124, %125, %cst_54 {dimension_numbers = #tpu.dot_dimension_numbers<[1], [0], [0], [1], [0, 0, 1, 1], [], []>} : vector<16x32xbf16>, vector<32x32xbf16>, vector<16x32xf32> -> vector<16x32xf32>
    %127 = vector.broadcast %4 : vector<1x32xf32> to vector<16x32xf32>
    %128 = arith.addf %126, %127 : vector<16x32xf32>
    %129 = arith.extf %0 : vector<16x32xbf16> to vector<16x32xf32>
    %130 = arith.addf %129, %128 : vector<16x32xf32>
    %cst_55 = arith.constant dense<0.000000e+00> : vector<16xf32>
    %131 = vector.multi_reduction <add>, %130, %cst_55 [1] : vector<16x32xf32> to vector<16xf32>
    %132 = vector.shape_cast %131 : vector<16xf32> to vector<16x1xf32>
    %cst_56 = arith.constant 3.200000e+01 : f32
    %133 = vector.broadcast %cst_56 : f32 to vector<16x1xf32>
    %134 = arith.divf %132, %133 : vector<16x1xf32>
    %135 = vector.broadcast %134 : vector<16x1xf32> to vector<16x32xf32>
    %136 = arith.subf %130, %135 : vector<16x32xf32>
    %137 = arith.mulf %136, %136 : vector<16x32xf32>
    %cst_57 = arith.constant dense<0.000000e+00> : vector<16xf32>
    %138 = vector.multi_reduction <add>, %137, %cst_57 [1] : vector<16x32xf32> to vector<16xf32>
    %139 = vector.shape_cast %138 : vector<16xf32> to vector<16x1xf32>
    %cst_58 = arith.constant 3.200000e+01 : f32
    %140 = vector.broadcast %cst_58 : f32 to vector<16x1xf32>
    %141 = arith.divf %139, %140 : vector<16x1xf32>
    %cst_59 = arith.constant 9.99999974E-6 : f32
    %142 = vector.broadcast %cst_59 : f32 to vector<16x1xf32>
    %143 = arith.addf %141, %142 : vector<16x1xf32>
    %144 = math.rsqrt %143 : vector<16x1xf32>
    %145 = vector.broadcast %144 : vector<16x1xf32> to vector<16x32xf32>
    %146 = arith.mulf %136, %145 : vector<16x32xf32>
    %147 = vector.broadcast %5 : vector<1x32xf32> to vector<16x32xf32>
    %148 = arith.mulf %146, %147 : vector<16x32xf32>
    %149 = vector.broadcast %6 : vector<1x32xf32> to vector<16x32xf32>
    %150 = arith.addf %148, %149 : vector<16x32xf32>
    %151 = arith.truncf %150 : vector<16x32xf32> to vector<16x32xbf16>
    %c0_60 = arith.constant 0 : index
    %c0_61 = arith.constant 0 : index
    %152 = vector.load %arg8[%c0_60, %c0_61] : memref<32x32xbf16, #tpu.memory_space<vmem>>, vector<32x32xbf16>
    %cst_62 = arith.constant dense<0.000000e+00> : vector<16x32xf32>
    %153 = tpu.matmul %151, %152, %cst_62 {dimension_numbers = #tpu.dot_dimension_numbers<[1], [0], [0], [1], [0, 0, 1, 1], [], []>} : vector<16x32xbf16>, vector<32x32xbf16>, vector<16x32xf32> -> vector<16x32xf32>
    %154 = vector.broadcast %7 : vector<1x32xf32> to vector<16x32xf32>
    %155 = arith.addf %153, %154 : vector<16x32xf32>
    %c0_63 = arith.constant 0 : index
    %c0_64 = arith.constant 0 : index
    %156 = vector.load %arg9[%c0_63, %c0_64] : memref<32x64xbf16, #tpu.memory_space<vmem>>, vector<32x64xbf16>
    %cst_65 = arith.constant dense<0.000000e+00> : vector<16x64xf32>
    %157 = tpu.matmul %1, %156, %cst_65 {dimension_numbers = #tpu.dot_dimension_numbers<[1], [0], [0], [1], [0, 0, 1, 1], [], []>} : vector<16x32xbf16>, vector<32x64xbf16>, vector<16x64xf32> -> vector<16x64xf32>
    %158 = vector.broadcast %8 : vector<1x64xf32> to vector<16x64xf32>
    %159 = arith.addf %157, %158 : vector<16x64xf32>
    %160 = vector.shape_cast %155 : vector<16x32xf32> to vector<2x8x32xf32>
    %161 = vector.extract_strided_slice %159 {offsets = [0, 0], sizes = [16, 32], strides = [1, 1]} : vector<16x64xf32> to vector<16x32xf32>
    %162 = vector.shape_cast %161 : vector<16x32xf32> to vector<2x8x32xf32>
    %163 = vector.extract_strided_slice %159 {offsets = [0, 32], sizes = [16, 32], strides = [1, 1]} : vector<16x64xf32> to vector<16x32xf32>
    %164 = vector.shape_cast %163 : vector<16x32xf32> to vector<2x8x32xf32>
    %cst_66 = arith.constant 5.000000e-01 : f32
    %165 = vector.broadcast %cst_66 : f32 to vector<2x8x1xf32>
    %166 = arith.cmpf ogt, %17, %165 : vector<2x8x1xf32>
    %cst_67 = arith.constant 0.000000e+00 : f32
    %cst_68 = arith.constant -1.000000e+09 : f32
    %167 = vector.broadcast %cst_67 : f32 to vector<2x8x1xf32>
    %168 = vector.broadcast %cst_68 : f32 to vector<2x8x1xf32>
    %169 = arith.select %166, %167, %168 : vector<2x8x1xi1>, vector<2x8x1xf32>
    %cst_69 = arith.constant 5.000000e-01 : f32
    %170 = vector.broadcast %cst_69 : f32 to vector<2x1x8xf32>
    %171 = arith.cmpf ogt, %18, %170 : vector<2x1x8xf32>
    %cst_70 = arith.constant 0.000000e+00 : f32
    %cst_71 = arith.constant -1.000000e+09 : f32
    %172 = vector.broadcast %cst_70 : f32 to vector<2x1x8xf32>
    %173 = vector.broadcast %cst_71 : f32 to vector<2x1x8xf32>
    %174 = arith.select %171, %172, %173 : vector<2x1x8xi1>, vector<2x1x8xf32>
    %175 = vector.broadcast %169 : vector<2x8x1xf32> to vector<2x8x8xf32>
    %176 = vector.broadcast %174 : vector<2x1x8xf32> to vector<2x8x8xf32>
    %177 = arith.addf %175, %176 : vector<2x8x8xf32>
    %cst_72 = arith.constant 0.353553385 : f32
    %178 = vector.broadcast %cst_72 : f32 to vector<2x8x32xf32>
    %179 = arith.mulf %160, %178 : vector<2x8x32xf32>
    %180 = arith.truncf %179 : vector<2x8x32xf32> to vector<2x8x32xbf16>
    %181 = arith.truncf %162 : vector<2x8x32xf32> to vector<2x8x32xbf16>
    %182 = arith.truncf %164 : vector<2x8x32xf32> to vector<2x8x32xbf16>
    %183 = vector.extract_strided_slice %180 {offsets = [0, 0, 0], sizes = [2, 8, 8], strides = [1, 1, 1]} : vector<2x8x32xbf16> to vector<2x8x8xbf16>
    %184 = vector.extract_strided_slice %181 {offsets = [0, 0, 0], sizes = [2, 8, 8], strides = [1, 1, 1]} : vector<2x8x32xbf16> to vector<2x8x8xbf16>
    %185 = vector.extract_strided_slice %182 {offsets = [0, 0, 0], sizes = [2, 8, 8], strides = [1, 1, 1]} : vector<2x8x32xbf16> to vector<2x8x8xbf16>
    "tpu.trace_start"() <{level = 10 : i32, message = "bqd,bkd->bqk"}> : () -> ()
    %cst_73 = arith.constant dense<0.000000e+00> : vector<2x8x8xf32>
    %186 = tpu.matmul %183, %184, %cst_73 {dimension_numbers = #tpu.dot_dimension_numbers<[2], [2], [1], [1], [0, 0, 0, 1, 1, 1], [0], [0]>} : vector<2x8x8xbf16>, vector<2x8x8xbf16>, vector<2x8x8xf32> -> vector<2x8x8xf32>
    "tpu.trace_stop"() : () -> ()
    %187 = arith.addf %186, %177 : vector<2x8x8xf32>
    %cst_74 = arith.constant dense<0xFF800000> : vector<2x8xf32>
    %188 = vector.multi_reduction <maximumf>, %187, %cst_74 [2] : vector<2x8x8xf32> to vector<2x8xf32>
    %189 = vector.shape_cast %188 : vector<2x8xf32> to vector<2x8x1xf32>
    %190 = vector.broadcast %189 : vector<2x8x1xf32> to vector<2x8x8xf32>
    %191 = arith.subf %187, %190 : vector<2x8x8xf32>
    %192 = math.exp %191 : vector<2x8x8xf32>
    %cst_75 = arith.constant dense<0.000000e+00> : vector<2x8xf32>
    %193 = vector.multi_reduction <add>, %192, %cst_75 [2] : vector<2x8x8xf32> to vector<2x8xf32>
    %194 = vector.shape_cast %193 : vector<2x8xf32> to vector<2x8x1xf32>
    %195 = vector.broadcast %194 : vector<2x8x1xf32> to vector<2x8x8xf32>
    %196 = arith.divf %192, %195 : vector<2x8x8xf32>
    %197 = arith.truncf %196 : vector<2x8x8xf32> to vector<2x8x8xbf16>
    "tpu.trace_start"() <{level = 10 : i32, message = "bqk,bkd->bqd"}> : () -> ()
    %cst_76 = arith.constant dense<0.000000e+00> : vector<2x8x8xf32>
    %198 = tpu.matmul %197, %185, %cst_76 {dimension_numbers = #tpu.dot_dimension_numbers<[2], [1], [1], [2], [0, 0, 0, 1, 1, 2], [0], [0]>} : vector<2x8x8xbf16>, vector<2x8x8xbf16>, vector<2x8x8xf32> -> vector<2x8x8xf32>
    "tpu.trace_stop"() : () -> ()
    %c0_77 = arith.constant 0 : index
    %c0_78 = arith.constant 0 : index
    %c0_79 = arith.constant 0 : index
    %199 = vector.load %arg15[%c0_77, %c0_78, %c0_79] : memref<2x8x32xf32, #tpu.memory_space<vmem>>, vector<2x8x8xf32>
    tpu.vector_store %arg15[%c0_77, %c0_78, %c0_79], %198 {strides = array<i32>} : memref<2x8x32xf32, #tpu.memory_space<vmem>>, vector<2x8x8xf32>,
    %200 = vector.extract_strided_slice %180 {offsets = [0, 0, 8], sizes = [2, 8, 8], strides = [1, 1, 1]} : vector<2x8x32xbf16> to vector<2x8x8xbf16>
    %201 = vector.extract_strided_slice %181 {offsets = [0, 0, 8], sizes = [2, 8, 8], strides = [1, 1, 1]} : vector<2x8x32xbf16> to vector<2x8x8xbf16>
    %202 = vector.extract_strided_slice %182 {offsets = [0, 0, 8], sizes = [2, 8, 8], strides = [1, 1, 1]} : vector<2x8x32xbf16> to vector<2x8x8xbf16>
    "tpu.trace_start"() <{level = 10 : i32, message = "bqd,bkd->bqk"}> : () -> ()
    %cst_80 = arith.constant dense<0.000000e+00> : vector<2x8x8xf32>
    %203 = tpu.matmul %200, %201, %cst_80 {dimension_numbers = #tpu.dot_dimension_numbers<[2], [2], [1], [1], [0, 0, 0, 1, 1, 1], [0], [0]>} : vector<2x8x8xbf16>, vector<2x8x8xbf16>, vector<2x8x8xf32> -> vector<2x8x8xf32>
    "tpu.trace_stop"() : () -> ()
    %204 = arith.addf %203, %177 : vector<2x8x8xf32>
    %cst_81 = arith.constant dense<0xFF800000> : vector<2x8xf32>
    %205 = vector.multi_reduction <maximumf>, %204, %cst_81 [2] : vector<2x8x8xf32> to vector<2x8xf32>
    %206 = vector.shape_cast %205 : vector<2x8xf32> to vector<2x8x1xf32>
    %207 = vector.broadcast %206 : vector<2x8x1xf32> to vector<2x8x8xf32>
    %208 = arith.subf %204, %207 : vector<2x8x8xf32>
    %209 = math.exp %208 : vector<2x8x8xf32>
    %cst_82 = arith.constant dense<0.000000e+00> : vector<2x8xf32>
    %210 = vector.multi_reduction <add>, %209, %cst_82 [2] : vector<2x8x8xf32> to vector<2x8xf32>
    %211 = vector.shape_cast %210 : vector<2x8xf32> to vector<2x8x1xf32>
    %212 = vector.broadcast %211 : vector<2x8x1xf32> to vector<2x8x8xf32>
    %213 = arith.divf %209, %212 : vector<2x8x8xf32>
    %214 = arith.truncf %213 : vector<2x8x8xf32> to vector<2x8x8xbf16>
    "tpu.trace_start"() <{level = 10 : i32, message = "bqk,bkd->bqd"}> : () -> ()
    %cst_83 = arith.constant dense<0.000000e+00> : vector<2x8x8xf32>
    %215 = tpu.matmul %214, %202, %cst_83 {dimension_numbers = #tpu.dot_dimension_numbers<[2], [1], [1], [2], [0, 0, 0, 1, 1, 2], [0], [0]>} : vector<2x8x8xbf16>, vector<2x8x8xbf16>, vector<2x8x8xf32> -> vector<2x8x8xf32>
    "tpu.trace_stop"() : () -> ()
    %c0_84 = arith.constant 0 : index
    %c0_85 = arith.constant 0 : index
    %c8_86 = arith.constant 8 : index
    %216 = vector.load %arg15[%c0_84, %c0_85, %c8_86] : memref<2x8x32xf32, #tpu.memory_space<vmem>>, vector<2x8x8xf32>
    tpu.vector_store %arg15[%c0_84, %c0_85, %c8_86], %215 {strides = array<i32>} : memref<2x8x32xf32, #tpu.memory_space<vmem>>, vector<2x8x8xf32>,
    %217 = vector.extract_strided_slice %180 {offsets = [0, 0, 16], sizes = [2, 8, 8], strides = [1, 1, 1]} : vector<2x8x32xbf16> to vector<2x8x8xbf16>
    %218 = vector.extract_strided_slice %181 {offsets = [0, 0, 16], sizes = [2, 8, 8], strides = [1, 1, 1]} : vector<2x8x32xbf16> to vector<2x8x8xbf16>
    %219 = vector.extract_strided_slice %182 {offsets = [0, 0, 16], sizes = [2, 8, 8], strides = [1, 1, 1]} : vector<2x8x32xbf16> to vector<2x8x8xbf16>
    "tpu.trace_start"() <{level = 10 : i32, message = "bqd,bkd->bqk"}> : () -> ()
    %cst_87 = arith.constant dense<0.000000e+00> : vector<2x8x8xf32>
    %220 = tpu.matmul %217, %218, %cst_87 {dimension_numbers = #tpu.dot_dimension_numbers<[2], [2], [1], [1], [0, 0, 0, 1, 1, 1], [0], [0]>} : vector<2x8x8xbf16>, vector<2x8x8xbf16>, vector<2x8x8xf32> -> vector<2x8x8xf32>
    "tpu.trace_stop"() : () -> ()
    %221 = arith.addf %220, %177 : vector<2x8x8xf32>
    %cst_88 = arith.constant dense<0xFF800000> : vector<2x8xf32>
    %222 = vector.multi_reduction <maximumf>, %221, %cst_88 [2] : vector<2x8x8xf32> to vector<2x8xf32>
    %223 = vector.shape_cast %222 : vector<2x8xf32> to vector<2x8x1xf32>
    %224 = vector.broadcast %223 : vector<2x8x1xf32> to vector<2x8x8xf32>
    %225 = arith.subf %221, %224 : vector<2x8x8xf32>
    %226 = math.exp %225 : vector<2x8x8xf32>
    %cst_89 = arith.constant dense<0.000000e+00> : vector<2x8xf32>
    %227 = vector.multi_reduction <add>, %226, %cst_89 [2] : vector<2x8x8xf32> to vector<2x8xf32>
    %228 = vector.shape_cast %227 : vector<2x8xf32> to vector<2x8x1xf32>
    %229 = vector.broadcast %228 : vector<2x8x1xf32> to vector<2x8x8xf32>
    %230 = arith.divf %226, %229 : vector<2x8x8xf32>
    %231 = arith.truncf %230 : vector<2x8x8xf32> to vector<2x8x8xbf16>
    "tpu.trace_start"() <{level = 10 : i32, message = "bqk,bkd->bqd"}> : () -> ()
    %cst_90 = arith.constant dense<0.000000e+00> : vector<2x8x8xf32>
    %232 = tpu.matmul %231, %219, %cst_90 {dimension_numbers = #tpu.dot_dimension_numbers<[2], [1], [1], [2], [0, 0, 0, 1, 1, 2], [0], [0]>} : vector<2x8x8xbf16>, vector<2x8x8xbf16>, vector<2x8x8xf32> -> vector<2x8x8xf32>
    "tpu.trace_stop"() : () -> ()
    %c0_91 = arith.constant 0 : index
    %c0_92 = arith.constant 0 : index
    %c16_93 = arith.constant 16 : index
    %233 = vector.load %arg15[%c0_91, %c0_92, %c16_93] : memref<2x8x32xf32, #tpu.memory_space<vmem>>, vector<2x8x8xf32>
    tpu.vector_store %arg15[%c0_91, %c0_92, %c16_93], %232 {strides = array<i32>} : memref<2x8x32xf32, #tpu.memory_space<vmem>>, vector<2x8x8xf32>,
    %234 = vector.extract_strided_slice %180 {offsets = [0, 0, 24], sizes = [2, 8, 8], strides = [1, 1, 1]} : vector<2x8x32xbf16> to vector<2x8x8xbf16>
    %235 = vector.extract_strided_slice %181 {offsets = [0, 0, 24], sizes = [2, 8, 8], strides = [1, 1, 1]} : vector<2x8x32xbf16> to vector<2x8x8xbf16>
    %236 = vector.extract_strided_slice %182 {offsets = [0, 0, 24], sizes = [2, 8, 8], strides = [1, 1, 1]} : vector<2x8x32xbf16> to vector<2x8x8xbf16>
    "tpu.trace_start"() <{level = 10 : i32, message = "bqd,bkd->bqk"}> : () -> ()
    %cst_94 = arith.constant dense<0.000000e+00> : vector<2x8x8xf32>
    %237 = tpu.matmul %234, %235, %cst_94 {dimension_numbers = #tpu.dot_dimension_numbers<[2], [2], [1], [1], [0, 0, 0, 1, 1, 1], [0], [0]>} : vector<2x8x8xbf16>, vector<2x8x8xbf16>, vector<2x8x8xf32> -> vector<2x8x8xf32>
    "tpu.trace_stop"() : () -> ()
    %238 = arith.addf %237, %177 : vector<2x8x8xf32>
    %cst_95 = arith.constant dense<0xFF800000> : vector<2x8xf32>
    %239 = vector.multi_reduction <maximumf>, %238, %cst_95 [2] : vector<2x8x8xf32> to vector<2x8xf32>
    %240 = vector.shape_cast %239 : vector<2x8xf32> to vector<2x8x1xf32>
    %241 = vector.broadcast %240 : vector<2x8x1xf32> to vector<2x8x8xf32>
    %242 = arith.subf %238, %241 : vector<2x8x8xf32>
    %243 = math.exp %242 : vector<2x8x8xf32>
    %cst_96 = arith.constant dense<0.000000e+00> : vector<2x8xf32>
    %244 = vector.multi_reduction <add>, %243, %cst_96 [2] : vector<2x8x8xf32> to vector<2x8xf32>
    %245 = vector.shape_cast %244 : vector<2x8xf32> to vector<2x8x1xf32>
    %246 = vector.broadcast %245 : vector<2x8x1xf32> to vector<2x8x8xf32>
    %247 = arith.divf %243, %246 : vector<2x8x8xf32>
    %248 = arith.truncf %247 : vector<2x8x8xf32> to vector<2x8x8xbf16>
    "tpu.trace_start"() <{level = 10 : i32, message = "bqk,bkd->bqd"}> : () -> ()
    %cst_97 = arith.constant dense<0.000000e+00> : vector<2x8x8xf32>
    %249 = tpu.matmul %248, %236, %cst_97 {dimension_numbers = #tpu.dot_dimension_numbers<[2], [1], [1], [2], [0, 0, 0, 1, 1, 2], [0], [0]>} : vector<2x8x8xbf16>, vector<2x8x8xbf16>, vector<2x8x8xf32> -> vector<2x8x8xf32>
    "tpu.trace_stop"() : () -> ()
    %c0_98 = arith.constant 0 : index
    %c0_99 = arith.constant 0 : index
    %c24_100 = arith.constant 24 : index
    %250 = vector.load %arg15[%c0_98, %c0_99, %c24_100] : memref<2x8x32xf32, #tpu.memory_space<vmem>>, vector<2x8x8xf32>
    tpu.vector_store %arg15[%c0_98, %c0_99, %c24_100], %249 {strides = array<i32>} : memref<2x8x32xf32, #tpu.memory_space<vmem>>, vector<2x8x8xf32>,
    %c0_101 = arith.constant 0 : index
    %c0_102 = arith.constant 0 : index
    %c0_103 = arith.constant 0 : index
    %251 = vector.load %arg15[%c0_101, %c0_102, %c0_103] : memref<2x8x32xf32, #tpu.memory_space<vmem>>, vector<2x8x32xf32>
    %252 = vector.shape_cast %251 : vector<2x8x32xf32> to vector<16x32xf32>
    %253 = arith.truncf %252 : vector<16x32xf32> to vector<16x32xbf16>
    %c0_104 = arith.constant 0 : index
    %c0_105 = arith.constant 0 : index
    %254 = vector.load %arg10[%c0_104, %c0_105] : memref<32x32xbf16, #tpu.memory_space<vmem>>, vector<32x32xbf16>
    %cst_106 = arith.constant dense<0.000000e+00> : vector<16x32xf32>
    %255 = tpu.matmul %253, %254, %cst_106 {dimension_numbers = #tpu.dot_dimension_numbers<[1], [0], [0], [1], [0, 0, 1, 1], [], []>} : vector<16x32xbf16>, vector<32x32xbf16>, vector<16x32xf32> -> vector<16x32xf32>
    %256 = vector.broadcast %9 : vector<1x32xf32> to vector<16x32xf32>
    %257 = arith.addf %255, %256 : vector<16x32xf32>
    %258 = arith.addf %150, %257 : vector<16x32xf32>
    %cst_107 = arith.constant dense<0.000000e+00> : vector<16xf32>
    %259 = vector.multi_reduction <add>, %258, %cst_107 [1] : vector<16x32xf32> to vector<16xf32>
    %260 = vector.shape_cast %259 : vector<16xf32> to vector<16x1xf32>
    %cst_108 = arith.constant 3.200000e+01 : f32
    %261 = vector.broadcast %cst_108 : f32 to vector<16x1xf32>
    %262 = arith.divf %260, %261 : vector<16x1xf32>
    %263 = vector.broadcast %262 : vector<16x1xf32> to vector<16x32xf32>
    %264 = arith.subf %258, %263 : vector<16x32xf32>
    %265 = arith.mulf %264, %264 : vector<16x32xf32>
    %cst_109 = arith.constant dense<0.000000e+00> : vector<16xf32>
    %266 = vector.multi_reduction <add>, %265, %cst_109 [1] : vector<16x32xf32> to vector<16xf32>
    %267 = vector.shape_cast %266 : vector<16xf32> to vector<16x1xf32>
    %cst_110 = arith.constant 3.200000e+01 : f32
    %268 = vector.broadcast %cst_110 : f32 to vector<16x1xf32>
    %269 = arith.divf %267, %268 : vector<16x1xf32>
    %cst_111 = arith.constant 9.99999974E-6 : f32
    %270 = vector.broadcast %cst_111 : f32 to vector<16x1xf32>
    %271 = arith.addf %269, %270 : vector<16x1xf32>
    %272 = math.rsqrt %271 : vector<16x1xf32>
    %273 = vector.broadcast %272 : vector<16x1xf32> to vector<16x32xf32>
    %274 = arith.mulf %264, %273 : vector<16x32xf32>
    %275 = vector.broadcast %10 : vector<1x32xf32> to vector<16x32xf32>
    %276 = arith.mulf %274, %275 : vector<16x32xf32>
    %277 = vector.broadcast %11 : vector<1x32xf32> to vector<16x32xf32>
    %278 = arith.addf %276, %277 : vector<16x32xf32>
    %279 = arith.truncf %278 : vector<16x32xf32> to vector<16x32xbf16>
    %c0_112 = arith.constant 0 : index
    %c0_113 = arith.constant 0 : index
    %280 = vector.load %arg11[%c0_112, %c0_113] : memref<32x64xbf16, #tpu.memory_space<vmem>>, vector<32x64xbf16>
    %cst_114 = arith.constant dense<0.000000e+00> : vector<16x64xf32>
    %281 = tpu.matmul %279, %280, %cst_114 {dimension_numbers = #tpu.dot_dimension_numbers<[1], [0], [0], [1], [0, 0, 1, 1], [], []>} : vector<16x32xbf16>, vector<32x64xbf16>, vector<16x64xf32> -> vector<16x64xf32>
    %282 = vector.broadcast %12 : vector<1x64xf32> to vector<16x64xf32>
    %283 = arith.addf %281, %282 : vector<16x64xf32>
    %cst_115 = arith.constant 0.000000e+00 : f32
    %284 = vector.broadcast %cst_115 : f32 to vector<16x64xf32>
    %285 = arith.maximumf %283, %284 : vector<16x64xf32>
    %286 = arith.truncf %285 : vector<16x64xf32> to vector<16x64xbf16>
    %c0_116 = arith.constant 0 : index
    %c0_117 = arith.constant 0 : index
    %287 = vector.load %arg12[%c0_116, %c0_117] : memref<64x32xbf16, #tpu.memory_space<vmem>>, vector<64x32xbf16>
    %cst_118 = arith.constant dense<0.000000e+00> : vector<16x32xf32>
    %288 = tpu.matmul %286, %287, %cst_118 {dimension_numbers = #tpu.dot_dimension_numbers<[1], [0], [0], [1], [0, 0, 1, 1], [], []>} : vector<16x64xbf16>, vector<64x32xbf16>, vector<16x32xf32> -> vector<16x32xf32>
    %289 = vector.broadcast %13 : vector<1x32xf32> to vector<16x32xf32>
    %290 = arith.addf %288, %289 : vector<16x32xf32>
    %291 = arith.addf %278, %290 : vector<16x32xf32>
    %cst_119 = arith.constant dense<0.000000e+00> : vector<16xf32>
    %292 = vector.multi_reduction <add>, %291, %cst_119 [1] : vector<16x32xf32> to vector<16xf32>
    %293 = vector.shape_cast %292 : vector<16xf32> to vector<16x1xf32>
    %cst_120 = arith.constant 3.200000e+01 : f32
    %294 = vector.broadcast %cst_120 : f32 to vector<16x1xf32>
    %295 = arith.divf %293, %294 : vector<16x1xf32>
    %296 = vector.broadcast %295 : vector<16x1xf32> to vector<16x32xf32>
    %297 = arith.subf %291, %296 : vector<16x32xf32>
    %298 = arith.mulf %297, %297 : vector<16x32xf32>
    %cst_121 = arith.constant dense<0.000000e+00> : vector<16xf32>
    %299 = vector.multi_reduction <add>, %298, %cst_121 [1] : vector<16x32xf32> to vector<16xf32>
    %300 = vector.shape_cast %299 : vector<16xf32> to vector<16x1xf32>
    %cst_122 = arith.constant 3.200000e+01 : f32
    %301 = vector.broadcast %cst_122 : f32 to vector<16x1xf32>
    %302 = arith.divf %300, %301 : vector<16x1xf32>
    %cst_123 = arith.constant 9.99999974E-6 : f32
    %303 = vector.broadcast %cst_123 : f32 to vector<16x1xf32>
    %304 = arith.addf %302, %303 : vector<16x1xf32>
    %305 = math.rsqrt %304 : vector<16x1xf32>
    %306 = vector.broadcast %305 : vector<16x1xf32> to vector<16x32xf32>
    %307 = arith.mulf %297, %306 : vector<16x32xf32>
    %308 = vector.broadcast %14 : vector<1x32xf32> to vector<16x32xf32>
    %309 = arith.mulf %307, %308 : vector<16x32xf32>
    %310 = vector.broadcast %15 : vector<1x32xf32> to vector<16x32xf32>
    %311 = arith.addf %309, %310 : vector<16x32xf32>
    %312 = arith.truncf %311 : vector<16x32xf32> to vector<16x32xbf16>
    %c0_124 = arith.constant 0 : index
    %c0_125 = arith.constant 0 : index
    %313 = vector.load %arg14[%c0_124, %c0_125] : memref<16x32xbf16, #tpu.memory_space<vmem>>, vector<16x32xbf16>
    tpu.vector_store %arg14[%c0_124, %c0_125], %312 {strides = array<i32>} : memref<16x32xbf16, #tpu.memory_space<vmem>>, vector<16x32xbf16>,
    return
  }
  func.func @transform_0(%arg0: i32) -> (i32, i32) {
    %c0_i32 = arith.constant 0 : i32
    %c0_i32_0 = arith.constant 0 : i32
    return %arg0, %c0_i32 : i32, i32
  }
  func.func @transform_1(%arg0: i32) -> (i32, i32) {
    %c0_i32 = arith.constant 0 : i32
    %c0_i32_0 = arith.constant 0 : i32
    return %arg0, %c0_i32 : i32, i32
  }
  func.func @transform_2(%arg0: i32) -> (i32, i32, i32) {
    %c0_i32 = arith.constant 0 : i32
    %c0_i32_0 = arith.constant 0 : i32
    %c0_i32_1 = arith.constant 0 : i32
    return %arg0, %c0_i32, %c0_i32_0 : i32, i32, i32
  }
  func.func @transform_3(%arg0: i32) -> (i32, i32, i32) {
    %c0_i32 = arith.constant 0 : i32
    %c0_i32_0 = arith.constant 0 : i32
    %c0_i32_1 = arith.constant 0 : i32
    return %arg0, %c0_i32, %c0_i32_0 : i32, i32, i32
  }
  func.func @transform_4(%arg0: i32) -> (i32, i32, i32) {
    %c0_i32 = arith.constant 0 : i32
    %c0_i32_0 = arith.constant 0 : i32
    %c0_i32_1 = arith.constant 0 : i32
    return %arg0, %c0_i32, %c0_i32_0 : i32, i32, i32
  }
  func.func @transform_5(%arg0: i32) -> (i32, i32) {
    %c0_i32 = arith.constant 0 : i32
    %c0_i32_0 = arith.constant 0 : i32
    %c0_i32_1 = arith.constant 0 : i32
    return %c0_i32, %c0_i32_0 : i32, i32
  }
  func.func @transform_6(%arg0: i32) -> (i32, i32) {
    %c0_i32 = arith.constant 0 : i32
    %c0_i32_0 = arith.constant 0 : i32
    %c0_i32_1 = arith.constant 0 : i32
    return %c0_i32, %c0_i32_0 : i32, i32
  }
  func.func @transform_7(%arg0: i32) -> (i32, i32) {
    %c0_i32 = arith.constant 0 : i32
    %c0_i32_0 = arith.constant 0 : i32
    %c0_i32_1 = arith.constant 0 : i32
    return %c0_i32, %c0_i32_0 : i32, i32
  }
  func.func @transform_8(%arg0: i32) -> (i32, i32) {
    %c0_i32 = arith.constant 0 : i32
    %c0_i32_0 = arith.constant 0 : i32
    %c0_i32_1 = arith.constant 0 : i32
    return %c0_i32, %c0_i32_0 : i32, i32
  }
  func.func @transform_9(%arg0: i32) -> (i32, i32) {
    %c0_i32 = arith.constant 0 : i32
    %c0_i32_0 = arith.constant 0 : i32
    %c0_i32_1 = arith.constant 0 : i32
    return %c0_i32, %c0_i32_0 : i32, i32
  }
  func.func @transform_10(%arg0: i32) -> (i32, i32) {
    %c0_i32 = arith.constant 0 : i32
    %c0_i32_0 = arith.constant 0 : i32
    %c0_i32_1 = arith.constant 0 : i32
    return %c0_i32, %c0_i32_0 : i32, i32
  }
  func.func @transform_11(%arg0: i32) -> (i32, i32) {
    %c0_i32 = arith.constant 0 : i32
    %c0_i32_0 = arith.constant 0 : i32
    %c0_i32_1 = arith.constant 0 : i32
    return %c0_i32, %c0_i32_0 : i32, i32
  }
  func.func @transform_12(%arg0: i32) -> (i32, i32) {
    %c0_i32 = arith.constant 0 : i32
    %c0_i32_0 = arith.constant 0 : i32
    %c0_i32_1 = arith.constant 0 : i32
    return %c0_i32, %c0_i32_0 : i32, i32
  }
  func.func @transform_13(%arg0: i32) -> (i32, i32) {
    %c0_i32 = arith.constant 0 : i32
    %c0_i32_0 = arith.constant 0 : i32
    return %arg0, %c0_i32 : i32, i32
  }
}

</mosaic_0001>

<bundles_post_ra>
// kernel: forward.9
= control target key start
LH: loop header
LB: loop body
LE: loop exit
PB: predicated region body
PF: predicated region fallthrough
CT: control target
= control target key end

     0   :  { %s165_s0 = inlined_call_operand.vmem [shape: bf16[16,32], index: 0, kind: input, shape index: {}]   ;;  %s166_s1 = inlined_call_operand.vmem [shape: bf16[32,32], index: 1, kind: input, shape index: {}]   ;;  %s167_s2 = inlined_call_operand.vmem [shape: f32[1,32], index: 2, kind: input, shape index: {}]   ;;  %s168_s3 = inlined_call_operand.hbm [shape: f32[16,32], index: 3, kind: output, shape index: {}]  }
   0x1   :  { %v96_v0 = vld [vmem:[%s166_s1 + $0x8] sm:$0xff] }
   0x2   :  { %8 = vsyncpa [#allocation3], 0  ;;  %53 = vmatpush.bf16.msra.mxu0 %v96_v0  ;;  %v95_v1 = vld [vmem:[%s166_s1] sm:$0xff]  ;;  %vm43_vm0 = vcmask 261120   ;;  %s127_s20 = smov [#allocation2]   ;;  %s69_s1 = sshll.u32 %s168_s3, 4  ;;  %s70_s1 = int_to_ptr.hbm [resolvable:$true] %s69_s1 }
   0x3   :  { %v94_v2 = vld [vmem:[%s165_s0] sm:$0xff]  ;;  %s67_s21 = sshll.u32 %s127_s20, 4  ;;  %s128_s0 = smov 128   ;;  %s68_s21 = int_to_ptr.vmem [resolvable:$true] %s67_s21 }
   0x4   :  { %v100_v3 = vld [vmem:[%s167_s2] ss:$0 sm:$0xff]  ;;  %s129_s24 = smov 8  }
   0x6   :  { %54 = vmatpush.bf16.msra.mxu0 %v95_v1 }
   0x9   :  { %93 = vmatmul.msk.bf16.vlgmr.msra.gmra.mxu0 %vm43_vm0, %v94_v2 }
  0x86   :  { %v56_v4 = vpop.f32.mrf.mxu0 }
  0x87   :  { %v57_v5 = vadd.f32 %v100_v3, %v56_v4 }
  0x89   :  { %61 = vst.msk [vmem:[#allocation2] sm:$0xff] %vm43_vm0, %v57_v5 }
  0x8e   :  { %v58_v6 = vpop.f32.mrf.mxu0 }
  0x8f   :  { %v59_v7 = vadd.f32 %v100_v3, %v58_v6 }
  0x91   :  { %62 = vst.msk [vmem:[#allocation2 + $0x8] sm:$0xff] %vm43_vm0, %v59_v7 }
  0x92   :  { %75 = dma.vmem_to_hbm [thread:$0]  %s68_s21, 256, %s70_s1, [#allocation3], %s128_s0, %s128_s0, %s129_s24  }
  0x93   :  { %125 = dma.done.wait [#allocation3], 256  }
  0x94   :  { %126 = vsyncadd [#allocation3], 4294967040 }
  0x95   :  { %80 = vsyncpa [#allocation3], 1 }

// kernel: forward.5
= control target key start
LH: loop header
LB: loop body
LE: loop exit
PB: predicated region body
PF: predicated region fallthrough
CT: control target
= control target key end

     0   :  { %vm52_vm0 = vcmask 261120   ;;  %s1068_s9 = smov 96   ;;  %s1069_s10 = smov 120   ;;  %vm93_vm1 = vcmask 64512   ;;  %v1074_v46 = vmov -1e+09   ;;  %s1329_s2 = inlined_call_operand.vmem [shape: bf16[32,96], index: 2, kind: input, shape index: {}]   ;;  %s1330_s0 = inlined_call_operand.vmem [shape: bf16[16,32], index: 0, kind: input, shape index: {}]   ;;  %s1331_s6 = inlined_call_operand.vmem [shape: f32[8,96], index: 6, kind: input, shape index: {}]   ;;  %s1332_s1 = inlined_call_operand.vmem [shape: f32[2,1,8], index: 1, kind: input, shape index: {}]   ;;  %s1333_s3 = inlined_call_operand.vmem [shape: bf16[32,32], index: 3, kind: input, shape index: {}]   ;;  %s1334_s4 = inlined_call_operand.vmem [shape: bf16[32,64], index: 4, kind: input, shape index: {}]   ;;  %s1335_s5 = inlined_call_operand.vmem [shape: bf16[64,32], index: 5, kind: input, shape index: {}]   ;;  %s1336_s7 = inlined_call_operand.vmem [shape: bf16[16,32], index: 7, kind: output, shape index: {}]  }
   0x1   :  { %v999_v0 = vld [vmem:[%s1329_s2 + $0x8] sm:$0xff]  ;;  %v998_v1 = vld [vmem:[%s1329_s2] sm:$0xff]  ;;  %s1067_s2 = smov 88   ;;  %s1070_s11 = smov 80   ;;  %vm192_vm4 = vcmask 1043456  }
   0x2   :  { %62 = vmatpush.bf16.msra.mxu0 %v999_v0  ;;  %v997_v2 = vld [vmem:[%s1330_s0] sm:$0xff]  ;;  %s1071_s12 = smov 112   ;;  %s1072_s13 = smov 72  }
   0x3   :  { %v1136_v3 = vld [vmem:[%s1331_s6] sm:$0xff]  ;;  %s1073_s14 = smov 104   ;;  %s1076_s19 = smov 64  }
   0x4   :  { %v34_v4 = vperm.slane %v1136_v3, 0  ;;  %v70_v45 = vld [vmem:[%s1332_s1] sm:$0x1]  ;;  %v71_v53 = vld [vmem:[%s1332_s1 + $0x1] sm:$0x1]  ;;  %s1075_s1 = smov 56  }
   0x5   :  { %vm72_vm2 = vcmp.gt.f32.partialorder %v70_v45, 0.5  ;;  %vm73_vm3 = vcmp.gt.f32.partialorder %v71_v53, 0.5  ;;  %s1077_s20 = smov 40   ;;  %s1078_s21 = smov 48  }
   0x6   :  { %63 = vmatpush.bf16.msra.mxu0 %v998_v1  ;;  %v74_v47 = vsel %vm72_vm2, 0.0, %v1074_v46  ;;  %v75_v58 = vsel %vm73_vm3, 0.0, %v1074_v46  ;;  %s1079_s22 = smov 8   ;;  %s1080_s23 = smov 16  }
   0x7   :  { %v84_v48 = vperm.slane %v74_v47, 0  ;;  %v85_v59 = vperm.slane %v75_v58, 0  ;;  %s1081_s24 = smov 24  }
   0x9   :  { %945 = vmatmul.msk.bf16.vlgmr.msra.gmra.mxu0 %vm52_vm0, %v997_v2 }
  0x86   :  { %v65_v5 = vpop.f32.mrf.mxu0 }
  0x87   :  { %v66_v6 = vadd.f32 %v65_v5, %v34_v4 }
  0x89   :  { %v76_v7 = vmul.f32 0.35355338, %v66_v6  ;;  %v80_v8 = vpack.c.bf16 %v66_v6, %v66_v6 }
  0x8b   :  { %v78_v9 = vpack.c.bf16 %v76_v7, %v76_v7  ;;  %v89_v10 = vunpack.c.l.b16 %v80_v8 }
  0x8d   :  { %v1139_v11 = vpack.c.b16 %v89_v10, %v89_v10  ;;  %v233_v12 = vunpack.c.l.b16 %v78_v9 }
  0x8e   :  { %v67_v13 = vpop.f32.mrf.mxu0 }
  0x8f   :  { %v68_v14 = vadd.f32 %v67_v13, %v34_v4  ;;  %237 = vrot.lane.b32.xlu1 %v1139_v11, %s1067_s2  ;;  %91 = vrot.lane.b32.xlu0 %v1139_v11, %s1068_s9  ;;  %v234_v15 = vpack.c.b16 %v233_v12, %v233_v12 }
  0x91   :  { %v77_v16 = vmul.f32 0.35355338, %v68_v14  ;;  %v81_v17 = vpack.c.bf16 %v68_v14, %v68_v14  ;;  %235 = vrot.lane.b32.xlu2 %v234_v15, %s1069_s10 }
  0x93   :  { %v79_v18 = vpack.c.bf16 %v77_v16, %v77_v16  ;;  %v114_v19 = vunpack.c.l.b16 %v81_v17 }
  0x95   :  { %v1143_v20 = vpack.c.b16 %v114_v19, %v114_v19  ;;  %v259_v21 = vunpack.c.l.b16 %v79_v18 }
  0x97   :  { %263 = vrot.lane.b32.xlu1 %v1143_v20, %s1067_s2  ;;  %116 = vrot.lane.b32.xlu0 %v1143_v20, %s1068_s9  ;;  %v260_v22 = vpack.c.b16 %v259_v21, %v259_v21 }
  0x99   :  { %261 = vrot.lane.b32.xlu2 %v260_v22, %s1069_s10 }
  0x9f   :  { %412 = vrot.lane.b32.xlu1 %v1143_v20, %s1070_s11  ;;  %389 = vrot.lane.b32.xlu0 %v1139_v11, %s1070_s11 }
  0xa1   :  { %387 = vrot.lane.b32.xlu2 %v234_v15, %s1071_s12 }
  0xa7   :  { %538 = vrot.lane.b32.xlu1 %v1139_v11, %s1072_s13  ;;  %410 = vrot.lane.b32.xlu0 %v260_v22, %s1071_s12 }
  0xa9   :  { %561 = vrot.lane.b32.xlu2 %v1143_v20, %s1072_s13 }
  0xaf   :  { %559 = vrot.lane.b32.xlu1 %v260_v22, %s1073_s14  ;;  %536 = vrot.lane.b32.xlu0 %v234_v15, %s1073_s14 }
  0xeb   :  { %v236_v23 = vpop.permute.xlu2 %235 }
  0xf3   :  { %v262_v28 = vpop.permute.xlu2 %261 }
  0xfb   :  { %v388_v33 = vpop.permute.xlu2 %387 }
 0x101   :  { %v238_v24 = vpop.permute.xlu1 %237  ;;  %v92_v25 = vpop.permute.xlu0 %91 }
 0x102   :  { %v98_v26 = vsel %vm93_vm1, %v92_v25, 0  ;;  %v243_v27 = vsel %vm93_vm1, %v238_v24, 0 }
 0x103   :  { %107 = vmatpush.bf16.xpose.msra.mxu1 %v98_v26  ;;  %252 = vmatpush.bf16.xpose.msrb.mxu0 %v243_v27  ;;  %v562_v38 = vpop.permute.xlu2 %561 }
 0x104   :  { %v567_v40 = vsel %vm93_vm1, %v562_v38, 0 }
 0x109   :  { %v264_v29 = vpop.permute.xlu1 %263  ;;  %v117_v30 = vpop.permute.xlu0 %116 }
 0x10a   :  { %946 = vmatmul.msk.bf16.vlgmr.msra.gmra.mxu1 %vm93_vm1, %v78_v9  ;;  %950 = vmatmul.msk.bf16.vlgmr.msrb.gmra.mxu0 %vm93_vm1, %v236_v23  ;;  %v122_v31 = vsel %vm93_vm1, %v117_v30, 0  ;;  %v269_v32 = vsel %vm93_vm1, %v264_v29, 0 }
 0x10b   :  { %131 = vmatpush.bf16.xpose.msra.mxu2 %v122_v31  ;;  %278 = vmatpush.bf16.xpose.msrb.mxu1 %v269_v32 }
 0x111   :  { %v413_v34 = vpop.permute.xlu1 %412  ;;  %v390_v35 = vpop.permute.xlu0 %389 }
 0x112   :  { %v418_v36 = vsel %vm93_vm1, %v413_v34, 0  ;;  %v395_v37 = vsel %vm93_vm1, %v390_v35, 0  ;;  %947 = vmatmul.msk.bf16.vlgmr.msra.gmra.mxu2 %vm93_vm1, %v79_v18 }
 0x113   :  { %404 = vmatpush.bf16.xpose.msra.mxu0 %v395_v37  ;;  %427 = vmatpush.bf16.xpose.msra.mxu1 %v418_v36 }
 0x119   :  { %v539_v39 = vpop.permute.xlu1 %538  ;;  %v411_v42 = vpop.permute.xlu0 %410 }
 0x11a   :  { %v544_v41 = vsel %vm93_vm1, %v539_v39, 0  ;;  %951 = vmatmul.msk.bf16.vlgmr.msrb.gmra.mxu1 %vm93_vm1, %v262_v28  ;;  %954 = vmatmul.msk.bf16.vlgmr.msra.gmra.mxu0 %vm93_vm1, %v388_v33 }
 0x11b   :  { %576 = vmatpush.bf16.xpose.msrb.mxu1 %v567_v40  ;;  %553 = vmatpush.bf16.xpose.msrb.mxu0 %v544_v41 }
 0x121   :  { %v537_v43 = vpop.permute.xlu0 %536  ;;  %v560_v44 = vpop.permute.xlu1 %559 }
 0x12a   :  { %955 = vmatmul.msk.bf16.vlgmr.msra.gmra.mxu1 %vm93_vm1, %v411_v42  ;;  %958 = vmatmul.msk.bf16.vlgmr.msrb.gmra.mxu0 %vm93_vm1, %v537_v43 }
 0x13a   :  { %959 = vmatmul.msk.bf16.vlgmr.msrb.gmra.mxu1 %vm93_vm1, %v560_v44 }
 0x187   :  { %v109_v49 = vpop.f32.mrf.mxu1  ;;  %v254_v50 = vpop.f32.mrf.mxu0 }
 0x188   :  { %v110_v51 = vadd.f32 %v109_v49, %v84_v48  ;;  %v255_v52 = vadd.f32 %v254_v50, %v84_v48 }
 0x18a   :  { %v284_v54 = vsel %vm93_vm1, %v255_v52, -inf  ;;  %v137_v55 = vsel %vm93_vm1, %v110_v51, -inf }
 0x18b   :  { %285 = vmax.xlane.f32.xlu1 %v284_v54  ;;  %138 = vmax.xlane.f32.xlu2 %v137_v55 }
 0x18f   :  { %v111_v56 = vpop.f32.mrf.mxu1  ;;  %v256_v57 = vpop.f32.mrf.mxu0 }
 0x195   :  { %v133_v60 = vpop.f32.mrf.mxu2 }
 0x196   :  { %v134_v61 = vadd.f32 %v133_v60, %v85_v59 }
 0x197   :  { %v280_v62 = vpop.f32.mrf.mxu1  ;;  %v406_v63 = vpop.f32.mrf.mxu0 }
 0x198   :  { %v281_v0 = vadd.f32 %v280_v62, %v85_v59  ;;  %v1175_v1 = vadd.f32 %v406_v63, %v84_v48  ;;  %v140_v2 = vsel %vm93_vm1, %v134_v61, -inf }
 0x199   :  { %141 = vmax.xlane.f32.xlu0 %v140_v2 }
 0x19a   :  { %v287_v4 = vsel %vm93_vm1, %v281_v0, -inf  ;;  %v433_v19 = vsel %vm93_vm1, %v1175_v1, -inf }
 0x19b   :  { %288 = vmax.xlane.f32.xlu2 %v287_v4 }
 0x19d   :  { %v135_v5 = vpop.f32.mrf.mxu2 }
 0x19f   :  { %v282_v6 = vpop.f32.mrf.mxu1  ;;  %v408_v7 = vpop.f32.mrf.mxu0 }
 0x1a4   :  { %355 = vrot.lane.b32.xlu1 %v1143_v20, %s1075_s1 }
 0x1a7   :  { %v429_v8 = vpop.f32.mrf.mxu1  ;;  %v555_v9 = vpop.f32.mrf.mxu0 }
 0x1a8   :  { %v1180_v10 = vadd.f32 %v429_v8, %v85_v59  ;;  %v556_v21 = vadd.f32 %v555_v9, %v84_v48 }
 0x1aa   :  { %v436_v12 = vsel %vm93_vm1, %v1180_v10, -inf  ;;  %v582_v22 = vsel %vm93_vm1, %v556_v21, -inf }
 0x1ab   :  { %437 = vmax.xlane.f32.xlu0 %v436_v12 }
 0x1af   :  { %v431_v13 = vpop.f32.mrf.mxu1  ;;  %v557_v14 = vpop.f32.mrf.mxu0 }
 0x1b3   :  { %187 = vrot.lane.b32.xlu2 %v1139_v11, %s1076_s19 }
 0x1b7   :  { %v578_v15 = vpop.f32.mrf.mxu1 }
 0x1b8   :  { %v579_v16 = vadd.f32 %v578_v15, %v85_v59 }
 0x1ba   :  { %v585_v17 = vsel %vm93_vm1, %v579_v16, -inf }
 0x1bb   :  { %586 = vmax.xlane.f32.xlu0 %v585_v17 }
 0x1bf   :  { %v580_v18 = vpop.f32.mrf.mxu1 }
 0x1cf   :  { %209 = vrot.lane.b32.xlu0 %v1143_v20, %s1076_s19 }
 0x1dc   :  { %434 = vmax.xlane.f32.xlu2 %v433_v19 }
 0x1e4   :  { %583 = vmax.xlane.f32.xlu2 %v582_v22 }
 0x1fc   :  { %334 = vrot.lane.b32.xlu2 %v1139_v11, %s1075_s1 }
 0x1fe   :  { %v286_v23 = vpop.xlane.xlu1 %285  ;;  %v139_v24 = vpop.xlane.xlu2 %138 }
 0x1ff   :  { %v290_v25 = vsub.f32 %v255_v52, %v286_v23  ;;  %v143_v26 = vsub.f32 %v110_v51, %v139_v24 }
 0x201   :  { %v292_v27 = vmul.f32 1.442695, %v290_v25  ;;  %v145_v28 = vmul.f32 1.442695, %v143_v26 }
 0x203   :  { %1024 = vpow2.f32 %v292_v27 }
 0x204   :  { %1026 = vpow2.f32 %v145_v28 }
 0x209   :  { %v1191_v29 = vpop.eup %1024 }
 0x20a   :  { %v1193_v30 = vpop.eup %1026  ;;  %v296_v31 = vsel %vm93_vm1, %v1191_v29, 0.0 }
 0x20b   :  { %297 = vadd.xlane.f32.xlu0 %v296_v31  ;;  %v149_v32 = vsel %vm93_vm1, %v1193_v30, 0.0 }
 0x20c   :  { %150 = vadd.xlane.f32.xlu1 %v149_v32  ;;  %v142_v33 = vpop.xlane.xlu0 %141 }
 0x20d   :  { %v144_v34 = vsub.f32 %v134_v61, %v142_v33 }
 0x20e   :  { %v289_v35 = vpop.xlane.xlu2 %288 }
 0x20f   :  { %v147_v36 = vmul.f32 1.442695, %v144_v34  ;;  %v291_v37 = vsub.f32 %v281_v0, %v289_v35 }
 0x211   :  { %1028 = vpow2.f32 %v147_v36  ;;  %v294_v38 = vmul.f32 1.442695, %v291_v37 }
 0x213   :  { %1030 = vpow2.f32 %v294_v38 }
 0x216   :  { %v188_v39 = vpop.permute.xlu2 %187  ;;  %v356_v6 = vpop.permute.xlu1 %355 }
 0x217   :  { %v1199_v40 = vpop.eup %1028  ;;  %v194_v41 = vsel %vm192_vm4, %v188_v39, 0 }
 0x218   :  { %203 = vmatpush.bf16.msra.mxu3 %v194_v41  ;;  %v152_v42 = vsel %vm93_vm1, %v1199_v40, 0.0 }
 0x219   :  { %153 = vadd.xlane.f32.xlu1 %v152_v42  ;;  %v1204_v43 = vpop.eup %1030 }
 0x21a   :  { %v299_v44 = vsel %vm93_vm1, %v1204_v43, 0.0 }
 0x21e   :  { %v438_v45 = vpop.xlane.xlu0 %437 }
 0x21f   :  { %v440_v55 = vsub.f32 %v1180_v10, %v438_v45 }
 0x221   :  { %300 = vadd.xlane.f32.xlu1 %v299_v44  ;;  %v443_v57 = vmul.f32 1.442695, %v440_v55 }
 0x22e   :  { %v587_v46 = vpop.xlane.xlu0 %586 }
 0x22f   :  { %v589_v47 = vsub.f32 %v579_v16, %v587_v46 }
 0x231   :  { %v592_v48 = vmul.f32 1.442695, %v589_v47 }
 0x233   :  { %1032 = vpow2.f32 %v592_v48 }
 0x239   :  { %v1208_v49 = vpop.eup %1032 }
 0x23a   :  { %v597_v50 = vsel %vm93_vm1, %v1208_v49, 0.0 }
 0x23b   :  { %598 = vadd.xlane.f32.xlu2 %v597_v50 }
 0x241   :  { %v210_v51 = vpop.permute.xlu0 %209 }
 0x242   :  { %v215_v52 = vsel %vm192_vm4, %v210_v51, 0 }
 0x243   :  { %224 = vmatpush.bf16.msrb.mxu3 %v215_v52 }
 0x24f   :  { %v435_v53 = vpop.xlane.xlu2 %434 }
 0x250   :  { %v439_v54 = vsub.f32 %v1175_v1, %v435_v53 }
 0x252   :  { %v441_v56 = vmul.f32 1.442695, %v439_v54 }
 0x254   :  { %1034 = vpow2.f32 %v441_v56 }
 0x255   :  { %1036 = vpow2.f32 %v443_v57 }
 0x257   :  { %v584_v58 = vpop.xlane.xlu2 %583 }
 0x258   :  { %v588_v59 = vsub.f32 %v556_v21, %v584_v58 }
 0x25a   :  { %v1215_v60 = vpop.eup %1034  ;;  %v590_v61 = vmul.f32 1.442695, %v588_v59 }
 0x25b   :  { %v445_v62 = vsel %vm93_vm1, %v1215_v60, 0.0  ;;  %v1219_v0 = vpop.eup %1036 }
 0x25c   :  { %1038 = vpow2.f32 %v590_v61  ;;  %446 = vadd.xlane.f32.xlu1 %v445_v62  ;;  %v448_v4 = vsel %vm93_vm1, %v1219_v0, 0.0 }
 0x25f   :  { %v335_v63 = vpop.permute.xlu2 %334 }
 0x260   :  { %v340_v1 = vsel %vm192_vm4, %v335_v63, 0 }
 0x261   :  { %349 = vmatpush.bf16.msrb.mxu2 %v340_v1 }
 0x262   :  { %v1222_v2 = vpop.eup %1038 }
 0x263   :  { %v594_v5 = vsel %vm93_vm1, %v1222_v2, 0.0 }
 0x264   :  { %449 = vadd.xlane.f32.xlu1 %v448_v4  ;;  %595 = vadd.xlane.f32.xlu0 %v594_v5 }
 0x278   :  { %653 = vrot.lane.b32.xlu0 %v1143_v20, %s1077_s20 }
 0x27d   :  { %483 = vrot.lane.b32.xlu1 %v1139_v11, %s1078_s21 }
 0x27e   :  { %v298_v7 = vpop.xlane.xlu0 %297 }
 0x27f   :  { %1040 = vrcp.f32 %v298_v7  ;;  %v151_v8 = vpop.xlane.xlu1 %150  ;;  %v313_v15 = vand.u32 2147483648, %v298_v7  ;;  %v311_v18 = vand.u32 2147483647, %v298_v7  ;;  %vm307_vm6 = vweird.f32 %v298_v7 }
 0x280   :  { %1042 = vrcp.f32 %v151_v8  ;;  %v166_v21 = vand.u32 2147483648, %v151_v8  ;;  %v164_v24 = vand.u32 2147483647, %v151_v8  ;;  %vm160_vm10 = vweird.f32 %v151_v8 }
 0x281   :  { %v314_v25 = vor.u32 1.1754944e-38, %v313_v15  ;;  %vm312_vm9 = vcmp.eq.f32.partialorder %v311_v18, 8.507059e+37 }
 0x282   :  { %v167_v27 = vor.u32 1.1754944e-38, %v166_v21  ;;  %vm165_vm12 = vcmp.eq.f32.partialorder %v164_v24, 8.507059e+37 }
 0x285   :  { %v1041_v9 = vpop.eup %1040  ;;  %504 = vrot.lane.b32.xlu1 %v1143_v20, %s1078_s21 }
 0x286   :  { %v1043_v10 = vpop.eup %1042  ;;  %v303_v12 = vmul.f32 %v1041_v9, %v298_v7  ;;  %vm308_vm5 = vweird.f32 %v1041_v9 }
 0x287   :  { %v156_v13 = vmul.f32 %v1043_v10, %v151_v8  ;;  %vm161_vm7 = vweird.f32 %v1043_v10  ;;  %vm309_vm8 = vmor %vm307_vm6, %vm308_vm5 }
 0x288   :  { %v304_v14 = vsub.f32 1.0, %v303_v12  ;;  %vm162_vm11 = vmor %vm160_vm10, %vm161_vm7 }
 0x289   :  { %v157_v16 = vsub.f32 1.0, %v156_v13 }
 0x28a   :  { %v305_v17 = vmul.f32 %v1041_v9, %v304_v14 }
 0x28b   :  { %v158_v19 = vmul.f32 %v1043_v10, %v157_v16 }
 0x28c   :  { %v306_v22 = vadd.f32 %v1041_v9, %v305_v17  ;;  %v154_v23 = vpop.xlane.xlu1 %153 }
 0x28d   :  { %1044 = vrcp.f32 %v154_v23  ;;  %632 = vrot.lane.b32.xlu1 %v1139_v11, %s1077_s20  ;;  %v159_v20 = vadd.f32 %v1043_v10, %v158_v19  ;;  %v361_v11 = vsel %vm192_vm4, %v356_v6, 0  ;;  %v181_v42 = vand.u32 2147483648, %v154_v23 }
 0x28e   :  { %v310_v26 = vsel %vm309_vm8, %v1041_v9, %v306_v22  ;;  %vm175_vm14 = vweird.f32 %v154_v23 }
 0x28f   :  { %v315_v28 = vsel %vm312_vm9, %v314_v25, %v310_v26  ;;  %v163_v31 = vsel %vm162_vm11, %v1043_v10, %v159_v20  ;;  %v182_v46 = vor.u32 1.1754944e-38, %v181_v42 }
 0x290   :  { %v316_v32 = vmul.f32 %v1191_v29, %v315_v28  ;;  %v168_v33 = vsel %vm165_vm12, %v167_v27, %v163_v31  ;;  %v179_v29 = vand.u32 2147483647, %v154_v23 }
 0x291   :  { %v169_v34 = vmul.f32 %v1193_v30, %v168_v33 }
 0x292   :  { %v332_v35 = vpack.c.bf16 %v316_v32, %v316_v32  ;;  %vm180_vm2 = vcmp.eq.f32.partialorder %v179_v29, 8.507059e+37 }
 0x293   :  { %v1045_v36 = vpop.eup %1044  ;;  %v185_v39 = vpack.c.bf16 %v169_v34, %v169_v34 }
 0x294   :  { %v171_v37 = vmul.f32 %v1045_v36, %v154_v23  ;;  %v301_v38 = vpop.xlane.xlu1 %300  ;;  %952 = vmatmul.msk.bf16.vlgmr.msrb.gmra.mxu2 %vm93_vm1, %v332_v35  ;;  %vm176_vm13 = vweird.f32 %v1045_v36 }
 0x295   :  { %1046 = vrcp.f32 %v301_v38  ;;  %948 = vmatmul.msk.bf16.vlgmr.msra.gmra.mxu3 %vm93_vm1, %v185_v39  ;;  %vm177_vm15 = vmor %vm175_vm14, %vm176_vm13  ;;  %v328_v56 = vand.u32 2147483648, %v301_v38  ;;  %vm322_vm5 = vweird.f32 %v301_v38  ;;  %v326_v57 = vand.u32 2147483647, %v301_v38 }
 0x296   :  { %v172_v41 = vsub.f32 1.0, %v171_v37  ;;  %370 = vmatpush.bf16.msra.mxu3 %v361_v11 }
 0x297   :  { %v329_v59 = vor.u32 1.1754944e-38, %v328_v56  ;;  %vm327_vm7 = vcmp.eq.f32.partialorder %v326_v57, 8.507059e+37 }
 0x298   :  { %v173_v44 = vmul.f32 %v1045_v36, %v172_v41 }
 0x29a   :  { %v174_v45 = vadd.f32 %v1045_v36, %v173_v44 }
 0x29b   :  { %v1047_v30 = vpop.eup %1046 }
 0x29c   :  { %v318_v47 = vmul.f32 %v1047_v30, %v301_v38  ;;  %v178_v48 = vsel %vm177_vm15, %v1045_v36, %v174_v45  ;;  %vm323_vm3 = vweird.f32 %v1047_v30 }
 0x29d   :  { %v183_v50 = vsel %vm180_vm2, %v182_v46, %v178_v48  ;;  %vm324_vm6 = vmor %vm322_vm5, %vm323_vm3 }
 0x29e   :  { %v319_v51 = vsub.f32 1.0, %v318_v47  ;;  %v184_v52 = vmul.f32 %v1199_v40, %v183_v50 }
 0x2a0   :  { %v320_v53 = vmul.f32 %v1047_v30, %v319_v51  ;;  %v186_v54 = vpack.c.bf16 %v184_v52, %v184_v52 }
 0x2a2   :  { %v321_v55 = vadd.f32 %v1047_v30, %v320_v53 }
 0x2a4   :  { %v325_v58 = vsel %vm324_vm6, %v1047_v30, %v321_v55 }
 0x2a5   :  { %949 = vmatmul.msk.bf16.vlgmr.msrb.gmra.mxu3 %vm93_vm1, %v186_v54  ;;  %v330_v61 = vsel %vm327_vm7, %v329_v59, %v325_v58 }
 0x2a6   :  { %v331_v62 = vmul.f32 %v1204_v43, %v330_v61 }
 0x2a8   :  { %v333_v63 = vpack.c.bf16 %v331_v62, %v331_v62 }
 0x2ae   :  { %v1241_v12 = vpop.xlane.xlu2 %598 }
 0x2af   :  { %v624_v52 = vand.u32 2147483647, %v1241_v12 }
 0x2b5   :  { %953 = vmatmul.msk.bf16.vlgmr.msra.gmra.mxu3 %vm93_vm1, %v333_v63 }
 0x2cf   :  { %v447_v40 = vpop.xlane.xlu1 %446 }
 0x2d0   :  { %1048 = vrcp.f32 %v447_v40  ;;  %v462_v15 = vand.u32 2147483648, %v447_v40  ;;  %vm456_vm9 = vweird.f32 %v447_v40  ;;  %v460_v16 = vand.u32 2147483647, %v447_v40 }
 0x2d2   :  { %v463_v21 = vor.u32 1.1754944e-38, %v462_v15  ;;  %vm461_vm11 = vcmp.eq.f32.partialorder %v460_v16, 8.507059e+37  ;;  %v1001_v16 = vld [vmem:[%s1333_s3 + $0x8] sm:$0xff] }
 0x2d3   :  { %714 = vmatpush.bf16.msra.mxu0 %v1001_v16  ;;  %v780_v16 = vperm.slane %v1136_v3, 3 }
 0x2d6   :  { %v1049_v1 = vpop.eup %1048 }
 0x2d7   :  { %v450_v4 = vpop.xlane.xlu1 %449  ;;  %v452_v5 = vmul.f32 %v1049_v1, %v447_v40  ;;  %v596_v7 = vpop.xlane.xlu0 %595  ;;  %vm457_vm8 = vweird.f32 %v1049_v1 }
 0x2d8   :  { %1050 = vrcp.f32 %v450_v4  ;;  %vm458_vm10 = vmor %vm456_vm9, %vm457_vm8  ;;  %v477_v20 = vand.u32 2147483648, %v450_v4  ;;  %vm471_vm13 = vweird.f32 %v450_v4  ;;  %v475_v27 = vand.u32 2147483647, %v450_v4 }
 0x2d9   :  { %v453_v6 = vsub.f32 1.0, %v452_v5  ;;  %1052 = vrcp.f32 %v596_v7  ;;  %vm605_vm3 = vweird.f32 %v596_v7  ;;  %v609_v41 = vand.u32 2147483647, %v596_v7 }
 0x2da   :  { %1054 = vrcp.f32 %v1241_v12  ;;  %v478_v35 = vor.u32 1.1754944e-38, %v477_v20  ;;  %vm476_vm15 = vcmp.eq.f32.partialorder %v475_v27, 8.507059e+37  ;;  %vm620_vm8 = vweird.f32 %v1241_v12 }
 0x2db   :  { %v454_v9 = vmul.f32 %v1049_v1, %v453_v6  ;;  %vm610_vm6 = vcmp.eq.f32.partialorder %v609_v41, 8.507059e+37  ;;  %v692_v27 = vperm.slane %v1136_v3, 1 }
 0x2dd   :  { %v455_v13 = vadd.f32 %v1049_v1, %v454_v9 }
 0x2de   :  { %v1051_v8 = vpop.eup %1050 }
 0x2df   :  { %v467_v10 = vmul.f32 %v1051_v8, %v450_v4  ;;  %v1053_v14 = vpop.eup %1052  ;;  %v459_v17 = vsel %vm458_vm10, %v1049_v1, %v455_v13  ;;  %vm472_vm12 = vweird.f32 %v1051_v8  ;;  %vm625_vm10 = vcmp.eq.f32.partialorder %v624_v52, 8.507059e+37 }
 0x2e0   :  { %v601_v19 = vmul.f32 %v1053_v14, %v596_v7  ;;  %v464_v22 = vsel %vm461_vm11, %v463_v21, %v459_v17  ;;  %v1055_v25 = vpop.eup %1054  ;;  %vm473_vm14 = vmor %vm471_vm13, %vm472_vm12  ;;  %vm606_vm2 = vweird.f32 %v1053_v14  ;;  %v1000_v17 = vld [vmem:[%s1333_s3] sm:$0xff]  ;;  %vm682_vm11 = vcmask 261312  }
 0x2e1   :  { %v468_v43 = vsub.f32 1.0, %v467_v10  ;;  %v465_v26 = vmul.f32 %v1215_v60, %v464_v22  ;;  %v616_v31 = vmul.f32 %v1055_v25, %v1241_v12  ;;  %v611_v60 = vand.u32 2147483648, %v596_v7  ;;  %vm607_vm5 = vmor %vm605_vm3, %vm606_vm2  ;;  %715 = vmatpush.bf16.msra.mxu0 %v1000_v17 }
 0x2e2   :  { %v602_v24 = vsub.f32 1.0, %v601_v19  ;;  %vm621_vm7 = vweird.f32 %v1055_v25 }
 0x2e3   :  { %v469_v18 = vmul.f32 %v1051_v8, %v468_v43  ;;  %v481_v36 = vpack.c.bf16 %v465_v26, %v465_v26  ;;  %v617_v38 = vsub.f32 1.0, %v616_v31  ;;  %v612_v46 = vor.u32 1.1754944e-38, %v611_v60  ;;  %vm622_vm9 = vmor %vm620_vm8, %vm621_vm7  ;;  %v27_v26 = vld [vmem:[%s1330_s0] sm:$0xff]  }
 0x2e4   :  { %v603_v33 = vmul.f32 %v1053_v14, %v602_v24  ;;  %v1082_v60 = vmov 32.0  }
 0x2e5   :  { %v470_v23 = vadd.f32 %v1051_v8, %v469_v18  ;;  %v618_v29 = vmul.f32 %v1055_v25, %v617_v38  ;;  %1056 = vrcp.f32 %v1082_v60 }
 0x2e6   :  { %v604_v39 = vadd.f32 %v1053_v14, %v603_v33 }
 0x2e7   :  { %v474_v32 = vsel %vm473_vm14, %v1051_v8, %v470_v23  ;;  %v619_v51 = vadd.f32 %v1055_v25, %v618_v29 }
 0x2e8   :  { %v479_v37 = vsel %vm476_vm15, %v478_v35, %v474_v32  ;;  %v608_v45 = vsel %vm607_vm5, %v1053_v14, %v604_v39  ;;  %v723_v35 = vunpack.c.h.bf16 %v27_v26 }
 0x2e9   :  { %v480_v11 = vmul.f32 %v1219_v0, %v479_v37  ;;  %v613_v50 = vsel %vm610_vm6, %v612_v46, %v608_v45  ;;  %v626_v0 = vand.u32 2147483648, %v1241_v12  ;;  %v623_v55 = vsel %vm622_vm9, %v1055_v25, %v619_v51 }
 0x2ea   :  { %v654_v42 = vpop.permute.xlu0 %653  ;;  %v614_v53 = vmul.f32 %v1222_v2, %v613_v50  ;;  %vm854_vm6 = vcmask 523264  }
 0x2eb   :  { %v659_v47 = vsel %vm192_vm4, %v654_v42, 0  ;;  %v482_v48 = vpack.c.bf16 %v480_v11, %v480_v11  ;;  %v627_v57 = vor.u32 1.1754944e-38, %v626_v0  ;;  %v1057_v11 = vpop.eup %1056 }
 0x2ec   :  { %v630_v58 = vpack.c.bf16 %v614_v53, %v614_v53  ;;  %v733_v41 = vmul.f32 32.0, %v1057_v11  ;;  %vm737_vm12 = vweird.f32 %v1057_v11 }
 0x2ed   :  { %v628_v59 = vsel %vm625_vm10, %v627_v57, %v623_v55  ;;  %vm926_vm10 = vcmask 257024  }
 0x2ee   :  { %v629_v61 = vmul.f32 %v1208_v49, %v628_v59  ;;  %v734_v42 = vsub.f32 1.0, %v733_v41  ;;  %v1002_v59 = vld [vmem:[%s1334_s4] sm:$0xff] }
 0x2ef   :  { %v484_v28 = vpop.permute.xlu1 %483 }
 0x2f0   :  { %v489_v34 = vsel %vm192_vm4, %v484_v28, 0  ;;  %v631_v62 = vpack.c.bf16 %v629_v61, %v629_v61  ;;  %v722_v28 = vunpack.c.l.bf16 %v27_v26 }
 0x2f1   :  { %498 = vmatpush.bf16.msra.mxu2 %v489_v34 }
 0x2f4   :  { %956 = vmatmul.msk.bf16.vlgmr.msra.gmra.mxu2 %vm93_vm1, %v481_v36 }
 0x2f7   :  { %v505_v44 = vpop.permute.xlu1 %504 }
 0x2f8   :  { %v510_v30 = vsel %vm192_vm4, %v505_v44, 0  ;;  %v735_v44 = vmul.f32 %v1057_v11, %v734_v42 }
 0x2f9   :  { %519 = vmatpush.bf16.msrb.mxu3 %v510_v30 }
 0x2fa   :  { %v736_v29 = vadd.f32 %v1057_v11, %v735_v44 }
 0x2fc   :  { %957 = vmatmul.msk.bf16.vlgmr.msrb.gmra.mxu3 %vm93_vm1, %v482_v48  ;;  %v1277_v45 = vsel %vm737_vm12, %v1057_v11, %v736_v29 }
 0x2fd   :  { %668 = vmatpush.bf16.msra.mxu3 %v659_v47 }
 0x2ff   :  { %v633_v54 = vpop.permute.xlu1 %632 }
 0x300   :  { %v638_v56 = vsel %vm192_vm4, %v633_v54, 0  ;;  %vm384_vm4 = vcmask 130112  }
 0x301   :  { %647 = vmatpush.bf16.msrb.mxu2 %v638_v56  ;;  %v1003_v56 = vld [vmem:[%s1334_s4 + $0x8] sm:$0xff] }
 0x302   :  { %810 = vmatpush.bf16.msra.mxu1 %v1003_v56 }
 0x304   :  { %960 = vmatmul.msk.bf16.vlgmr.msrb.gmra.mxu2 %vm93_vm1, %v630_v58 }
 0x306   :  { %811 = vmatpush.bf16.msra.mxu1 %v1002_v59 }
 0x30c   :  { %961 = vmatmul.msk.bf16.vlgmr.msra.gmra.mxu3 %vm93_vm1, %v631_v62 }
 0x317   :  { %v351_v63 = vpop.f32.mrf.mxu2 }
 0x318   :  { %378 = vrot.lane.b32.xlu2 %v351_v63, %s1079_s22  ;;  %v205_v2 = vpop.f32.mrf.mxu3 }
 0x319   :  { %230 = vst.msk [vmem:[#allocation2] sm:$0xff] %vm93_vm1, %v205_v2 }
 0x31f   :  { %v353_v40 = vpop.f32.mrf.mxu2 }
 0x320   :  { %v207_v1 = vpop.f32.mrf.mxu3 }
 0x328   :  { %v226_v4 = vpop.f32.mrf.mxu3 }
 0x329   :  { %231 = vst.msk [vmem:[#allocation2 + $0x8] sm:$0xff] %vm93_vm1, %v226_v4  ;;  %vm533_vm1 = vcmask 195712  }
 0x330   :  { %v228_v5 = vpop.f32.mrf.mxu3 }
 0x338   :  { %v372_v6 = vpop.f32.mrf.mxu3 }
 0x340   :  { %v374_v7 = vpop.f32.mrf.mxu3 }
 0x372   :  { %v379_v8 = vpop.permute.xlu2 %378 }
 0x373   :  { %385 = vst.msk [vmem:[#allocation2] sm:$0xff] %vm384_vm4, %v379_v8 }
 0x377   :  { %v500_v49 = vpop.f32.mrf.mxu2 }
 0x378   :  { %527 = vrot.lane.b32.xlu1 %v500_v49, %s1080_s23 }
 0x37f   :  { %v502_v9 = vpop.f32.mrf.mxu2  ;;  %v521_v10 = vpop.f32.mrf.mxu3 }
 0x380   :  { %380 = vrot.lane.b32.xlu1 %v372_v6, %s1079_s22 }
 0x387   :  { %v523_v12 = vpop.f32.mrf.mxu3  ;;  %v649_v13 = vpop.f32.mrf.mxu2 }
 0x388   :  { %529 = vrot.lane.b32.xlu1 %v521_v10, %s1080_s23  ;;  %676 = vrot.lane.b32.xlu0 %v649_v13, %s1081_s24  ;;  %v777_v13 = vperm.slane %v1136_v3, 2  ;;  %v1005_v3 = vld [vmem:[%s1335_s5 + $0x8] sm:$0xff] }
 0x38f   :  { %v651_v43 = vpop.f32.mrf.mxu2  ;;  %v670_v14 = vpop.f32.mrf.mxu3 }
 0x390   :  { %678 = vrot.lane.b32.xlu2 %v670_v14, %s1081_s24 }
 0x397   :  { %v672_v15 = vpop.f32.mrf.mxu3 }
 0x3ea   :  { %v528_v18 = vpop.permute.xlu1 %527  ;;  %v679_v23 = vpop.permute.xlu2 %678 }
 0x3eb   :  { %534 = vst.msk [vmem:[#allocation2] sm:$0xff] %vm533_vm1, %v528_v18 }
 0x3f2   :  { %v381_v19 = vpop.permute.xlu1 %380 }
 0x3f3   :  { %386 = vst.msk [vmem:[#allocation2 + $0x8] sm:$0xff] %vm384_vm4, %v381_v19 }
 0x3fa   :  { %v530_v21 = vpop.permute.xlu1 %529  ;;  %v677_v22 = vpop.permute.xlu0 %676 }
 0x3fb   :  { %535 = vst.msk [vmem:[#allocation2 + $0x8] sm:$0xff] %vm533_vm1, %v530_v21 }
 0x3fc   :  { %684 = vst.msk [vmem:[#allocation2 + $0x8] sm:$0xff] %vm682_vm11, %v679_v23 }
 0x3fd   :  { %683 = vst.msk [vmem:[#allocation2] sm:$0xff] %vm682_vm11, %v677_v22 }
 0x403   :  { %v686_v24 = vld [vmem:[#allocation2 + $0x8] sm:$0xff] }
 0x404   :  { %v685_v25 = vld [vmem:[#allocation2] sm:$0xff] }
 0x405   :  { %v687_v20 = vpack.c.bf16 %v686_v24, %v685_v25  ;;  %v1007_v24 = vld [vmem:[%s1335_s5 + $0x18] sm:$0xff]  ;;  %v1006_v25 = vld [vmem:[%s1335_s5 + $0x10] sm:$0xff] }
 0x406   :  { %862 = vmatpush.bf16.msra.mxu2 %v1007_v24 }
 0x407   :  { %970 = vmatmul.msk.bf16.vlgmr.msra.gmra.mxu0 %vm52_vm0, %v687_v20  ;;  %v1004_v20 = vld [vmem:[%s1335_s5] sm:$0xff] }
 0x40a   :  { %863 = vmatpush.bf16.msra.mxu2 %v1006_v25 }
 0x40e   :  { %864 = vmatpush.bf16.msra.mxu2 %v1005_v3 }
 0x412   :  { %865 = vmatpush.bf16.msra.mxu2 %v1004_v20 }
 0x484   :  { %v717_v31 = vpop.f32.mrf.mxu0 }
 0x485   :  { %v718_v32 = vadd.f32 %v717_v31, %v692_v27 }
 0x487   :  { %v724_v33 = vadd.f32 %v722_v28, %v718_v32 }
 0x489   :  { %v726_v34 = vsel %vm52_vm0, %v724_v33, 0.0 }
 0x48a   :  { %727 = vadd.xlane.f32.xlu1 %v726_v34 }
 0x48c   :  { %v719_v36 = vpop.f32.mrf.mxu0 }
 0x48d   :  { %v720_v37 = vadd.f32 %v719_v36, %v692_v27  ;;  %v1309_v27 = vld [vmem:[%s1331_s6] sm:$0xff] }
 0x48e   :  { %v788_v28 = vperm.slane %v1309_v27, 4 }
 0x48f   :  { %v725_v38 = vadd.f32 %v723_v35, %v720_v37  ;;  %v829_v37 = vperm.slane %v1309_v27, 5 }
 0x491   :  { %v729_v39 = vsel %vm52_vm0, %v725_v38, 0.0 }
 0x492   :  { %730 = vadd.xlane.f32.xlu0 %v729_v39 }
 0x4fd   :  { %v728_v30 = vpop.xlane.xlu1 %727 }
 0x4fe   :  { %v739_v46 = vmul.f32 %v1277_v45, %v728_v30 }
 0x500   :  { %v741_v47 = vsub.f32 %v724_v33, %v739_v46 }
 0x502   :  { %v743_v48 = vmul.f32 %v741_v47, %v741_v47 }
 0x504   :  { %v745_v50 = vsel %vm52_vm0, %v743_v48, 0.0 }
 0x505   :  { %v731_v51 = vpop.xlane.xlu0 %730  ;;  %746 = vadd.xlane.f32.xlu2 %v745_v50 }
 0x506   :  { %v740_v0 = vmul.f32 %v1277_v45, %v731_v51 }
 0x508   :  { %v742_v52 = vsub.f32 %v725_v38, %v740_v0 }
 0x50a   :  { %v744_v53 = vmul.f32 %v742_v52, %v742_v52 }
 0x50c   :  { %v748_v54 = vsel %vm52_vm0, %v744_v53, 0.0 }
 0x50d   :  { %749 = vadd.xlane.f32.xlu1 %v748_v54 }
 0x578   :  { %v747_v55 = vpop.xlane.xlu2 %746 }
 0x579   :  { %v751_v57 = vmul.f32 %v747_v55, %v1277_v45 }
 0x57b   :  { %v753_v58 = vadd.f32 1e-05, %v751_v57 }
 0x57d   :  { %1058 = vrsqrt.f32 %v753_v58  ;;  %vm761_vm14 = vweird.f32 %v753_v58 }
 0x580   :  { %v750_v61 = vpop.xlane.xlu1 %749 }
 0x581   :  { %v752_v62 = vmul.f32 %v750_v61, %v1277_v45 }
 0x583   :  { %v1059_v63 = vpop.eup %1058  ;;  %v754_v2 = vadd.f32 1e-05, %v752_v62 }
 0x584   :  { %v756_v40 = vmul.f32 %v1059_v63, %v753_v58  ;;  %vm762_vm13 = vweird.f32 %v1059_v63 }
 0x585   :  { %1060 = vrsqrt.f32 %v754_v2  ;;  %vm763_vm15 = vmor %vm761_vm14, %vm762_vm13  ;;  %vm771_vm3 = vweird.f32 %v754_v2 }
 0x586   :  { %v757_v1 = vmul.f32 %v1059_v63, %v756_v40 }
 0x588   :  { %v758_v4 = vmul.f32 0.5, %v757_v1 }
 0x58a   :  { %v759_v5 = vsub.f32 1.5, %v758_v4 }
 0x58b   :  { %v1061_v6 = vpop.eup %1060 }
 0x58c   :  { %v760_v7 = vmul.f32 %v1059_v63, %v759_v5  ;;  %v766_v8 = vmul.f32 %v1061_v6, %v754_v2  ;;  %vm772_vm2 = vweird.f32 %v1061_v6 }
 0x58d   :  { %vm773_vm5 = vmor %vm771_vm3, %vm772_vm2 }
 0x58e   :  { %v767_v49 = vmul.f32 %v1061_v6, %v766_v8  ;;  %v764_v9 = vsel %vm763_vm15, %v1059_v63, %v760_v7  ;;  %v918_v7 = vperm.slane %v1309_v27, 6 }
 0x58f   :  { %v775_v43 = vmul.f32 %v764_v9, %v741_v47  ;;  %v921_v9 = vperm.slane %v1309_v27, 7 }
 0x590   :  { %v768_v10 = vmul.f32 0.5, %v767_v49 }
 0x591   :  { %v778_v17 = vmul.f32 %v777_v13, %v775_v43 }
 0x592   :  { %v769_v12 = vsub.f32 1.5, %v768_v10 }
 0x593   :  { %v781_v21 = vadd.f32 %v780_v16, %v778_v17 }
 0x594   :  { %v770_v14 = vmul.f32 %v1061_v6, %v769_v12 }
 0x596   :  { %v774_v15 = vsel %vm773_vm5, %v1061_v6, %v770_v14 }
 0x597   :  { %v776_v18 = vmul.f32 %v774_v15, %v742_v52 }
 0x599   :  { %v779_v19 = vmul.f32 %v777_v13, %v776_v18 }
 0x59b   :  { %v782_v22 = vadd.f32 %v780_v16, %v779_v19 }
 0x59d   :  { %v783_v23 = vpack.c.bf16 %v782_v22, %v781_v21 }
 0x59f   :  { %979 = vmatmul.msk.bf16.vlgmr.msra.gmra.mxu1 %vm52_vm0, %v783_v23 }
 0x61c   :  { %v813_v26 = vpop.f32.mrf.mxu1 }
 0x61d   :  { %v814_v31 = vadd.f32 %v813_v26, %v788_v28 }
 0x61f   :  { %v818_v34 = vmax.f32 %v814_v31, 0.0 }
 0x624   :  { %v815_v32 = vpop.f32.mrf.mxu1 }
 0x625   :  { %v816_v33 = vadd.f32 %v815_v32, %v788_v28 }
 0x627   :  { %v819_v35 = vmax.f32 %v816_v33, 0.0 }
 0x629   :  { %v820_v36 = vpack.c.bf16 %v819_v35, %v818_v34 }
 0x62b   :  { %996 = vmatmul.msk.bf16.vlgmr.msra.gmra.mxu2 %vm854_vm6, %v820_v36 }
 0x6ae   :  { %v867_v38 = vpop.f32.mrf.mxu2 }
 0x6af   :  { %v868_v39 = vadd.f32 %v867_v38, %v829_v37 }
 0x6b1   :  { %v872_v60 = vadd.f32 %v868_v39, %v781_v21 }
 0x6b3   :  { %v874_v11 = vsel %vm52_vm0, %v872_v60, 0.0 }
 0x6b4   :  { %875 = vadd.xlane.f32.xlu0 %v874_v11 }
 0x6b6   :  { %v869_v41 = vpop.f32.mrf.mxu2 }
 0x6b7   :  { %v870_v42 = vadd.f32 %v869_v41, %v829_v37 }
 0x6b9   :  { %v873_v44 = vadd.f32 %v870_v42, %v782_v22 }
 0x6bb   :  { %v877_v29 = vsel %vm52_vm0, %v873_v44, 0.0 }
 0x6bc   :  { %878 = vadd.xlane.f32.xlu2 %v877_v29 }
 0x727   :  { %v876_v30 = vpop.xlane.xlu0 %875 }
 0x728   :  { %v880_v46 = vmul.f32 %v876_v30, %v1277_v45 }
 0x72a   :  { %v882_v47 = vsub.f32 %v872_v60, %v880_v46 }
 0x72c   :  { %v884_v48 = vmul.f32 %v882_v47, %v882_v47 }
 0x72e   :  { %v886_v50 = vsel %vm52_vm0, %v884_v48, 0.0 }
 0x72f   :  { %v879_v51 = vpop.xlane.xlu2 %878  ;;  %887 = vadd.xlane.f32.xlu1 %v886_v50 }
 0x730   :  { %v881_v0 = vmul.f32 %v879_v51, %v1277_v45 }
 0x732   :  { %v883_v52 = vsub.f32 %v873_v44, %v881_v0 }
 0x734   :  { %v885_v53 = vmul.f32 %v883_v52, %v883_v52 }
 0x736   :  { %v889_v54 = vsel %vm52_vm0, %v885_v53, 0.0 }
 0x737   :  { %890 = vadd.xlane.f32.xlu0 %v889_v54 }
 0x7a2   :  { %v888_v55 = vpop.xlane.xlu1 %887 }
 0x7a3   :  { %v892_v56 = vmul.f32 %v888_v55, %v1277_v45 }
 0x7a5   :  { %v894_v57 = vadd.f32 1e-05, %v892_v56 }
 0x7a7   :  { %1062 = vrsqrt.f32 %v894_v57  ;;  %vm902_vm0 = vweird.f32 %v894_v57 }
 0x7aa   :  { %v891_v58 = vpop.xlane.xlu0 %890 }
 0x7ab   :  { %v893_v59 = vmul.f32 %v891_v58, %v1277_v45 }
 0x7ad   :  { %v1063_v61 = vpop.eup %1062  ;;  %v895_v62 = vadd.f32 1e-05, %v893_v59 }
 0x7ae   :  { %v897_v63 = vmul.f32 %v1063_v61, %v894_v57  ;;  %vm903_vm7 = vweird.f32 %v1063_v61 }
 0x7af   :  { %1064 = vrsqrt.f32 %v895_v62  ;;  %vm904_vm8 = vmor %vm902_vm0, %vm903_vm7  ;;  %vm912_vm4 = vweird.f32 %v895_v62 }
 0x7b0   :  { %v898_v2 = vmul.f32 %v1063_v61, %v897_v63 }
 0x7b2   :  { %v899_v40 = vmul.f32 0.5, %v898_v2 }
 0x7b4   :  { %v900_v1 = vsub.f32 1.5, %v899_v40 }
 0x7b5   :  { %v1065_v4 = vpop.eup %1064 }
 0x7b6   :  { %v901_v5 = vmul.f32 %v1063_v61, %v900_v1  ;;  %v907_v6 = vmul.f32 %v1065_v4, %v895_v62  ;;  %vm913_vm9 = vweird.f32 %v1065_v4 }
 0x7b7   :  { %vm914_vm1 = vmor %vm912_vm4, %vm913_vm9 }
 0x7b8   :  { %v905_v8 = vsel %vm904_vm8, %v1063_v61, %v901_v5  ;;  %v908_v49 = vmul.f32 %v1065_v4, %v907_v6 }
 0x7b9   :  { %v916_v45 = vmul.f32 %v905_v8, %v882_v47 }
 0x7ba   :  { %v909_v10 = vmul.f32 0.5, %v908_v49 }
 0x7bb   :  { %v919_v12 = vmul.f32 %v918_v7, %v916_v45 }
 0x7bc   :  { %v910_v13 = vsub.f32 1.5, %v909_v10 }
 0x7bd   :  { %v922_v43 = vadd.f32 %v921_v9, %v919_v12 }
 0x7be   :  { %v911_v14 = vmul.f32 %v1065_v4, %v910_v13 }
 0x7bf   :  { %v924_v15 = vpack.c.bf16 %v922_v43, %v922_v43 }
 0x7c0   :  { %v915_v16 = vsel %vm914_vm1, %v1065_v4, %v911_v14 }
 0x7c1   :  { %927 = vst.msk [vmem:[%s1336_s7] sm:$0xf] %vm926_vm10, %v924_v15  ;;  %v917_v17 = vmul.f32 %v915_v16, %v883_v52 }
 0x7c3   :  { %v920_v18 = vmul.f32 %v918_v7, %v917_v17 }
 0x7c5   :  { %v923_v19 = vadd.f32 %v921_v9, %v920_v18 }
 0x7c7   :  { %v925_v21 = vpack.c.bf16 %v923_v19, %v923_v19 }
 0x7c9   :  { %928 = vst.msk [vmem:[%s1336_s7 + $0x4] sm:$0xf] %vm926_vm10, %v925_v21 }

// kernel: forward.7
= control target key start
LH: loop header
LB: loop body
LE: loop exit
PB: predicated region body
PF: predicated region fallthrough
CT: control target
= control target key end

     0   :  { %vm79_vm0 = vcmask 261120   ;;  %s1980_s16 = smov 96   ;;  %s1981_s17 = smov 120   ;;  %v1986_v25 = vmov 0   ;;  %v1987_v26 = vmov -1e+09   ;;  %v123_v53 = vlaneseq  ;;  %s2518_s5 = inlined_call_operand.vmem [shape: bf16[32,96], index: 5, kind: input, shape index: {}]   ;;  %s2519_s0 = inlined_call_operand.vmem [shape: bf16[16,32], index: 0, kind: input, shape index: {}]   ;;  %s2520_s12 = inlined_call_operand.vmem [shape: f32[13,96], index: 12, kind: input, shape index: {}]   ;;  %s2521_s3 = inlined_call_operand.vmem [shape: f32[2,8,1], index: 3, kind: input, shape index: {}]   ;;  %s2522_s2 = inlined_call_operand.vmem [shape: f32[2,1,8], index: 2, kind: input, shape index: {}]   ;;  %s2523_s6 = inlined_call_operand.vmem [shape: bf16[32,32], index: 6, kind: input, shape index: {}]   ;;  %s2524_s8 = inlined_call_operand.vmem [shape: bf16[32,64], index: 8, kind: input, shape index: {}]   ;;  %s2525_s1 = inlined_call_operand.vmem [shape: bf16[16,32], index: 1, kind: input, shape index: {}]   ;;  %s2526_s7 = inlined_call_operand.vmem [shape: bf16[32,32], index: 7, kind: input, shape index: {}]   ;;  %s2527_s4 = inlined_call_operand.vmem [shape: f32[2,1,8], index: 4, kind: input, shape index: {}]   ;;  %s2528_s9 = inlined_call_operand.vmem [shape: bf16[32,32], index: 9, kind: input, shape index: {}]   ;;  %s2529_s10 = inlined_call_operand.vmem [shape: bf16[32,64], index: 10, kind: input, shape index: {}]   ;;  %s2530_s11 = inlined_call_operand.vmem [shape: bf16[64,32], index: 11, kind: input, shape index: {}]   ;;  %s2531_s13 = inlined_call_operand.vmem [shape: bf16[16,32], index: 13, kind: output, shape index: {}]  }
   0x1   :  { %v1866_v0 = vld [vmem:[%s2518_s5 + $0x8] sm:$0xff]  ;;  %v1865_v1 = vld [vmem:[%s2518_s5] sm:$0xff]  ;;  %s1979_s5 = smov 88   ;;  %s1982_s18 = smov 80   ;;  %1899 = vset.pattern.permute.xlu0 %v1986_v25  ;;  %1898 = vset.pattern.permute.xlu2 %v1986_v25  ;;  %vm143_vm2 = vcmask 64512   ;;  %vm242_vm7 = vcmask 1043456  }
   0x2   :  { %89 = vmatpush.bf16.msra.mxu0 %v1866_v0  ;;  %v1863_v2 = vld [vmem:[%s2519_s0] sm:$0xff]  ;;  %s1983_s19 = smov 112   ;;  %s1984_s20 = smov 72   ;;  %v54_v24 = vld [vmem:[%s2521_s3 + $0x8] sm:$0xff]  ;;  %v124_v55 = vshrl.u32 %v123_v53, 7  ;;  %v126_v56 = vand.u32 127, %v123_v53 }
   0x3   :  { %v2079_v3 = vld [vmem:[%s2520_s12] sm:$0xff]  ;;  %s1985_s21 = smov 104   ;;  %vm98_vm1 = vcmp.gt.f32.partialorder %v54_v24, 0.5  ;;  %s1989_s29 = smov 64  }
   0x4   :  { %v61_v4 = vperm.slane %v2079_v3, 0  ;;  %v100_v27 = vsel %vm98_vm1, 0.0, %v1987_v26  ;;  %v53_v30 = vld [vmem:[%s2521_s3] sm:$0xff]  ;;  %vm127_vm5 = vcmp.le.s32.totalorder %v126_v56, %v124_v55  ;;  %s1990_s30 = smov 48   ;;  %s1991_s14 = smov 40  }
   0x5   :  { %vm97_vm3 = vcmp.gt.f32.partialorder %v53_v30, 0.5  ;;  %v51_v51 = vld [vmem:[%s2522_s2] sm:$0x1]  ;;  %v52_v59 = vld [vmem:[%s2522_s2 + $0x1] sm:$0x1]  ;;  %s1988_s2 = smov 56  }
   0x6   :  { %90 = vmatpush.bf16.msra.mxu0 %v1865_v1  ;;  %v99_v34 = vsel %vm97_vm3, 0.0, %v1987_v26  ;;  %vm101_vm4 = vcmp.gt.f32.partialorder %v51_v51, 0.5  ;;  %vm102_vm6 = vcmp.gt.f32.partialorder %v52_v59, 0.5  ;;  %s1992_s15 = smov 8   ;;  %s1993_s22 = smov 16  }
   0x7   :  { %v103_v52 = vsel %vm101_vm4, 0.0, %v1987_v26  ;;  %v104_v1 = vsel %vm102_vm6, 0.0, %v1987_v26  ;;  %s1994_s23 = smov 24  }
   0x8   :  { %v117_v54 = vperm.slane %v103_v52, 0 }
   0x9   :  { %1764 = vmatmul.msk.bf16.vlgmr.msra.gmra.mxu0 %vm79_vm0, %v1863_v2 }
  0x86   :  { %v92_v5 = vpop.f32.mrf.mxu0 }
  0x87   :  { %v93_v6 = vadd.f32 %v92_v5, %v61_v4  ;;  %v118_v5 = vperm.slane %v104_v1, 0 }
  0x89   :  { %v132_v7 = vmul.f32 0.35355338, %v93_v6  ;;  %v136_v8 = vpack.c.bf16 %v93_v6, %v93_v6 }
  0x8b   :  { %v134_v9 = vpack.c.bf16 %v132_v7, %v132_v7  ;;  %v139_v10 = vunpack.c.l.b16 %v136_v8 }
  0x8d   :  { %v2082_v11 = vpack.c.b16 %v139_v10, %v139_v10  ;;  %v283_v12 = vunpack.c.l.b16 %v134_v9 }
  0x8e   :  { %v94_v13 = vpop.f32.mrf.mxu0 }
  0x8f   :  { %v95_v14 = vadd.f32 %v94_v13, %v61_v4  ;;  %287 = vrot.lane.b32.xlu1 %v2082_v11, %s1979_s5  ;;  %141 = vrot.lane.b32.xlu0 %v2082_v11, %s1980_s16  ;;  %v284_v15 = vpack.c.b16 %v283_v12, %v283_v12 }
  0x91   :  { %v133_v16 = vmul.f32 0.35355338, %v95_v14  ;;  %v137_v17 = vpack.c.bf16 %v95_v14, %v95_v14  ;;  %285 = vrot.lane.b32.xlu2 %v284_v15, %s1981_s17 }
  0x93   :  { %v135_v18 = vpack.c.bf16 %v133_v16, %v133_v16  ;;  %v164_v19 = vunpack.c.l.b16 %v137_v17 }
  0x95   :  { %v2089_v20 = vpack.c.b16 %v164_v19, %v164_v19  ;;  %v309_v21 = vunpack.c.l.b16 %v135_v18 }
  0x97   :  { %313 = vrot.lane.b32.xlu1 %v2089_v20, %s1979_s5  ;;  %166 = vrot.lane.b32.xlu0 %v2089_v20, %s1980_s16  ;;  %v310_v22 = vpack.c.b16 %v309_v21, %v309_v21 }
  0x99   :  { %311 = vrot.lane.b32.xlu2 %v310_v22, %s1981_s17 }
  0x9f   :  { %462 = vrot.lane.b32.xlu1 %v2089_v20, %s1982_s18  ;;  %439 = vrot.lane.b32.xlu0 %v2082_v11, %s1982_s18 }
  0xa1   :  { %437 = vrot.lane.b32.xlu2 %v284_v15, %s1983_s19 }
  0xa7   :  { %588 = vrot.lane.b32.xlu1 %v2082_v11, %s1984_s20  ;;  %460 = vrot.lane.b32.xlu0 %v310_v22, %s1983_s19 }
  0xa9   :  { %611 = vrot.lane.b32.xlu2 %v2089_v20, %s1984_s20 }
  0xaf   :  { %609 = vrot.lane.b32.xlu1 %v310_v22, %s1985_s21  ;;  %586 = vrot.lane.b32.xlu0 %v284_v15, %s1985_s21 }
  0xb1   :  { %107 = vperm.xlu2 %1898, %v99_v34  }
  0xb7   :  { %112 = vperm.xlu0 %1899, %v100_v27  }
  0xeb   :  { %v286_v23 = vpop.permute.xlu2 %285 }
  0xf3   :  { %v312_v33 = vpop.permute.xlu2 %311 }
  0xfb   :  { %v438_v39 = vpop.permute.xlu2 %437 }
 0x101   :  { %v288_v28 = vpop.permute.xlu1 %287  ;;  %v142_v29 = vpop.permute.xlu0 %141 }
 0x102   :  { %v148_v31 = vsel %vm143_vm2, %v142_v29, 0  ;;  %v293_v32 = vsel %vm143_vm2, %v288_v28, 0 }
 0x103   :  { %157 = vmatpush.bf16.xpose.msra.mxu1 %v148_v31  ;;  %302 = vmatpush.bf16.xpose.msrb.mxu0 %v293_v32  ;;  %v612_v44 = vpop.permute.xlu2 %611 }
 0x104   :  { %v617_v46 = vsel %vm143_vm2, %v612_v44, 0 }
 0x109   :  { %v314_v35 = vpop.permute.xlu1 %313  ;;  %v167_v36 = vpop.permute.xlu0 %166 }
 0x10a   :  { %1765 = vmatmul.msk.bf16.vlgmr.msra.gmra.mxu1 %vm143_vm2, %v134_v9  ;;  %1769 = vmatmul.msk.bf16.vlgmr.msrb.gmra.mxu0 %vm143_vm2, %v286_v23  ;;  %v172_v37 = vsel %vm143_vm2, %v167_v36, 0  ;;  %v319_v38 = vsel %vm143_vm2, %v314_v35, 0 }
 0x10b   :  { %181 = vmatpush.bf16.xpose.msra.mxu2 %v172_v37  ;;  %328 = vmatpush.bf16.xpose.msrb.mxu1 %v319_v38  ;;  %v2136_v57 = vpop.permute.xlu2 %107 }
 0x10c   :  { %v121_v58 = vadd.f32 %v117_v54, %v2136_v57 }
 0x10e   :  { %v130_v60 = vsel %vm127_vm5, %v121_v58, -1e+09 }
 0x111   :  { %v463_v40 = vpop.permute.xlu1 %462  ;;  %v440_v41 = vpop.permute.xlu0 %439 }
 0x112   :  { %v468_v42 = vsel %vm143_vm2, %v463_v40, 0  ;;  %v445_v43 = vsel %vm143_vm2, %v440_v41, 0  ;;  %1766 = vmatmul.msk.bf16.vlgmr.msra.gmra.mxu2 %vm143_vm2, %v135_v18 }
 0x113   :  { %454 = vmatpush.bf16.xpose.msra.mxu0 %v445_v43  ;;  %477 = vmatpush.bf16.xpose.msra.mxu1 %v468_v42 }
 0x119   :  { %v589_v45 = vpop.permute.xlu1 %588  ;;  %v461_v48 = vpop.permute.xlu0 %460 }
 0x11a   :  { %v594_v47 = vsel %vm143_vm2, %v589_v45, 0  ;;  %1770 = vmatmul.msk.bf16.vlgmr.msrb.gmra.mxu1 %vm143_vm2, %v312_v33  ;;  %1773 = vmatmul.msk.bf16.vlgmr.msra.gmra.mxu0 %vm143_vm2, %v438_v39 }
 0x11b   :  { %626 = vmatpush.bf16.xpose.msrb.mxu1 %v617_v46  ;;  %603 = vmatpush.bf16.xpose.msrb.mxu0 %v594_v47 }
 0x121   :  { %v587_v49 = vpop.permute.xlu0 %586  ;;  %v610_v50 = vpop.permute.xlu1 %609 }
 0x129   :  { %v2146_v6 = vpop.permute.xlu0 %112 }
 0x12a   :  { %1774 = vmatmul.msk.bf16.vlgmr.msra.gmra.mxu1 %vm143_vm2, %v461_v48  ;;  %1777 = vmatmul.msk.bf16.vlgmr.msrb.gmra.mxu0 %vm143_vm2, %v587_v49  ;;  %v122_v9 = vadd.f32 %v118_v5, %v2146_v6 }
 0x12c   :  { %v131_v10 = vsel %vm127_vm5, %v122_v9, -1e+09 }
 0x13a   :  { %1778 = vmatmul.msk.bf16.vlgmr.msrb.gmra.mxu1 %vm143_vm2, %v610_v50 }
 0x187   :  { %v159_v61 = vpop.f32.mrf.mxu1  ;;  %v304_v62 = vpop.f32.mrf.mxu0 }
 0x188   :  { %v160_v63 = vadd.f32 %v159_v61, %v130_v60  ;;  %v305_v0 = vadd.f32 %v304_v62, %v130_v60 }
 0x18a   :  { %v334_v2 = vsel %vm143_vm2, %v305_v0, -inf  ;;  %v187_v4 = vsel %vm143_vm2, %v160_v63, -inf }
 0x18b   :  { %335 = vmax.xlane.f32.xlu0 %v334_v2  ;;  %188 = vmax.xlane.f32.xlu1 %v187_v4 }
 0x18f   :  { %v161_v7 = vpop.f32.mrf.mxu1  ;;  %v306_v8 = vpop.f32.mrf.mxu0 }
 0x195   :  { %v183_v12 = vpop.f32.mrf.mxu2 }
 0x196   :  { %v184_v13 = vadd.f32 %v183_v12, %v131_v10 }
 0x197   :  { %v330_v14 = vpop.f32.mrf.mxu1  ;;  %v456_v15 = vpop.f32.mrf.mxu0 }
 0x198   :  { %v457_v16 = vadd.f32 %v456_v15, %v130_v60  ;;  %v190_v17 = vsel %vm143_vm2, %v184_v13, -inf  ;;  %v331_v19 = vadd.f32 %v330_v14, %v131_v10 }
 0x199   :  { %191 = vmax.xlane.f32.xlu2 %v190_v17 }
 0x19a   :  { %v483_v18 = vsel %vm143_vm2, %v457_v16, -inf  ;;  %v337_v24 = vsel %vm143_vm2, %v331_v19, -inf }
 0x19b   :  { %484 = vmax.xlane.f32.xlu1 %v483_v18 }
 0x19d   :  { %v185_v21 = vpop.f32.mrf.mxu2 }
 0x19f   :  { %v332_v22 = vpop.f32.mrf.mxu1  ;;  %v458_v23 = vpop.f32.mrf.mxu0 }
 0x1a1   :  { %338 = vmax.xlane.f32.xlu2 %v337_v24 }
 0x1a7   :  { %v479_v25 = vpop.f32.mrf.mxu1  ;;  %v605_v27 = vpop.f32.mrf.mxu0 }
 0x1a8   :  { %v480_v34 = vadd.f32 %v479_v25, %v131_v10  ;;  %v606_v36 = vadd.f32 %v605_v27, %v130_v60 }
 0x1aa   :  { %v486_v35 = vsel %vm143_vm2, %v480_v34, -inf  ;;  %v632_v37 = vsel %vm143_vm2, %v606_v36, -inf }
 0x1af   :  { %v481_v28 = vpop.f32.mrf.mxu1  ;;  %v607_v29 = vpop.f32.mrf.mxu0 }
 0x1b4   :  { %405 = vrot.lane.b32.xlu1 %v2089_v20, %s1988_s2 }
 0x1b7   :  { %v628_v30 = vpop.f32.mrf.mxu1 }
 0x1b8   :  { %v629_v31 = vadd.f32 %v628_v30, %v131_v10 }
 0x1b9   :  { %237 = vrot.lane.b32.xlu2 %v2082_v11, %s1989_s29 }
 0x1ba   :  { %v635_v32 = vsel %vm143_vm2, %v629_v31, -inf }
 0x1bb   :  { %636 = vmax.xlane.f32.xlu0 %v635_v32 }
 0x1bf   :  { %v630_v33 = vpop.f32.mrf.mxu1 }
 0x1cf   :  { %259 = vrot.lane.b32.xlu0 %v2089_v20, %s1989_s29 }
 0x1e2   :  { %487 = vmax.xlane.f32.xlu2 %v486_v35 }
 0x1ea   :  { %633 = vmax.xlane.f32.xlu2 %v632_v37 }
 0x1fe   :  { %v336_v38 = vpop.xlane.xlu0 %335  ;;  %v189_v39 = vpop.xlane.xlu1 %188 }
 0x1ff   :  { %v340_v40 = vsub.f32 %v305_v0, %v336_v38  ;;  %v193_v41 = vsub.f32 %v160_v63, %v189_v39 }
 0x201   :  { %v342_v42 = vmul.f32 1.442695, %v340_v40  ;;  %v195_v43 = vmul.f32 1.442695, %v193_v41 }
 0x202   :  { %384 = vrot.lane.b32.xlu2 %v2082_v11, %s1988_s2 }
 0x203   :  { %1900 = vpow2.f32 %v342_v42 }
 0x204   :  { %1902 = vpow2.f32 %v195_v43 }
 0x209   :  { %v2160_v44 = vpop.eup %1900 }
 0x20a   :  { %v2162_v45 = vpop.eup %1902  ;;  %v346_v46 = vsel %vm143_vm2, %v2160_v44, 0.0 }
 0x20b   :  { %347 = vadd.xlane.f32.xlu0 %v346_v46  ;;  %v199_v47 = vsel %vm143_vm2, %v2162_v45, 0.0 }
 0x20c   :  { %200 = vadd.xlane.f32.xlu1 %v199_v47  ;;  %v192_v48 = vpop.xlane.xlu2 %191 }
 0x20d   :  { %v194_v49 = vsub.f32 %v184_v13, %v192_v48 }
 0x20e   :  { %v485_v51 = vpop.xlane.xlu1 %484 }
 0x20f   :  { %v197_v50 = vmul.f32 1.442695, %v194_v49  ;;  %v489_v55 = vsub.f32 %v457_v16, %v485_v51 }
 0x211   :  { %1904 = vpow2.f32 %v197_v50  ;;  %v491_v59 = vmul.f32 1.442695, %v489_v55 }
 0x214   :  { %v339_v52 = vpop.xlane.xlu2 %338 }
 0x215   :  { %v341_v53 = vsub.f32 %v331_v19, %v339_v52 }
 0x217   :  { %v2168_v54 = vpop.eup %1904  ;;  %v344_v56 = vmul.f32 1.442695, %v341_v53 }
 0x218   :  { %v202_v58 = vsel %vm143_vm2, %v2168_v54, 0.0 }
 0x219   :  { %1906 = vpow2.f32 %v344_v56  ;;  %203 = vadd.xlane.f32.xlu1 %v202_v58 }
 0x21a   :  { %1908 = vpow2.f32 %v491_v59 }
 0x21c   :  { %v238_v60 = vpop.permute.xlu2 %237 }
 0x21d   :  { %v244_v61 = vsel %vm242_vm7, %v238_v60, 0 }
 0x21e   :  { %253 = vmatpush.bf16.msra.mxu3 %v244_v61 }
 0x21f   :  { %v2173_v62 = vpop.eup %1906 }
 0x220   :  { %v349_v63 = vsel %vm143_vm2, %v2173_v62, 0.0  ;;  %v2177_v0 = vpop.eup %1908 }
 0x221   :  { %350 = vadd.xlane.f32.xlu1 %v349_v63  ;;  %v495_v1 = vsel %vm143_vm2, %v2177_v0, 0.0 }
 0x226   :  { %v406_v25 = vpop.permute.xlu1 %405 }
 0x227   :  { %v411_v59 = vsel %vm242_vm7, %v406_v25, 0 }
 0x229   :  { %496 = vadd.xlane.f32.xlu1 %v495_v1 }
 0x22e   :  { %v637_v2 = vpop.xlane.xlu0 %636 }
 0x22f   :  { %v639_v4 = vsub.f32 %v629_v31, %v637_v2 }
 0x231   :  { %v642_v5 = vmul.f32 1.442695, %v639_v4 }
 0x233   :  { %1910 = vpow2.f32 %v642_v5 }
 0x239   :  { %v2181_v7 = vpop.eup %1910 }
 0x23a   :  { %v647_v8 = vsel %vm143_vm2, %v2181_v7, 0.0 }
 0x23b   :  { %648 = vadd.xlane.f32.xlu2 %v647_v8 }
 0x241   :  { %v260_v9 = vpop.permute.xlu0 %259 }
 0x242   :  { %v265_v10 = vsel %vm242_vm7, %v260_v9, 0 }
 0x243   :  { %274 = vmatpush.bf16.msrb.mxu3 %v265_v10 }
 0x255   :  { %v488_v12 = vpop.xlane.xlu2 %487 }
 0x256   :  { %v490_v13 = vsub.f32 %v480_v34, %v488_v12 }
 0x258   :  { %v493_v14 = vmul.f32 1.442695, %v490_v13 }
 0x25a   :  { %1912 = vpow2.f32 %v493_v14 }
 0x25d   :  { %v634_v15 = vpop.xlane.xlu2 %633 }
 0x25e   :  { %v638_v16 = vsub.f32 %v606_v36, %v634_v15 }
 0x260   :  { %v2186_v17 = vpop.eup %1912  ;;  %v640_v18 = vmul.f32 1.442695, %v638_v16 }
 0x261   :  { %v498_v19 = vsel %vm143_vm2, %v2186_v17, 0.0 }
 0x262   :  { %1914 = vpow2.f32 %v640_v18  ;;  %499 = vadd.xlane.f32.xlu1 %v498_v19 }
 0x265   :  { %v385_v21 = vpop.permute.xlu2 %384 }
 0x266   :  { %v390_v22 = vsel %vm242_vm7, %v385_v21, 0 }
 0x267   :  { %399 = vmatpush.bf16.msrb.mxu2 %v390_v22 }
 0x268   :  { %v2191_v23 = vpop.eup %1914 }
 0x269   :  { %v644_v24 = vsel %vm143_vm2, %v2191_v23, 0.0 }
 0x26a   :  { %645 = vadd.xlane.f32.xlu0 %v644_v24 }
 0x27b   :  { %533 = vrot.lane.b32.xlu1 %v2082_v11, %s1990_s30 }
 0x27e   :  { %v348_v27 = vpop.xlane.xlu0 %347  ;;  %703 = vrot.lane.b32.xlu0 %v2089_v20, %s1991_s14 }
 0x27f   :  { %1916 = vrcp.f32 %v348_v27  ;;  %v201_v28 = vpop.xlane.xlu1 %200  ;;  %v363_v34 = vand.u32 2147483648, %v348_v27  ;;  %v361_v37 = vand.u32 2147483647, %v348_v27  ;;  %vm357_vm9 = vweird.f32 %v348_v27 }
 0x280   :  { %1918 = vrcp.f32 %v201_v28  ;;  %v216_v39 = vand.u32 2147483648, %v201_v28  ;;  %v214_v42 = vand.u32 2147483647, %v201_v28  ;;  %vm210_vm13 = vweird.f32 %v201_v28 }
 0x281   :  { %vm362_vm12 = vcmp.eq.f32.partialorder %v361_v37, 8.507059e+37 }
 0x282   :  { %v217_v47 = vor.u32 1.1754944e-38, %v216_v39  ;;  %vm215_vm15 = vcmp.eq.f32.partialorder %v214_v42, 8.507059e+37 }
 0x283   :  { %554 = vrot.lane.b32.xlu1 %v2089_v20, %s1990_s30  ;;  %v364_v20 = vor.u32 1.1754944e-38, %v363_v34 }
 0x285   :  { %v1917_v29 = vpop.eup %1916 }
 0x286   :  { %v1919_v30 = vpop.eup %1918  ;;  %v353_v31 = vmul.f32 %v1917_v29, %v348_v27  ;;  %vm358_vm8 = vweird.f32 %v1917_v29 }
 0x287   :  { %v206_v32 = vmul.f32 %v1919_v30, %v201_v28  ;;  %vm211_vm10 = vweird.f32 %v1919_v30  ;;  %vm359_vm11 = vmor %vm357_vm9, %vm358_vm8 }
 0x288   :  { %v354_v33 = vsub.f32 1.0, %v353_v31  ;;  %vm212_vm14 = vmor %vm210_vm13, %vm211_vm10 }
 0x289   :  { %v207_v35 = vsub.f32 1.0, %v206_v32 }
 0x28a   :  { %v355_v36 = vmul.f32 %v1917_v29, %v354_v33 }
 0x28b   :  { %v208_v38 = vmul.f32 %v1919_v30, %v207_v35  ;;  %682 = vrot.lane.b32.xlu1 %v2082_v11, %s1991_s14 }
 0x28c   :  { %v356_v40 = vadd.f32 %v1917_v29, %v355_v36  ;;  %v204_v41 = vpop.xlane.xlu1 %203 }
 0x28d   :  { %1920 = vrcp.f32 %v204_v41  ;;  %v209_v43 = vadd.f32 %v1919_v30, %v208_v38  ;;  %v229_v63 = vand.u32 2147483647, %v204_v41  ;;  %vm225_vm3 = vweird.f32 %v204_v41 }
 0x28e   :  { %v360_v46 = vsel %vm359_vm11, %v1917_v29, %v356_v40 }
 0x28f   :  { %v365_v48 = vsel %vm362_vm12, %v364_v20, %v360_v46  ;;  %v213_v49 = vsel %vm212_vm14, %v1919_v30, %v209_v43  ;;  %vm230_vm5 = vcmp.eq.f32.partialorder %v229_v63, 8.507059e+37 }
 0x290   :  { %v366_v50 = vmul.f32 %v2160_v44, %v365_v48  ;;  %v218_v11 = vsel %vm215_vm15, %v217_v47, %v213_v49  ;;  %v231_v44 = vand.u32 2147483648, %v204_v41 }
 0x291   :  { %v219_v51 = vmul.f32 %v2162_v45, %v218_v11 }
 0x292   :  { %v382_v52 = vpack.c.bf16 %v366_v50, %v366_v50  ;;  %v232_v2 = vor.u32 1.1754944e-38, %v231_v44 }
 0x293   :  { %v1921_v53 = vpop.eup %1920  ;;  %v235_v56 = vpack.c.bf16 %v219_v51, %v219_v51 }
 0x294   :  { %v221_v55 = vmul.f32 %v1921_v53, %v204_v41  ;;  %1771 = vmatmul.msk.bf16.vlgmr.msrb.gmra.mxu2 %vm143_vm2, %v382_v52  ;;  %v351_v58 = vpop.xlane.xlu1 %350  ;;  %vm226_vm1 = vweird.f32 %v1921_v53 }
 0x295   :  { %1922 = vrcp.f32 %v351_v58  ;;  %1767 = vmatmul.msk.bf16.vlgmr.msra.gmra.mxu3 %vm143_vm2, %v235_v56  ;;  %vm227_vm4 = vmor %vm225_vm3, %vm226_vm1  ;;  %v378_v15 = vand.u32 2147483648, %v351_v58  ;;  %vm372_vm8 = vweird.f32 %v351_v58  ;;  %v376_v16 = vand.u32 2147483647, %v351_v58 }
 0x296   :  { %v222_v60 = vsub.f32 1.0, %v221_v55  ;;  %420 = vmatpush.bf16.msra.mxu3 %v411_v59 }
 0x297   :  { %v379_v19 = vor.u32 1.1754944e-38, %v378_v15  ;;  %vm377_vm10 = vcmp.eq.f32.partialorder %v376_v16, 8.507059e+37 }
 0x298   :  { %v223_v61 = vmul.f32 %v1921_v53, %v222_v60 }
 0x29a   :  { %v224_v1 = vadd.f32 %v1921_v53, %v223_v61 }
 0x29b   :  { %v1923_v45 = vpop.eup %1922 }
 0x29c   :  { %v368_v4 = vmul.f32 %v1923_v45, %v351_v58  ;;  %v228_v5 = vsel %vm227_vm4, %v1921_v53, %v224_v1  ;;  %vm373_vm6 = vweird.f32 %v1923_v45 }
 0x29d   :  { %v233_v9 = vsel %vm230_vm5, %v232_v2, %v228_v5  ;;  %vm374_vm9 = vmor %vm372_vm8, %vm373_vm6 }
 0x29e   :  { %v369_v8 = vsub.f32 1.0, %v368_v4  ;;  %v234_v10 = vmul.f32 %v2168_v54, %v233_v9  ;;  %v497_v54 = vpop.xlane.xlu1 %496 }
 0x29f   :  { %1924 = vrcp.f32 %v497_v54  ;;  %v512_v36 = vand.u32 2147483648, %v497_v54  ;;  %vm506_vm12 = vweird.f32 %v497_v54  ;;  %v510_v38 = vand.u32 2147483647, %v497_v54 }
 0x2a0   :  { %v370_v12 = vmul.f32 %v1923_v45, %v369_v8  ;;  %v236_v13 = vpack.c.bf16 %v234_v10, %v234_v10 }
 0x2a1   :  { %v513_v42 = vor.u32 1.1754944e-38, %v512_v36  ;;  %vm511_vm14 = vcmp.eq.f32.partialorder %v510_v38, 8.507059e+37 }
 0x2a2   :  { %v371_v14 = vadd.f32 %v1923_v45, %v370_v12 }
 0x2a4   :  { %v375_v18 = vsel %vm374_vm9, %v1923_v45, %v371_v14 }
 0x2a5   :  { %1768 = vmatmul.msk.bf16.vlgmr.msrb.gmra.mxu3 %vm143_vm2, %v236_v13  ;;  %v380_v21 = vsel %vm377_vm10, %v379_v19, %v375_v18  ;;  %v1925_v25 = vpop.eup %1924 }
 0x2a6   :  { %v381_v22 = vmul.f32 %v2173_v62, %v380_v21  ;;  %v502_v28 = vmul.f32 %v1925_v25, %v497_v54  ;;  %vm507_vm11 = vweird.f32 %v1925_v25 }
 0x2a7   :  { %vm508_vm13 = vmor %vm506_vm12, %vm507_vm11 }
 0x2a8   :  { %v383_v24 = vpack.c.bf16 %v381_v22, %v381_v22  ;;  %v503_v29 = vsub.f32 1.0, %v502_v28 }
 0x2aa   :  { %v504_v32 = vmul.f32 %v1925_v25, %v503_v29 }
 0x2ac   :  { %v505_v34 = vadd.f32 %v1925_v25, %v504_v32 }
 0x2ae   :  { %v2208_v35 = vpop.xlane.xlu2 %648  ;;  %v509_v39 = vsel %vm508_vm13, %v1925_v25, %v505_v34 }
 0x2af   :  { %v514_v20 = vsel %vm511_vm14, %v513_v42, %v509_v39  ;;  %vm670_vm11 = vweird.f32 %v2208_v35  ;;  %v674_v14 = vand.u32 2147483647, %v2208_v35  ;;  %vm434_vm14 = vcmask 130112   ;;  %v1867_v42 = vld [vmem:[%s2523_s6] sm:$0xff] }
 0x2b0   :  { %v515_v49 = vmul.f32 %v2177_v0, %v514_v20 }
 0x2b1   :  { %vm675_vm13 = vcmp.eq.f32.partialorder %v674_v14, 8.507059e+37 }
 0x2b2   :  { %v531_v58 = vpack.c.bf16 %v515_v49, %v515_v49 }
 0x2b5   :  { %1772 = vmatmul.msk.bf16.vlgmr.msra.gmra.mxu3 %vm143_vm2, %v383_v24 }
 0x2d5   :  { %v500_v27 = vpop.xlane.xlu1 %499 }
 0x2d6   :  { %1926 = vrcp.f32 %v500_v27  ;;  %v527_v48 = vand.u32 2147483648, %v500_v27  ;;  %vm521_vm1 = vweird.f32 %v500_v27  ;;  %v525_v50 = vand.u32 2147483647, %v500_v27 }
 0x2d8   :  { %v528_v56 = vor.u32 1.1754944e-38, %v527_v48  ;;  %vm526_vm4 = vcmp.eq.f32.partialorder %v525_v50, 8.507059e+37 }
 0x2dc   :  { %v1927_v30 = vpop.eup %1926 }
 0x2dd   :  { %v646_v31 = vpop.xlane.xlu0 %645  ;;  %v517_v33 = vmul.f32 %v1927_v30, %v500_v27  ;;  %vm522_vm15 = vweird.f32 %v1927_v30 }
 0x2de   :  { %1928 = vrcp.f32 %v646_v31  ;;  %vm523_vm3 = vmor %vm521_vm1, %vm522_vm15  ;;  %v661_v0 = vand.u32 2147483648, %v646_v31  ;;  %vm655_vm6 = vweird.f32 %v646_v31  ;;  %v659_v63 = vand.u32 2147483647, %v646_v31 }
 0x2df   :  { %v518_v62 = vsub.f32 1.0, %v517_v33  ;;  %1930 = vrcp.f32 %v2208_v35  ;;  %vm583_vm15 = vcmask 195712   ;;  %vm732_vm1 = vcmask 261312  }
 0x2e0   :  { %v662_v8 = vor.u32 1.1754944e-38, %v661_v0  ;;  %vm660_vm9 = vcmp.eq.f32.partialorder %v659_v63, 8.507059e+37 }
 0x2e1   :  { %v519_v40 = vmul.f32 %v1927_v30, %v518_v62 }
 0x2e3   :  { %v520_v43 = vadd.f32 %v1927_v30, %v519_v40 }
 0x2e4   :  { %v1929_v37 = vpop.eup %1928 }
 0x2e5   :  { %v651_v41 = vmul.f32 %v1929_v37, %v646_v31  ;;  %v1931_v47 = vpop.eup %1930  ;;  %v524_v52 = vsel %vm523_vm3, %v1927_v30, %v520_v43  ;;  %vm656_vm5 = vweird.f32 %v1929_v37 }
 0x2e6   :  { %v666_v51 = vmul.f32 %v1931_v47, %v2208_v35  ;;  %v529_v59 = vsel %vm526_vm4, %v528_v56, %v524_v52  ;;  %vm657_vm8 = vmor %vm655_vm6, %vm656_vm5  ;;  %vm671_vm10 = vweird.f32 %v1931_v47  ;;  %v742_v52 = vperm.slane %v2079_v3, 1  ;;  %v1872_v3 = vld [vmem:[%s2524_s8 + $0x8] sm:$0xff] }
 0x2e7   :  { %v652_v46 = vsub.f32 1.0, %v651_v41  ;;  %v530_v44 = vmul.f32 %v2186_v17, %v529_v59  ;;  %v676_v17 = vand.u32 2147483648, %v2208_v35  ;;  %vm672_vm12 = vmor %vm670_vm11, %vm671_vm10  ;;  %v1868_v41 = vld [vmem:[%s2523_s6 + $0x8] sm:$0xff] }
 0x2e8   :  { %v667_v60 = vsub.f32 1.0, %v666_v51  ;;  %764 = vmatpush.bf16.msra.mxu0 %v1868_v41  ;;  %v45_v51 = vld [vmem:[%s2519_s0] sm:$0xff]  }
 0x2e9   :  { %v653_v53 = vmul.f32 %v1929_v37, %v652_v46  ;;  %v532_v10 = vpack.c.bf16 %v530_v44, %v530_v44  ;;  %v677_v21 = vor.u32 1.1754944e-38, %v676_v17 }
 0x2ea   :  { %v668_v2 = vmul.f32 %v1931_v47, %v667_v60  ;;  %v773_v60 = vunpack.c.h.bf16 %v45_v51 }
 0x2eb   :  { %v654_v61 = vadd.f32 %v1929_v37, %v653_v53  ;;  %v772_v53 = vunpack.c.l.bf16 %v45_v51 }
 0x2ec   :  { %v669_v13 = vadd.f32 %v1931_v47, %v668_v2  ;;  %765 = vmatpush.bf16.msra.mxu0 %v1867_v42  ;;  %v2281_v42 = vld [vmem:[%s2520_s12] sm:$0xff] }
 0x2ed   :  { %v534_v11 = vpop.permute.xlu1 %533  ;;  %v658_v4 = vsel %vm657_vm8, %v1929_v37, %v654_v61 }
 0x2ee   :  { %v539_v55 = vsel %vm242_vm7, %v534_v11, 0  ;;  %v663_v12 = vsel %vm660_vm9, %v662_v8, %v658_v4  ;;  %v673_v18 = vsel %vm672_vm12, %v1931_v47, %v669_v13 }
 0x2ef   :  { %548 = vmatpush.bf16.msra.mxu2 %v539_v55  ;;  %v664_v15 = vmul.f32 %v2191_v23, %v663_v12  ;;  %v678_v24 = vsel %vm675_vm13, %v677_v21, %v673_v18 }
 0x2f0   :  { %v704_v1 = vpop.permute.xlu0 %703  ;;  %v679_v54 = vmul.f32 %v2181_v7, %v678_v24  ;;  %v1864_v24 = vld [vmem:[%s2525_s1] sm:$0xff] }
 0x2f1   :  { %v709_v9 = vsel %vm242_vm7, %v704_v1, 0  ;;  %v680_v22 = vpack.c.bf16 %v664_v15, %v664_v15  ;;  %v1995_v1 = vmov 32.0  }
 0x2f2   :  { %1775 = vmatmul.msk.bf16.vlgmr.msra.gmra.mxu2 %vm143_vm2, %v531_v58  ;;  %v681_v25 = vpack.c.bf16 %v679_v54, %v679_v54  ;;  %1932 = vrcp.f32 %v1995_v1 }
 0x2f5   :  { %v555_v45 = vpop.permute.xlu1 %554 }
 0x2f6   :  { %v560_v5 = vsel %vm242_vm7, %v555_v45, 0 }
 0x2f7   :  { %569 = vmatpush.bf16.msrb.mxu3 %v560_v5 }
 0x2f8   :  { %v1933_v45 = vpop.eup %1932 }
 0x2f9   :  { %v783_v2 = vmul.f32 32.0, %v1933_v45  ;;  %vm787_vm3 = vweird.f32 %v1933_v45 }
 0x2fa   :  { %1776 = vmatmul.msk.bf16.vlgmr.msrb.gmra.mxu3 %vm143_vm2, %v532_v10 }
 0x2fb   :  { %718 = vmatpush.bf16.msra.mxu3 %v709_v9  ;;  %v784_v4 = vsub.f32 1.0, %v783_v2 }
 0x2fd   :  { %v683_v16 = vpop.permute.xlu1 %682  ;;  %v785_v5 = vmul.f32 %v1933_v45, %v784_v4  ;;  %v838_v4 = vperm.slane %v2281_v42, 4 }
 0x2fe   :  { %v688_v19 = vsel %vm242_vm7, %v683_v16, 0 }
 0x2ff   :  { %697 = vmatpush.bf16.msrb.mxu2 %v688_v19  ;;  %v786_v8 = vadd.f32 %v1933_v45, %v785_v5 }
 0x301   :  { %v2257_v9 = vsel %vm787_vm3, %v1933_v45, %v786_v8 }
 0x302   :  { %1779 = vmatmul.msk.bf16.vlgmr.msrb.gmra.mxu2 %vm143_vm2, %v680_v22  ;;  %v1871_v22 = vld [vmem:[%s2524_s8] sm:$0xff] }
 0x303   :  { %899 = vmatpush.bf16.msra.mxu2 %v1872_v3 }
 0x307   :  { %900 = vmatpush.bf16.msra.mxu2 %v1871_v22 }
 0x30a   :  { %1780 = vmatmul.msk.bf16.vlgmr.msra.gmra.mxu3 %vm143_vm2, %v681_v25  ;;  %v1870_v25 = vld [vmem:[%s2526_s7 + $0x8] sm:$0xff] }
 0x30b   :  { %860 = vmatpush.bf16.msra.mxu1 %v1870_v25 }
 0x312   :  { %1811 = vmatmul.msk.bf16.vlgmr.msra.gmra.mxu2 %vm79_vm0, %v1864_v24 }
 0x317   :  { %v401_v27 = vpop.f32.mrf.mxu2 }
 0x318   :  { %428 = vrot.lane.b32.xlu2 %v401_v27, %s1992_s15  ;;  %v255_v23 = vpop.f32.mrf.mxu3 }
 0x319   :  { %280 = vst.msk [vmem:[#allocation2] sm:$0xff] %vm143_vm2, %v255_v23 }
 0x31f   :  { %v403_v28 = vpop.f32.mrf.mxu2 }
 0x320   :  { %v257_v29 = vpop.f32.mrf.mxu3  ;;  %v1869_v28 = vld [vmem:[%s2526_s7] sm:$0xff] }
 0x321   :  { %861 = vmatpush.bf16.msra.mxu1 %v1869_v28  ;;  %v55_v28 = vld [vmem:[%s2527_s4] sm:$0x1] }
 0x322   :  { %vm907_vm11 = vcmp.gt.f32.partialorder %v55_v28, 0.5 }
 0x328   :  { %v276_v30 = vpop.f32.mrf.mxu3 }
 0x329   :  { %281 = vst.msk [vmem:[#allocation2 + $0x8] sm:$0xff] %vm143_vm2, %v276_v30 }
 0x330   :  { %v278_v31 = vpop.f32.mrf.mxu3 }
 0x338   :  { %v422_v32 = vpop.f32.mrf.mxu3 }
 0x340   :  { %v424_v33 = vpop.f32.mrf.mxu3 }
 0x372   :  { %v429_v7 = vpop.permute.xlu2 %428 }
 0x373   :  { %435 = vst.msk [vmem:[#allocation2] sm:$0xff] %vm434_vm14, %v429_v7 }
 0x375   :  { %v550_v34 = vpop.f32.mrf.mxu2 }
 0x376   :  { %577 = vrot.lane.b32.xlu1 %v550_v34, %s1993_s22 }
 0x37d   :  { %v552_v35 = vpop.f32.mrf.mxu2  ;;  %v571_v62 = vpop.f32.mrf.mxu3 }
 0x37e   :  { %430 = vrot.lane.b32.xlu1 %v422_v32, %s1992_s15 }
 0x385   :  { %v573_v36 = vpop.f32.mrf.mxu3  ;;  %v699_v37 = vpop.f32.mrf.mxu2 }
 0x386   :  { %579 = vrot.lane.b32.xlu1 %v571_v62, %s1993_s22  ;;  %726 = vrot.lane.b32.xlu0 %v699_v37, %s1994_s23 }
 0x38d   :  { %v701_v38 = vpop.f32.mrf.mxu2  ;;  %v720_v39 = vpop.f32.mrf.mxu3 }
 0x38e   :  { %728 = vrot.lane.b32.xlu2 %v720_v39, %s1994_s23 }
 0x395   :  { %v722_v40 = vpop.f32.mrf.mxu3 }
 0x3e8   :  { %v578_v20 = vpop.permute.xlu1 %577  ;;  %v729_v48 = vpop.permute.xlu2 %728 }
 0x3e9   :  { %584 = vst.msk [vmem:[#allocation2] sm:$0xff] %vm583_vm15, %v578_v20  ;;  %v827_v20 = vperm.slane %v2281_v42, 2 }
 0x3f0   :  { %v431_v43 = vpop.permute.xlu1 %430 }
 0x3f1   :  { %436 = vst.msk [vmem:[#allocation2 + $0x8] sm:$0xff] %vm434_vm14, %v431_v43 }
 0x3f8   :  { %v727_v46 = vpop.permute.xlu0 %726  ;;  %v580_v47 = vpop.permute.xlu1 %579 }
 0x3f9   :  { %733 = vst.msk [vmem:[#allocation2] sm:$0xff] %vm732_vm1, %v727_v46 }
 0x3fa   :  { %585 = vst.msk [vmem:[#allocation2 + $0x8] sm:$0xff] %vm583_vm15, %v580_v47 }
 0x3fb   :  { %734 = vst.msk [vmem:[#allocation2 + $0x8] sm:$0xff] %vm732_vm1, %v729_v48  ;;  %v830_v48 = vperm.slane %v2281_v42, 3 }
 0x400   :  { %v735_v49 = vld [vmem:[#allocation2] sm:$0xff] }
 0x402   :  { %v736_v50 = vld [vmem:[#allocation2 + $0x8] sm:$0xff] }
 0x403   :  { %v737_v11 = vpack.c.bf16 %v736_v50, %v735_v49 }
 0x405   :  { %1789 = vmatmul.msk.bf16.vlgmr.msra.gmra.mxu0 %vm79_vm0, %v737_v11 }
 0x482   :  { %v767_v55 = vpop.f32.mrf.mxu0 }
 0x483   :  { %v768_v56 = vadd.f32 %v767_v55, %v742_v52  ;;  %v872_v55 = vperm.slane %v2281_v42, 5 }
 0x485   :  { %v774_v58 = vadd.f32 %v772_v53, %v768_v56  ;;  %v902_v56 = vpop.f32.mrf.mxu2 }
 0x487   :  { %v776_v59 = vsel %vm79_vm0, %v774_v58, 0.0 }
 0x488   :  { %777 = vadd.xlane.f32.xlu1 %v776_v59 }
 0x48a   :  { %v769_v61 = vpop.f32.mrf.mxu0 }
 0x48b   :  { %v770_v0 = vadd.f32 %v769_v61, %v742_v52 }
 0x48d   :  { %v775_v44 = vadd.f32 %v773_v60, %v770_v0 }
 0x48f   :  { %v779_v63 = vsel %vm79_vm0, %v775_v44, 0.0 }
 0x490   :  { %780 = vadd.xlane.f32.xlu0 %v779_v63 }
 0x4fb   :  { %v778_v10 = vpop.xlane.xlu1 %777 }
 0x4fc   :  { %v789_v12 = vmul.f32 %v2257_v9, %v778_v10 }
 0x4fe   :  { %v791_v13 = vsub.f32 %v774_v58, %v789_v12  ;;  %v903_v58 = vadd.f32 %v902_v56, %v872_v55 }
 0x500   :  { %v793_v17 = vmul.f32 %v791_v13, %v791_v13  ;;  %v923_v59 = vpack.c.bf16 %v903_v58, %v903_v58 }
 0x502   :  { %v795_v14 = vsel %vm79_vm0, %v793_v17, 0.0  ;;  %v929_v60 = vsel %vm143_vm2, %v923_v59, 0  ;;  %v1014_v61 = vunpack.c.l.b16 %v923_v59 }
 0x503   :  { %v781_v15 = vpop.xlane.xlu0 %780  ;;  %796 = vadd.xlane.f32.xlu2 %v795_v14  ;;  %938 = vmatpush.bf16.xpose.msrb.mxu3 %v929_v60 }
 0x504   :  { %v790_v16 = vmul.f32 %v2257_v9, %v781_v15  ;;  %v2294_v0 = vpack.c.b16 %v1014_v61, %v1014_v61 }
 0x506   :  { %v792_v18 = vsub.f32 %v775_v44, %v790_v16  ;;  %v904_v44 = vpop.f32.mrf.mxu2  ;;  %1068 = vrot.lane.b32.xlu0 %v2294_v0, %s1981_s17 }
 0x507   :  { %v905_v63 = vadd.f32 %v904_v44, %v872_v55 }
 0x508   :  { %v794_v19 = vmul.f32 %v792_v18, %v792_v18 }
 0x509   :  { %v924_v1 = vpack.c.bf16 %v905_v63, %v905_v63 }
 0x50a   :  { %v798_v21 = vsel %vm79_vm0, %v794_v19, 0.0 }
 0x50b   :  { %799 = vadd.xlane.f32.xlu1 %v798_v21  ;;  %v948_v45 = vsel %vm143_vm2, %v924_v1, 0  ;;  %v1038_v2 = vunpack.c.l.b16 %v924_v1 }
 0x50c   :  { %957 = vmatpush.bf16.xpose.msrb.mxu0 %v948_v45 }
 0x50d   :  { %v2299_v3 = vpack.c.b16 %v1038_v2, %v1038_v2 }
 0x51b   :  { %1094 = vrot.lane.b32.xlu2 %v2299_v3, %s1981_s17 }
 0x523   :  { %1242 = vrot.lane.b32.xlu2 %v2299_v3, %s1983_s19 }
 0x52b   :  { %1367 = vrot.lane.b32.xlu2 %v2294_v0, %s1985_s21 }
 0x576   :  { %v797_v54 = vpop.xlane.xlu2 %796 }
 0x577   :  { %v801_v27 = vmul.f32 %v797_v54, %v2257_v9 }
 0x579   :  { %v803_v23 = vadd.f32 1e-05, %v801_v27  ;;  %v1069_v27 = vpop.permute.xlu0 %1068 }
 0x57b   :  { %1934 = vrsqrt.f32 %v803_v23  ;;  %vm811_vm5 = vweird.f32 %v803_v23 }
 0x57e   :  { %v800_v29 = vpop.xlane.xlu1 %799  ;;  %v1095_v22 = vpop.permute.xlu2 %1094 }
 0x57f   :  { %v802_v30 = vmul.f32 %v800_v29, %v2257_v9  ;;  %v1100_v24 = vsel %vm143_vm2, %v1095_v22, 0 }
 0x580   :  { %1109 = vmatpush.bf16.xpose.msra.mxu0 %v1100_v24 }
 0x581   :  { %v1935_v31 = vpop.eup %1934  ;;  %v804_v32 = vadd.f32 1e-05, %v802_v30  ;;  %v56_v30 = vld [vmem:[%s2527_s4 + $0x1] sm:$0x1] }
 0x582   :  { %v806_v33 = vmul.f32 %v1935_v31, %v803_v23  ;;  %vm812_vm4 = vweird.f32 %v1935_v31  ;;  %v1074_v23 = vsel %vm143_vm2, %v1069_v27, 0  ;;  %vm908_vm12 = vcmp.gt.f32.partialorder %v56_v30, 0.5 }
 0x583   :  { %1936 = vrsqrt.f32 %v804_v32  ;;  %vm813_vm6 = vmor %vm811_vm5, %vm812_vm4  ;;  %vm821_vm9 = vweird.f32 %v804_v32  ;;  %1083 = vmatpush.bf16.xpose.msra.mxu3 %v1074_v23 }
 0x584   :  { %v807_v7 = vmul.f32 %v1935_v31, %v806_v33 }
 0x586   :  { %v808_v34 = vmul.f32 0.5, %v807_v7  ;;  %v1243_v54 = vpop.permute.xlu2 %1242 }
 0x587   :  { %v1248_v25 = vsel %vm143_vm2, %v1243_v54, 0 }
 0x588   :  { %v809_v35 = vsub.f32 1.5, %v808_v34 }
 0x589   :  { %v1937_v62 = vpop.eup %1936 }
 0x58a   :  { %v810_v36 = vmul.f32 %v1935_v31, %v809_v35  ;;  %v816_v37 = vmul.f32 %v1937_v62, %v804_v32  ;;  %vm822_vm8 = vweird.f32 %v1937_v62  ;;  %v910_v32 = vsel %vm908_vm12, 0.0, %v1987_v26 }
 0x58b   :  { %vm823_vm10 = vmor %vm821_vm9, %vm822_vm8  ;;  %v914_v35 = vperm.slane %v910_v32, 0 }
 0x58c   :  { %v817_v38 = vmul.f32 %v1937_v62, %v816_v37  ;;  %v814_v39 = vsel %vm813_vm6, %v1935_v31, %v810_v36  ;;  %v909_v31 = vsel %vm907_vm11, 0.0, %v1987_v26 }
 0x58d   :  { %v825_v43 = vmul.f32 %v814_v39, %v791_v13  ;;  %v913_v33 = vperm.slane %v909_v31, 0  ;;  %v2337_v37 = vadd.f32 %v914_v35, %v2146_v6 }
 0x58e   :  { %v818_v40 = vmul.f32 0.5, %v817_v38 }
 0x58f   :  { %v828_v49 = vmul.f32 %v827_v20, %v825_v43 }
 0x590   :  { %v819_v41 = vsub.f32 1.5, %v818_v40  ;;  %v1368_v40 = vpop.permute.xlu2 %1367 }
 0x591   :  { %v2285_v51 = vadd.f32 %v830_v48, %v828_v49  ;;  %v1373_v6 = vsel %vm143_vm2, %v1368_v40, 0 }
 0x592   :  { %v820_v46 = vmul.f32 %v1937_v62, %v819_v41 }
 0x594   :  { %v824_v47 = vsel %vm823_vm10, %v1937_v62, %v820_v46  ;;  %v2334_v62 = vadd.f32 %v913_v33, %v2136_v57 }
 0x595   :  { %v826_v50 = vmul.f32 %v824_v47, %v792_v18 }
 0x597   :  { %v829_v11 = vmul.f32 %v827_v20, %v826_v50 }
 0x599   :  { %v2287_v52 = vadd.f32 %v830_v48, %v829_v11 }
 0x59b   :  { %v833_v53 = vpack.c.bf16 %v2287_v52, %v2285_v51 }
 0x59d   :  { %1798 = vmatmul.msk.bf16.vlgmr.msra.gmra.mxu1 %vm79_vm0, %v833_v53 }
 0x61a   :  { %v863_v5 = vpop.f32.mrf.mxu1 }
 0x61b   :  { %v864_v8 = vadd.f32 %v863_v5, %v838_v4 }
 0x61d   :  { %v919_v10 = vmul.f32 0.35355338, %v864_v8 }
 0x61f   :  { %v921_v12 = vpack.c.bf16 %v919_v10, %v919_v10 }
 0x621   :  { %v1064_v13 = vunpack.c.l.b16 %v921_v12  ;;  %1812 = vmatmul.msk.bf16.vlgmr.msrb.gmra.mxu3 %vm143_vm2, %v921_v12 }
 0x622   :  { %v865_v17 = vpop.f32.mrf.mxu1 }
 0x623   :  { %v866_v14 = vadd.f32 %v865_v17, %v838_v4  ;;  %v1065_v15 = vpack.c.b16 %v1064_v13, %v1064_v13 }
 0x625   :  { %v920_v16 = vmul.f32 0.35355338, %v866_v14  ;;  %1066 = vrot.lane.b32.xlu1 %v1065_v15, %s1981_s17 }
 0x627   :  { %v922_v18 = vpack.c.bf16 %v920_v16, %v920_v16 }
 0x629   :  { %v1090_v19 = vunpack.c.l.b16 %v922_v18  ;;  %1813 = vmatmul.msk.bf16.vlgmr.msrb.gmra.mxu0 %vm143_vm2, %v922_v18 }
 0x62a   :  { %1257 = vmatpush.bf16.xpose.msrb.mxu0 %v1248_v25 }
 0x62b   :  { %v1091_v21 = vpack.c.b16 %v1090_v19, %v1090_v19 }
 0x62d   :  { %1388 = vrot.lane.b32.xlu2 %v1091_v21, %s1985_s21  ;;  %1092 = vrot.lane.b32.xlu0 %v1091_v21, %s1981_s17 }
 0x62e   :  { %1217 = vrot.lane.b32.xlu1 %v1065_v15, %s1983_s19 }
 0x635   :  { %1219 = vrot.lane.b32.xlu0 %v2294_v0, %s1983_s19 }
 0x636   :  { %1390 = vrot.lane.b32.xlu1 %v2299_v3, %s1985_s21 }
 0x63d   :  { %1240 = vrot.lane.b32.xlu0 %v1091_v21, %s1983_s19 }
 0x645   :  { %1365 = vrot.lane.b32.xlu0 %v1065_v15, %s1985_s21 }
 0x687   :  { %v1389_v11 = vpop.permute.xlu2 %1388 }
 0x697   :  { %v1067_v29 = vpop.permute.xlu1 %1066 }
 0x698   :  { %1816 = vmatmul.msk.bf16.vlgmr.msra.gmra.mxu3 %vm143_vm2, %v1067_v29 }
 0x69f   :  { %v1093_v7 = vpop.permute.xlu0 %1092 }
 0x6a0   :  { %v1218_v34 = vpop.permute.xlu1 %1217  ;;  %1817 = vmatmul.msk.bf16.vlgmr.msra.gmra.mxu0 %vm143_vm2, %v1093_v7 }
 0x6a4   :  { %v940_v36 = vpop.f32.mrf.mxu3 }
 0x6a5   :  { %v941_v38 = vadd.f32 %v940_v36, %v2334_v62 }
 0x6a6   :  { %v959_v39 = vpop.f32.mrf.mxu0 }
 0x6a7   :  { %v960_v41 = vadd.f32 %v959_v39, %v2337_v37  ;;  %v1220_v26 = vpop.permute.xlu0 %1219  ;;  %v963_v20 = vsel %vm143_vm2, %v941_v38, -inf }
 0x6a8   :  { %v1225_v43 = vsel %vm143_vm2, %v1220_v26, 0  ;;  %v1391_v46 = vpop.permute.xlu1 %1390  ;;  %964 = vmax.xlane.f32.xlu0 %v963_v20 }
 0x6a9   :  { %v1396_v57 = vsel %vm143_vm2, %v1391_v46, 0  ;;  %1234 = vmatpush.bf16.xpose.msrb.mxu3 %v1225_v43  ;;  %v966_v47 = vsel %vm143_vm2, %v960_v41, -inf }
 0x6aa   :  { %1405 = vmatpush.bf16.xpose.msra.mxu0 %v1396_v57  ;;  %967 = vmax.xlane.f32.xlu1 %v966_v47 }
 0x6ac   :  { %v942_v48 = vpop.f32.mrf.mxu3 }
 0x6ae   :  { %v961_v49 = vpop.f32.mrf.mxu0 }
 0x6af   :  { %v1241_v50 = vpop.permute.xlu0 %1240 }
 0x6b0   :  { %1820 = vmatmul.msk.bf16.vlgmr.msrb.gmra.mxu3 %vm143_vm2, %v1218_v34  ;;  %1821 = vmatmul.msk.bf16.vlgmr.msrb.gmra.mxu0 %vm143_vm2, %v1241_v50 }
 0x6b1   :  { %1382 = vmatpush.bf16.xpose.msra.mxu3 %v1373_v6 }
 0x6b7   :  { %v1366_v53 = vpop.permute.xlu0 %1365 }
 0x6c0   :  { %1824 = vmatmul.msk.bf16.vlgmr.msra.gmra.mxu3 %vm143_vm2, %v1366_v53  ;;  %1825 = vmatmul.msk.bf16.vlgmr.msra.gmra.mxu0 %vm143_vm2, %v1389_v11 }
 0x71b   :  { %v1085_v55 = vpop.f32.mrf.mxu3  ;;  %v965_v56 = vpop.xlane.xlu0 %964 }
 0x71c   :  { %v1086_v58 = vadd.f32 %v1085_v55, %v2334_v62  ;;  %v969_v59 = vsub.f32 %v941_v38, %v965_v56 }
 0x71d   :  { %v1111_v60 = vpop.f32.mrf.mxu0  ;;  %v968_v61 = vpop.xlane.xlu1 %967 }
 0x71e   :  { %v971_v44 = vmul.f32 1.442695, %v969_v59  ;;  %v1112_v63 = vadd.f32 %v1111_v60, %v2337_v37  ;;  %v970_v1 = vsub.f32 %v960_v41, %v968_v61  ;;  %v1115_v45 = vsel %vm143_vm2, %v1086_v58, -inf }
 0x71f   :  { %1116 = vmax.xlane.f32.xlu1 %v1115_v45 }
 0x720   :  { %1938 = vpow2.f32 %v971_v44  ;;  %v973_v2 = vmul.f32 1.442695, %v970_v1  ;;  %v1118_v4 = vsel %vm143_vm2, %v1112_v63, -inf }
 0x721   :  { %1119 = vmax.xlane.f32.xlu2 %v1118_v4 }
 0x722   :  { %1940 = vpow2.f32 %v973_v2 }
 0x723   :  { %v1087_v5 = vpop.f32.mrf.mxu3 }
 0x725   :  { %v1113_v8 = vpop.f32.mrf.mxu0 }
 0x726   :  { %v2354_v10 = vpop.eup %1938 }
 0x727   :  { %v975_v12 = vsel %vm143_vm2, %v2354_v10, 0.0 }
 0x728   :  { %v2358_v13 = vpop.eup %1940  ;;  %976 = vadd.xlane.f32.xlu1 %v975_v12 }
 0x729   :  { %v978_v17 = vsel %vm143_vm2, %v2358_v13, 0.0 }
 0x72a   :  { %979 = vadd.xlane.f32.xlu0 %v978_v17 }
 0x72d   :  { %v1259_v14 = vpop.f32.mrf.mxu0 }
 0x72e   :  { %v1260_v15 = vadd.f32 %v1259_v14, %v2337_v37 }
 0x730   :  { %v1266_v16 = vsel %vm143_vm2, %v1260_v15, -inf }
 0x732   :  { %1267 = vmax.xlane.f32.xlu0 %v1266_v16 }
 0x733   :  { %v1236_v18 = vpop.f32.mrf.mxu3 }
 0x734   :  { %v1237_v19 = vadd.f32 %v1236_v18, %v2334_v62 }
 0x735   :  { %v1261_v21 = vpop.f32.mrf.mxu0 }
 0x736   :  { %v1263_v22 = vsel %vm143_vm2, %v1237_v19, -inf }
 0x737   :  { %1264 = vmax.xlane.f32.xlu2 %v1263_v22 }
 0x73b   :  { %v1238_v24 = vpop.f32.mrf.mxu3 }
 0x73d   :  { %v1407_v54 = vpop.f32.mrf.mxu0 }
 0x73e   :  { %v2380_v30 = vadd.f32 %v1407_v54, %v2337_v37 }
 0x740   :  { %v1414_v31 = vsel %vm143_vm2, %v2380_v30, -inf }
 0x741   :  { %1186 = vrot.lane.b32.xlu1 %v2299_v3, %s1979_s5 }
 0x743   :  { %v1384_v25 = vpop.f32.mrf.mxu3 }
 0x744   :  { %v2369_v27 = vadd.f32 %v1384_v25, %v2334_v62 }
 0x745   :  { %v1409_v23 = vpop.f32.mrf.mxu0 }
 0x746   :  { %1016 = vrot.lane.b32.xlu0 %v2294_v0, %s1980_s16  ;;  %v1411_v28 = vsel %vm143_vm2, %v2369_v27, -inf }
 0x747   :  { %1412 = vmax.xlane.f32.xlu2 %v1411_v28 }
 0x74b   :  { %v1386_v29 = vpop.f32.mrf.mxu3 }
 0x74e   :  { %1165 = vrot.lane.b32.xlu0 %v2294_v0, %s1979_s5 }
 0x75f   :  { %1040 = vrot.lane.b32.xlu2 %v2299_v3, %s1980_s16 }
 0x76b   :  { %1415 = vmax.xlane.f32.xlu1 %v1414_v31 }
 0x792   :  { %v1117_v32 = vpop.xlane.xlu1 %1116 }
 0x793   :  { %v1121_v33 = vsub.f32 %v1086_v58, %v1117_v32 }
 0x794   :  { %v1120_v7 = vpop.xlane.xlu2 %1119 }
 0x795   :  { %v1123_v34 = vmul.f32 1.442695, %v1121_v33  ;;  %v1122_v35 = vsub.f32 %v1112_v63, %v1120_v7 }
 0x797   :  { %1942 = vpow2.f32 %v1123_v34  ;;  %v1125_v62 = vmul.f32 1.442695, %v1122_v35 }
 0x799   :  { %1944 = vpow2.f32 %v1125_v62 }
 0x79b   :  { %v977_v36 = vpop.xlane.xlu1 %976 }
 0x79c   :  { %1946 = vrcp.f32 %v977_v36  ;;  %v992_v56 = vand.u32 2147483648, %v977_v36  ;;  %vm986_vm3 = vweird.f32 %v977_v36  ;;  %v990_v58 = vand.u32 2147483647, %v977_v36 }
 0x79d   :  { %v2384_v38 = vpop.eup %1942  ;;  %v980_v39 = vpop.xlane.xlu0 %979 }
 0x79e   :  { %v1127_v37 = vsel %vm143_vm2, %v2384_v38, 0.0  ;;  %1948 = vrcp.f32 %v980_v39  ;;  %v993_v63 = vor.u32 1.1754944e-38, %v992_v56  ;;  %vm991_vm5 = vcmp.eq.f32.partialorder %v990_v58, 8.507059e+37 }
 0x79f   :  { %v2386_v40 = vpop.eup %1944  ;;  %1128 = vadd.xlane.f32.xlu1 %v1127_v37  ;;  %v1007_v12 = vand.u32 2147483648, %v980_v39  ;;  %vm1001_vm8 = vweird.f32 %v980_v39  ;;  %v1005_v14 = vand.u32 2147483647, %v980_v39 }
 0x7a0   :  { %v1130_v41 = vsel %vm143_vm2, %v2386_v40, 0.0 }
 0x7a1   :  { %1131 = vadd.xlane.f32.xlu0 %v1130_v41  ;;  %v1008_v21 = vor.u32 1.1754944e-38, %v1007_v12  ;;  %vm1006_vm10 = vcmp.eq.f32.partialorder %v1005_v14, 8.507059e+37 }
 0x7a2   :  { %v1947_v26 = vpop.eup %1946 }
 0x7a3   :  { %v982_v20 = vmul.f32 %v1947_v26, %v977_v36  ;;  %vm987_vm13 = vweird.f32 %v1947_v26 }
 0x7a4   :  { %v1949_v47 = vpop.eup %1948  ;;  %vm988_vm4 = vmor %vm986_vm3, %vm987_vm13 }
 0x7a5   :  { %v983_v43 = vsub.f32 1.0, %v982_v20  ;;  %v1268_v46 = vpop.xlane.xlu0 %1267  ;;  %v997_v50 = vmul.f32 %v1949_v47, %v980_v39  ;;  %vm1002_vm6 = vweird.f32 %v1949_v47 }
 0x7a6   :  { %v1270_v57 = vsub.f32 %v1260_v15, %v1268_v46  ;;  %vm1003_vm9 = vmor %vm1001_vm8, %vm1002_vm6 }
 0x7a7   :  { %v984_v48 = vmul.f32 %v1947_v26, %v983_v43  ;;  %v998_v59 = vsub.f32 1.0, %v997_v50 }
 0x7a8   :  { %v1273_v6 = vmul.f32 1.442695, %v1270_v57 }
 0x7a9   :  { %v985_v53 = vadd.f32 %v1947_v26, %v984_v48  ;;  %v999_v1 = vmul.f32 %v1949_v47, %v998_v59 }
 0x7aa   :  { %1950 = vpow2.f32 %v1273_v6  ;;  %v1265_v49 = vpop.xlane.xlu2 %1264 }
 0x7ab   :  { %v1269_v11 = vsub.f32 %v1237_v19, %v1265_v49  ;;  %v989_v61 = vsel %vm988_vm4, %v1947_v26, %v985_v53  ;;  %v1000_v8 = vadd.f32 %v1949_v47, %v999_v1 }
 0x7ac   :  { %v994_v45 = vsel %vm991_vm5, %v993_v63, %v989_v61 }
 0x7ad   :  { %v1271_v55 = vmul.f32 1.442695, %v1269_v11  ;;  %v995_v5 = vmul.f32 %v2354_v10, %v994_v45  ;;  %v1004_v18 = vsel %vm1003_vm9, %v1949_v47, %v1000_v8 }
 0x7ae   :  { %v1009_v22 = vsel %vm1006_vm10, %v1008_v21, %v1004_v18 }
 0x7af   :  { %1952 = vpow2.f32 %v1271_v55  ;;  %v1011_v19 = vpack.c.bf16 %v995_v5, %v995_v5  ;;  %v1010_v24 = vmul.f32 %v2358_v13, %v1009_v22 }
 0x7b0   :  { %v2392_v60 = vpop.eup %1950 }
 0x7b1   :  { %v1278_v44 = vsel %vm143_vm2, %v2392_v60, 0.0  ;;  %v1012_v31 = vpack.c.bf16 %v1010_v24, %v1010_v24 }
 0x7b2   :  { %1279 = vadd.xlane.f32.xlu1 %v1278_v44 }
 0x7b3   :  { %v1187_v54 = vpop.permute.xlu1 %1186 }
 0x7b4   :  { %v1192_v29 = vsel %vm242_vm7, %v1187_v54, 0 }
 0x7b5   :  { %v2396_v2 = vpop.eup %1952 }
 0x7b6   :  { %v1275_v4 = vsel %vm143_vm2, %v2396_v2, 0.0 }
 0x7b7   :  { %1276 = vadd.xlane.f32.xlu2 %v1275_v4 }
 0x7b8   :  { %v1017_v17 = vpop.permute.xlu0 %1016 }
 0x7b9   :  { %v1022_v15 = vsel %vm242_vm7, %v1017_v17, 0 }
 0x7ba   :  { %v1413_v16 = vpop.xlane.xlu2 %1412  ;;  %1031 = vmatpush.bf16.msrb.mxu1 %v1022_v15 }
 0x7bb   :  { %v1417_v7 = vsub.f32 %v2369_v27, %v1413_v16 }
 0x7bd   :  { %1814 = vmatmul.msk.bf16.vlgmr.msrb.gmra.mxu1 %vm143_vm2, %v1011_v19  ;;  %v1419_v34 = vmul.f32 1.442695, %v1417_v7 }
 0x7c0   :  { %v1166_v10 = vpop.permute.xlu0 %1165 }
 0x7c1   :  { %v1171_v25 = vsel %vm242_vm7, %v1166_v10, 0 }
 0x7c2   :  { %v1041_v23 = vpop.permute.xlu2 %1040  ;;  %1180 = vmatpush.bf16.msra.mxu1 %v1171_v25 }
 0x7c3   :  { %v1046_v28 = vsel %vm242_vm7, %v1041_v23, 0 }
 0x7c4   :  { %1055 = vmatpush.bf16.msrb.mxu2 %v1046_v28 }
 0x7c7   :  { %1815 = vmatmul.msk.bf16.vlgmr.msrb.gmra.mxu2 %vm143_vm2, %v1012_v31 }
 0x7c8   :  { %1201 = vmatpush.bf16.msra.mxu2 %v1192_v29 }
 0x7cb   :  { %1334 = vrot.lane.b32.xlu1 %v2299_v3, %s1982_s18 }
 0x7cf   :  { %1313 = vrot.lane.b32.xlu2 %v2294_v0, %s1982_s18 }
 0x7d7   :  { %1461 = vrot.lane.b32.xlu2 %v2294_v0, %s1984_s20 }
 0x7de   :  { %v1416_v13 = vpop.xlane.xlu1 %1415 }
 0x7df   :  { %v1418_v32 = vsub.f32 %v2380_v30, %v1416_v13 }
 0x7e1   :  { %v1421_v33 = vmul.f32 1.442695, %v1418_v32 }
 0x7e3   :  { %1954 = vpow2.f32 %v1421_v33 }
 0x7e4   :  { %1956 = vpow2.f32 %v1419_v34 }
 0x7e9   :  { %v2416_v35 = vpop.eup %1954 }
 0x7ea   :  { %v1426_v62 = vsel %vm143_vm2, %v2416_v35, 0.0  ;;  %v2420_v36 = vpop.eup %1956 }
 0x7eb   :  { %1427 = vadd.xlane.f32.xlu0 %v1426_v62  ;;  %v1423_v0 = vsel %vm143_vm2, %v2420_v36, 0.0 }
 0x7f5   :  { %1424 = vadd.xlane.f32.xlu1 %v1423_v0 }
 0x7ff   :  { %1482 = vrot.lane.b32.xlu0 %v2299_v3, %s1984_s20 }
 0x812   :  { %v1129_v30 = vpop.xlane.xlu1 %1128 }
 0x813   :  { %1958 = vrcp.f32 %v1129_v30  ;;  %v1144_v43 = vand.u32 2147483648, %v1129_v30  ;;  %v1142_v47 = vand.u32 2147483647, %v1129_v30  ;;  %vm1138_vm13 = vweird.f32 %v1129_v30 }
 0x814   :  { %v1132_v27 = vpop.xlane.xlu0 %1131 }
 0x815   :  { %1960 = vrcp.f32 %v1132_v27  ;;  %v1159_v6 = vand.u32 2147483648, %v1132_v27  ;;  %v1157_v49 = vand.u32 2147483647, %v1132_v27  ;;  %v1145_v3 = vor.u32 1.1754944e-38, %v1144_v43 }
 0x816   :  { %vm1153_vm4 = vweird.f32 %v1132_v27  ;;  %vm1143_vm5 = vcmp.eq.f32.partialorder %v1142_v47, 8.507059e+37 }
 0x817   :  { %v1160_v55 = vor.u32 1.1754944e-38, %v1159_v6  ;;  %vm1158_vm8 = vcmp.eq.f32.partialorder %v1157_v49, 8.507059e+37 }
 0x819   :  { %v1959_v39 = vpop.eup %1958 }
 0x81a   :  { %v1134_v41 = vmul.f32 %v1959_v39, %v1129_v30  ;;  %vm1139_vm11 = vweird.f32 %v1959_v39 }
 0x81b   :  { %v1961_v37 = vpop.eup %1960  ;;  %vm1140_vm3 = vmor %vm1138_vm13, %vm1139_vm11 }
 0x81c   :  { %v1149_v26 = vmul.f32 %v1961_v37, %v1132_v27  ;;  %v1135_v20 = vsub.f32 1.0, %v1134_v41  ;;  %vm1154_vm12 = vweird.f32 %v1961_v37 }
 0x81d   :  { %vm1155_vm6 = vmor %vm1153_vm4, %vm1154_vm12 }
 0x81e   :  { %v1150_v46 = vsub.f32 1.0, %v1149_v26  ;;  %v1136_v57 = vmul.f32 %v1959_v39, %v1135_v20 }
 0x820   :  { %v1151_v48 = vmul.f32 %v1961_v37, %v1150_v46  ;;  %v1137_v50 = vadd.f32 %v1959_v39, %v1136_v57 }
 0x822   :  { %v1152_v11 = vadd.f32 %v1961_v37, %v1151_v48  ;;  %v1141_v53 = vsel %vm1140_vm3, %v1959_v39, %v1137_v50 }
 0x823   :  { %v1146_v56 = vsel %vm1143_vm5, %v1145_v3, %v1141_v53 }
 0x824   :  { %v1156_v58 = vsel %vm1155_vm6, %v1961_v37, %v1152_v11  ;;  %v1147_v59 = vmul.f32 %v2384_v38, %v1146_v56 }
 0x825   :  { %v1161_v61 = vsel %vm1158_vm8, %v1160_v55, %v1156_v58  ;;  %v1280_v44 = vpop.xlane.xlu1 %1279 }
 0x826   :  { %v1162_v63 = vmul.f32 %v2386_v40, %v1161_v61  ;;  %1962 = vrcp.f32 %v1280_v44  ;;  %v1163_v1 = vpack.c.bf16 %v1147_v59, %v1147_v59  ;;  %v1307_v18 = vand.u32 2147483648, %v1280_v44 }
 0x827   :  { %vm1301_vm10 = vweird.f32 %v1280_v44  ;;  %v1305_v19 = vand.u32 2147483647, %v1280_v44 }
 0x828   :  { %v1164_v45 = vpack.c.bf16 %v1162_v63, %v1162_v63  ;;  %1818 = vmatmul.msk.bf16.vlgmr.msra.gmra.mxu1 %vm143_vm2, %v1163_v1  ;;  %v1308_v25 = vor.u32 1.1754944e-38, %v1307_v18 }
 0x829   :  { %vm1306_vm13 = vcmp.eq.f32.partialorder %v1305_v19, 8.507059e+37 }
 0x82a   :  { %v1277_v4 = vpop.xlane.xlu2 %1276  ;;  %1819 = vmatmul.msk.bf16.vlgmr.msra.gmra.mxu2 %vm143_vm2, %v1164_v45 }
 0x82b   :  { %1964 = vrcp.f32 %v1277_v4  ;;  %v1292_v22 = vand.u32 2147483648, %v1277_v4  ;;  %v1290_v54 = vand.u32 2147483647, %v1277_v4  ;;  %vm1286_vm3 = vweird.f32 %v1277_v4 }
 0x82c   :  { %v1963_v5 = vpop.eup %1962 }
 0x82d   :  { %v1297_v8 = vmul.f32 %v1963_v5, %v1280_v44  ;;  %vm1302_vm9 = vweird.f32 %v1963_v5  ;;  %v1293_v29 = vor.u32 1.1754944e-38, %v1292_v22  ;;  %vm1291_vm5 = vcmp.eq.f32.partialorder %v1290_v54, 8.507059e+37 }
 0x82e   :  { %vm1303_vm11 = vmor %vm1301_vm10, %vm1302_vm9 }
 0x82f   :  { %v1298_v12 = vsub.f32 1.0, %v1297_v8 }
 0x831   :  { %v1965_v17 = vpop.eup %1964  ;;  %v1299_v14 = vmul.f32 %v1963_v5, %v1298_v12 }
 0x832   :  { %v1282_v38 = vmul.f32 %v1965_v17, %v1277_v4  ;;  %v1314_v15 = vpop.permute.xlu2 %1313  ;;  %vm1287_vm12 = vweird.f32 %v1965_v17 }
 0x833   :  { %v1300_v16 = vadd.f32 %v1963_v5, %v1299_v14  ;;  %v1319_v40 = vsel %vm242_vm7, %v1314_v15, 0  ;;  %vm1288_vm4 = vmor %vm1286_vm3, %vm1287_vm12 }
 0x834   :  { %v1283_v21 = vsub.f32 1.0, %v1282_v38  ;;  %1328 = vmatpush.bf16.msrb.mxu1 %v1319_v40 }
 0x835   :  { %v1304_v10 = vsel %vm1303_vm11, %v1963_v5, %v1300_v16 }
 0x836   :  { %v1284_v24 = vmul.f32 %v1965_v17, %v1283_v21  ;;  %v1309_v28 = vsel %vm1306_vm13, %v1308_v25, %v1304_v10 }
 0x837   :  { %v1310_v34 = vmul.f32 %v2392_v60, %v1309_v28  ;;  %v1874_v28 = vld [vmem:[%s2528_s9 + $0x8] sm:$0xff] }
 0x838   :  { %v1285_v23 = vadd.f32 %v1965_v17, %v1284_v24  ;;  %1542 = vmatpush.bf16.msrb.mxu3 %v1874_v28 }
 0x839   :  { %v1312_v39 = vpack.c.bf16 %v1310_v34, %v1310_v34  ;;  %v1520_v34 = vperm.slane %v2281_v42, 6 }
 0x83a   :  { %v1289_v31 = vsel %vm1288_vm4, %v1965_v17, %v1285_v23  ;;  %v1462_v13 = vpop.permute.xlu2 %1461  ;;  %v1033_v32 = vpop.f32.mrf.mxu1 }
 0x83b   :  { %v1294_v33 = vsel %vm1291_vm5, %v1293_v29, %v1289_v31  ;;  %v1467_v7 = vsel %vm242_vm7, %v1462_v13, 0  ;;  %1061 = vst.msk [vmem:[#allocation2] sm:$0xff] %vm143_vm2, %v1033_v32  ;;  %v1873_v29 = vld [vmem:[%s2528_s9] sm:$0xff]  ;;  %vm1673_vm5 = vcmask 523264  }
 0x83c   :  { %v1295_v62 = vmul.f32 %v2396_v2, %v1294_v33  ;;  %1476 = vmatpush.bf16.msra.mxu1 %v1467_v7  ;;  %1543 = vmatpush.bf16.msrb.mxu3 %v1873_v29 }
 0x83d   :  { %v1335_v0 = vpop.permute.xlu1 %1334 }
 0x83e   :  { %v1340_v30 = vsel %vm242_vm7, %v1335_v0, 0  ;;  %v1311_v27 = vpack.c.bf16 %v1295_v62, %v1295_v62 }
 0x83f   :  { %1349 = vmatpush.bf16.msrb.mxu2 %v1340_v30 }
 0x840   :  { %1822 = vmatmul.msk.bf16.vlgmr.msrb.gmra.mxu1 %vm143_vm2, %v1311_v27 }
 0x842   :  { %v1035_v37 = vpop.f32.mrf.mxu1  ;;  %1823 = vmatmul.msk.bf16.vlgmr.msrb.gmra.mxu2 %vm143_vm2, %v1312_v39 }
 0x84a   :  { %v1057_v41 = vpop.f32.mrf.mxu2 }
 0x84b   :  { %1062 = vst.msk [vmem:[#allocation2 + $0x8] sm:$0xff] %vm143_vm2, %v1057_v41 }
 0x852   :  { %v1059_v26 = vpop.f32.mrf.mxu2 }
 0x85e   :  { %v1428_v20 = vpop.xlane.xlu0 %1427 }
 0x85f   :  { %1966 = vrcp.f32 %v1428_v20  ;;  %v1455_v57 = vand.u32 2147483648, %v1428_v20  ;;  %v1453_v6 = vand.u32 2147483647, %v1428_v20  ;;  %vm1449_vm8 = vweird.f32 %v1428_v20 }
 0x861   :  { %v1456_v49 = vor.u32 1.1754944e-38, %v1455_v57  ;;  %vm1454_vm10 = vcmp.eq.f32.partialorder %v1453_v6, 8.507059e+37 }
 0x865   :  { %v1967_v60 = vpop.eup %1966 }
 0x866   :  { %v1445_v2 = vmul.f32 %v1967_v60, %v1428_v20  ;;  %vm1450_vm6 = vweird.f32 %v1967_v60 }
 0x867   :  { %vm1451_vm9 = vmor %vm1449_vm8, %vm1450_vm6 }
 0x868   :  { %v1446_v43 = vsub.f32 1.0, %v1445_v2  ;;  %v1425_v46 = vpop.xlane.xlu1 %1424 }
 0x869   :  { %1968 = vrcp.f32 %v1425_v46  ;;  %v1440_v61 = vand.u32 2147483648, %v1425_v46  ;;  %v1438_v63 = vand.u32 2147483647, %v1425_v46  ;;  %vm1434_vm12 = vweird.f32 %v1425_v46 }
 0x86a   :  { %v1447_v47 = vmul.f32 %v1967_v60, %v1446_v43 }
 0x86b   :  { %v1441_v4 = vor.u32 1.1754944e-38, %v1440_v61  ;;  %vm1439_vm3 = vcmp.eq.f32.partialorder %v1438_v63, 8.507059e+37 }
 0x86c   :  { %v1448_v48 = vadd.f32 %v1967_v60, %v1447_v47 }
 0x86e   :  { %v1452_v50 = vsel %vm1451_vm9, %v1967_v60, %v1448_v48 }
 0x86f   :  { %v1969_v3 = vpop.eup %1968  ;;  %v1457_v11 = vsel %vm1454_vm10, %v1456_v49, %v1452_v50  ;;  %v1876_v49 = vld [vmem:[%s2529_s10 + $0x8] sm:$0xff]  ;;  %vm1745_vm10 = vcmask 257024  }
 0x870   :  { %v1458_v53 = vmul.f32 %v2416_v35, %v1457_v11  ;;  %v1430_v55 = vmul.f32 %v1969_v3, %v1425_v46  ;;  %vm1435_vm11 = vweird.f32 %v1969_v3  ;;  %1629 = vmatpush.bf16.msrb.mxu0 %v1876_v49  ;;  %v1875_v11 = vld [vmem:[%s2529_s10] sm:$0xff] }
 0x871   :  { %v1483_v56 = vpop.permute.xlu0 %1482  ;;  %vm1436_vm13 = vmor %vm1434_vm12, %vm1435_vm11 }
 0x872   :  { %v1431_v58 = vsub.f32 1.0, %v1430_v55  ;;  %v1488_v59 = vsel %vm242_vm7, %v1483_v56, 0  ;;  %v1460_v1 = vpack.c.bf16 %v1458_v53, %v1458_v53 }
 0x873   :  { %1497 = vmatpush.bf16.msra.mxu2 %v1488_v59 }
 0x874   :  { %v1432_v44 = vmul.f32 %v1969_v3, %v1431_v58  ;;  %1630 = vmatpush.bf16.msrb.mxu0 %v1875_v11 }
 0x876   :  { %v1433_v45 = vadd.f32 %v1969_v3, %v1432_v44  ;;  %1827 = vmatmul.msk.bf16.vlgmr.msra.gmra.mxu2 %vm143_vm2, %v1460_v1 }
 0x878   :  { %v1437_v5 = vsel %vm1436_vm13, %v1969_v3, %v1433_v45 }
 0x879   :  { %v1442_v35 = vsel %vm1439_vm3, %v1441_v4, %v1437_v5 }
 0x87a   :  { %v1443_v8 = vmul.f32 %v2420_v36, %v1442_v35 }
 0x87c   :  { %v1459_v12 = vpack.c.bf16 %v1443_v8, %v1443_v8 }
 0x87e   :  { %1826 = vmatmul.msk.bf16.vlgmr.msra.gmra.mxu1 %vm143_vm2, %v1459_v12 }
 0x8a5   :  { %v1182_v17 = vpop.f32.mrf.mxu1 }
 0x8a6   :  { %1209 = vrot.lane.b32.xlu1 %v1182_v17, %s1992_s15  ;;  %v1596_v17 = vperm.slane %v2281_v42, 7  ;;  %v1880_v42 = vld [vmem:[%s2530_s11 + $0x18] sm:$0xff] }
 0x8a7   :  { %1681 = vmatpush.bf16.msrb.mxu1 %v1880_v42 }
 0x8ad   :  { %v1203_v14 = vpop.f32.mrf.mxu2  ;;  %v1184_v38 = vpop.f32.mrf.mxu1 }
 0x8ae   :  { %1211 = vrot.lane.b32.xlu2 %v1203_v14, %s1992_s15  ;;  %v2484_v38 = vld [vmem:[%s2520_s12 + $0x8] sm:$0x1f] }
 0x8af   :  { %v1607_v28 = vperm.slane %v2484_v38, 1 }
 0x8b5   :  { %v1205_v15 = vpop.f32.mrf.mxu2 }
 0x8bd   :  { %v1330_v16 = vpop.f32.mrf.mxu1 }
 0x8be   :  { %1357 = vrot.lane.b32.xlu0 %v1330_v16, %s1993_s22 }
 0x8c5   :  { %v1332_v18 = vpop.f32.mrf.mxu1  ;;  %v1351_v40 = vpop.f32.mrf.mxu2 }
 0x8c6   :  { %1359 = vrot.lane.b32.xlu2 %v1351_v40, %s1993_s22  ;;  %v1599_v18 = vperm.slane %v2484_v38, 0 }
 0x8cd   :  { %v1353_v19 = vpop.f32.mrf.mxu2 }
 0x8f9   :  { %v1499_v36 = vpop.f32.mrf.mxu2 }
 0x8fa   :  { %1507 = vrot.lane.b32.xlu2 %v1499_v36, %s1994_s23 }
 0x8fb   :  { %v1478_v21 = vpop.f32.mrf.mxu1 }
 0x8fc   :  { %1505 = vrot.lane.b32.xlu0 %v1478_v21, %s1994_s23 }
 0x901   :  { %v1501_v22 = vpop.f32.mrf.mxu2 }
 0x903   :  { %v1480_v10 = vpop.f32.mrf.mxu1 }
 0x908   :  { %v1212_v24 = vpop.permute.xlu2 %1211 }
 0x909   :  { %1216 = vst.msk [vmem:[#allocation2 + $0x8] sm:$0xff] %vm434_vm14, %v1212_v24  ;;  %v1879_v24 = vld [vmem:[%s2530_s11 + $0x10] sm:$0xff] }
 0x90a   :  { %1682 = vmatpush.bf16.msrb.mxu1 %v1879_v24 }
 0x918   :  { %v1210_v54 = vpop.permute.xlu1 %1209 }
 0x919   :  { %1215 = vst.msk [vmem:[#allocation2] sm:$0xff] %vm434_vm14, %v1210_v54  ;;  %v1878_v54 = vld [vmem:[%s2530_s11 + $0x8] sm:$0xff] }
 0x91a   :  { %1683 = vmatpush.bf16.msrb.mxu1 %v1878_v54 }
 0x920   :  { %v1360_v25 = vpop.permute.xlu2 %1359 }
 0x921   :  { %1364 = vst.msk [vmem:[#allocation2 + $0x8] sm:$0xff] %vm583_vm15, %v1360_v25  ;;  %v1877_v25 = vld [vmem:[%s2530_s11] sm:$0xff] }
 0x922   :  { %1684 = vmatpush.bf16.msrb.mxu1 %v1877_v25 }
 0x930   :  { %v1358_v23 = vpop.permute.xlu0 %1357 }
 0x931   :  { %1363 = vst.msk [vmem:[#allocation2] sm:$0xff] %vm583_vm15, %v1358_v23 }
 0x954   :  { %v1508_v31 = vpop.permute.xlu2 %1507 }
 0x955   :  { %1512 = vst.msk [vmem:[#allocation2 + $0x8] sm:$0xff] %vm732_vm1, %v1508_v31 }
 0x95c   :  { %v1514_v33 = vld [vmem:[#allocation2 + $0x8] sm:$0xff] }
 0x96e   :  { %v1506_v13 = vpop.permute.xlu0 %1505 }
 0x96f   :  { %1511 = vst.msk [vmem:[#allocation2] sm:$0xff] %vm732_vm1, %v1506_v13 }
 0x976   :  { %v1513_v32 = vld [vmem:[#allocation2] sm:$0xff] }
 0x977   :  { %v1515_v7 = vpack.c.bf16 %v1514_v33, %v1513_v32 }
 0x979   :  { %1836 = vmatmul.msk.bf16.vlgmr.msrb.gmra.mxu3 %vm79_vm0, %v1515_v7 }
 0x9fc   :  { %v1545_v62 = vpop.f32.mrf.mxu3 }
 0x9fd   :  { %v1546_v0 = vadd.f32 %v1545_v62, %v1520_v34 }
 0x9ff   :  { %v1550_v30 = vadd.f32 %v1546_v0, %v2285_v51 }
 0xa01   :  { %v1552_v27 = vsel %vm79_vm0, %v1550_v30, 0.0 }
 0xa02   :  { %1553 = vadd.xlane.f32.xlu0 %v1552_v27 }
 0xa04   :  { %v1547_v39 = vpop.f32.mrf.mxu3 }
 0xa05   :  { %v1548_v37 = vadd.f32 %v1547_v39, %v1520_v34  ;;  %v1648_v34 = vperm.slane %v2484_v38, 2 }
 0xa07   :  { %v1551_v41 = vadd.f32 %v1548_v37, %v2287_v52 }
 0xa09   :  { %v1555_v26 = vsel %vm79_vm0, %v1551_v41, 0.0 }
 0xa0a   :  { %1556 = vadd.xlane.f32.xlu1 %v1555_v26 }
 0xa75   :  { %v1554_v20 = vpop.xlane.xlu0 %1553 }
 0xa76   :  { %v1558_v60 = vmul.f32 %v1554_v20, %v2257_v9 }
 0xa78   :  { %v1560_v2 = vsub.f32 %v1550_v30, %v1558_v60 }
 0xa7a   :  { %v1562_v43 = vmul.f32 %v1560_v2, %v1560_v2 }
 0xa7c   :  { %v1564_v46 = vsel %vm79_vm0, %v1562_v43, 0.0 }
 0xa7d   :  { %v1557_v57 = vpop.xlane.xlu1 %1556  ;;  %1565 = vadd.xlane.f32.xlu2 %v1564_v46 }
 0xa7e   :  { %v1559_v51 = vmul.f32 %v1557_v57, %v2257_v9 }
 0xa80   :  { %v1561_v47 = vsub.f32 %v1551_v41, %v1559_v51 }
 0xa82   :  { %v1563_v6 = vmul.f32 %v1561_v47, %v1561_v47 }
 0xa84   :  { %v1567_v48 = vsel %vm79_vm0, %v1563_v6, 0.0 }
 0xa85   :  { %1568 = vadd.xlane.f32.xlu0 %v1567_v48 }
 0xaf0   :  { %v1566_v52 = vpop.xlane.xlu2 %1565 }
 0xaf1   :  { %v1570_v50 = vmul.f32 %v1566_v52, %v2257_v9 }
 0xaf3   :  { %v1572_v3 = vadd.f32 1e-05, %v1570_v50 }
 0xaf5   :  { %1970 = vrsqrt.f32 %v1572_v3  ;;  %vm1580_vm7 = vweird.f32 %v1572_v3 }
 0xaf8   :  { %v1569_v53 = vpop.xlane.xlu0 %1568 }
 0xaf9   :  { %v1571_v55 = vmul.f32 %v1569_v53, %v2257_v9 }
 0xafb   :  { %v1971_v56 = vpop.eup %1970  ;;  %v1573_v58 = vadd.f32 1e-05, %v1571_v55 }
 0xafc   :  { %v1575_v59 = vmul.f32 %v1971_v56, %v1572_v3  ;;  %vm1581_vm2 = vweird.f32 %v1971_v56 }
 0xafd   :  { %1972 = vrsqrt.f32 %v1573_v58  ;;  %vm1582_vm14 = vmor %vm1580_vm7, %vm1581_vm2  ;;  %vm1590_vm1 = vweird.f32 %v1573_v58 }
 0xafe   :  { %v1576_v61 = vmul.f32 %v1971_v56, %v1575_v59 }
 0xb00   :  { %v1577_v44 = vmul.f32 0.5, %v1576_v61 }
 0xb02   :  { %v1578_v63 = vsub.f32 1.5, %v1577_v44 }
 0xb03   :  { %v1973_v1 = vpop.eup %1972 }
 0xb04   :  { %v1579_v45 = vmul.f32 %v1971_v56, %v1578_v63  ;;  %v1585_v4 = vmul.f32 %v1973_v1, %v1573_v58  ;;  %vm1591_vm15 = vweird.f32 %v1973_v1 }
 0xb05   :  { %vm1592_vm4 = vmor %vm1590_vm1, %vm1591_vm15 }
 0xb06   :  { %v1586_v5 = vmul.f32 %v1973_v1, %v1585_v4  ;;  %v1583_v35 = vsel %vm1582_vm14, %v1971_v56, %v1579_v45  ;;  %v1737_v45 = vperm.slane %v2484_v38, 3 }
 0xb07   :  { %v1594_v14 = vmul.f32 %v1583_v35, %v1560_v2  ;;  %v1740_v35 = vperm.slane %v2484_v38, 4 }
 0xb08   :  { %v1587_v8 = vmul.f32 0.5, %v1586_v5 }
 0xb09   :  { %v1597_v40 = vmul.f32 %v1596_v17, %v1594_v14 }
 0xb0a   :  { %v1588_v12 = vsub.f32 1.5, %v1587_v8 }
 0xb0b   :  { %v1600_v21 = vadd.f32 %v1599_v18, %v1597_v40 }
 0xb0c   :  { %v1589_v15 = vmul.f32 %v1973_v1, %v1588_v12 }
 0xb0e   :  { %v1593_v16 = vsel %vm1592_vm4, %v1973_v1, %v1589_v15 }
 0xb0f   :  { %v1595_v19 = vmul.f32 %v1593_v16, %v1561_v47 }
 0xb11   :  { %v1598_v36 = vmul.f32 %v1596_v17, %v1595_v19 }
 0xb13   :  { %v1601_v22 = vadd.f32 %v1599_v18, %v1598_v36 }
 0xb15   :  { %v1602_v10 = vpack.c.bf16 %v1601_v22, %v1600_v21 }
 0xb17   :  { %1845 = vmatmul.msk.bf16.vlgmr.msrb.gmra.mxu0 %vm79_vm0, %v1602_v10 }
 0xb94   :  { %v1632_v23 = vpop.f32.mrf.mxu0 }
 0xb95   :  { %v1633_v29 = vadd.f32 %v1632_v23, %v1607_v28 }
 0xb97   :  { %v1637_v32 = vmax.f32 %v1633_v29, 0.0 }
 0xb9c   :  { %v1634_v31 = vpop.f32.mrf.mxu0 }
 0xb9d   :  { %v1635_v13 = vadd.f32 %v1634_v31, %v1607_v28 }
 0xb9f   :  { %v1638_v33 = vmax.f32 %v1635_v13, 0.0 }
 0xba1   :  { %v1639_v7 = vpack.c.bf16 %v1638_v33, %v1637_v32 }
 0xba3   :  { %1862 = vmatmul.msk.bf16.vlgmr.msrb.gmra.mxu1 %vm1673_vm5, %v1639_v7 }
 0xc20   :  { %v1686_v62 = vpop.f32.mrf.mxu1 }
 0xc21   :  { %v1687_v0 = vadd.f32 %v1686_v62, %v1648_v34 }
 0xc23   :  { %v1691_v30 = vadd.f32 %v1687_v0, %v1600_v21 }
 0xc25   :  { %v1693_v27 = vsel %vm79_vm0, %v1691_v30, 0.0 }
 0xc26   :  { %1694 = vadd.xlane.f32.xlu1 %v1693_v27 }
 0xc28   :  { %v1688_v39 = vpop.f32.mrf.mxu1 }
 0xc29   :  { %v1689_v37 = vadd.f32 %v1688_v39, %v1648_v34 }
 0xc2b   :  { %v1692_v41 = vadd.f32 %v1689_v37, %v1601_v22 }
 0xc2d   :  { %v1696_v26 = vsel %vm79_vm0, %v1692_v41, 0.0 }
 0xc2e   :  { %1697 = vadd.xlane.f32.xlu2 %v1696_v26 }
 0xc99   :  { %v1695_v20 = vpop.xlane.xlu1 %1694 }
 0xc9a   :  { %v1699_v60 = vmul.f32 %v1695_v20, %v2257_v9 }
 0xc9c   :  { %v1701_v2 = vsub.f32 %v1691_v30, %v1699_v60 }
 0xc9e   :  { %v1703_v43 = vmul.f32 %v1701_v2, %v1701_v2 }
 0xca0   :  { %v1705_v46 = vsel %vm79_vm0, %v1703_v43, 0.0 }
 0xca1   :  { %v1698_v57 = vpop.xlane.xlu2 %1697  ;;  %1706 = vadd.xlane.f32.xlu0 %v1705_v46 }
 0xca2   :  { %v1700_v51 = vmul.f32 %v1698_v57, %v2257_v9 }
 0xca4   :  { %v1702_v47 = vsub.f32 %v1692_v41, %v1700_v51 }
 0xca6   :  { %v1704_v6 = vmul.f32 %v1702_v47, %v1702_v47 }
 0xca8   :  { %v1708_v48 = vsel %vm79_vm0, %v1704_v6, 0.0 }
 0xca9   :  { %1709 = vadd.xlane.f32.xlu1 %v1708_v48 }
 0xd14   :  { %v1707_v52 = vpop.xlane.xlu0 %1706 }
 0xd15   :  { %v1711_v49 = vmul.f32 %v1707_v52, %v2257_v9 }
 0xd17   :  { %v1713_v50 = vadd.f32 1e-05, %v1711_v49 }
 0xd19   :  { %1974 = vrsqrt.f32 %v1713_v50  ;;  %vm1721_vm0 = vweird.f32 %v1713_v50 }
 0xd1c   :  { %v1710_v3 = vpop.xlane.xlu1 %1709 }
 0xd1d   :  { %v1712_v11 = vmul.f32 %v1710_v3, %v2257_v9 }
 0xd1f   :  { %v1975_v53 = vpop.eup %1974  ;;  %v1714_v55 = vadd.f32 1e-05, %v1712_v11 }
 0xd20   :  { %v1716_v56 = vmul.f32 %v1975_v53, %v1713_v50  ;;  %vm1722_vm6 = vweird.f32 %v1975_v53 }
 0xd21   :  { %1976 = vrsqrt.f32 %v1714_v55  ;;  %vm1723_vm8 = vmor %vm1721_vm0, %vm1722_vm6  ;;  %vm1731_vm11 = vweird.f32 %v1714_v55 }
 0xd22   :  { %v1717_v58 = vmul.f32 %v1975_v53, %v1716_v56 }
 0xd24   :  { %v1718_v59 = vmul.f32 0.5, %v1717_v58 }
 0xd26   :  { %v1719_v61 = vsub.f32 1.5, %v1718_v59 }
 0xd27   :  { %v1977_v44 = vpop.eup %1976 }
 0xd28   :  { %v1720_v63 = vmul.f32 %v1975_v53, %v1719_v61  ;;  %v1726_v1 = vmul.f32 %v1977_v44, %v1714_v55  ;;  %vm1732_vm9 = vweird.f32 %v1977_v44 }
 0xd29   :  { %vm1733_vm12 = vmor %vm1731_vm11, %vm1732_vm9 }
 0xd2a   :  { %v1724_v4 = vsel %vm1723_vm8, %v1975_v53, %v1720_v63  ;;  %v1727_v5 = vmul.f32 %v1977_v44, %v1726_v1 }
 0xd2b   :  { %v1735_v9 = vmul.f32 %v1724_v4, %v1701_v2 }
 0xd2c   :  { %v1728_v8 = vmul.f32 0.5, %v1727_v5 }
 0xd2d   :  { %v1738_v12 = vmul.f32 %v1737_v45, %v1735_v9 }
 0xd2e   :  { %v1729_v17 = vsub.f32 1.5, %v1728_v8 }
 0xd2f   :  { %v1741_v14 = vadd.f32 %v1740_v35, %v1738_v12 }
 0xd30   :  { %v1730_v15 = vmul.f32 %v1977_v44, %v1729_v17 }
 0xd31   :  { %v1743_v16 = vpack.c.bf16 %v1741_v14, %v1741_v14 }
 0xd32   :  { %v1734_v18 = vsel %vm1733_vm12, %v1977_v44, %v1730_v15 }
 0xd33   :  { %1746 = vst.msk [vmem:[%s2531_s13] sm:$0xf] %vm1745_vm10, %v1743_v16  ;;  %v1736_v40 = vmul.f32 %v1734_v18, %v1702_v47 }
 0xd35   :  { %v1739_v19 = vmul.f32 %v1737_v45, %v1736_v40 }
 0xd37   :  { %v1742_v36 = vadd.f32 %v1740_v35, %v1739_v19 }
 0xd39   :  { %v1744_v38 = vpack.c.bf16 %v1742_v36, %v1742_v36 }
 0xd3b   :  { %1747 = vst.msk [vmem:[%s2531_s13 + $0x4] sm:$0xf] %vm1745_vm10, %v1744_v38 }

</bundles_post_ra>
